<compile_context>
chip_gen: v7x
topology: tpu7x:2x2x1
jax: 0.10.0
libtpu: 0.0.40
codegen_flags: <defaults>
</compile_context>

<pallas_src>
import functools

import jax
import jax.numpy as jnp
from jax.experimental import pallas as pl
from jax.experimental.pallas import tpu as pltpu

_VMEM_LIMIT = 32 * 1024 * 1024   # within scoped-VMEM defaults on v5e/v6e/v7x


def _round_up(x, m):
    return ((x + m - 1) // m) * m


def _pick_n_tile(np_):
    for c in (512, 256, 128):
        if np_ % c == 0 and np_ >= c:
            return c
    return np_


# ---------------------------------------------------------------------------
# Pallas kernels
# ---------------------------------------------------------------------------
def _gemm_bias_act_kernel(a_ref, b_ref, bias_ref, o_ref, *, act):
    # Single-shot K: (tm, K) @ (K, tn) on the MXU with f32 accumulation,
    # bias + activation fused, straight store (no accumulator scratch).
    y = jnp.dot(a_ref[...], b_ref[...], preferred_element_type=jnp.float32)
    y = y + bias_ref[...]                       # (tm, tn) + (1, tn)
    if act == "relu":
        y = jnp.maximum(y, 0.0)
    elif act == "tanh":
        y = jnp.tanh(y)
    o_ref[...] = y.astype(o_ref.dtype)


def _bn_act_kernel(x_ref, g_ref, b_ref, o_ref, *, eps, act):
    # Per-channel batch statistics over the full (unpadded) row extent of this
    # column tile.  Rows are never padded, so x.shape[0] is the true batch count.
    x = x_ref[...].astype(jnp.float32)
    n = jnp.float32(x.shape[0])
    mean = jnp.sum(x, axis=0, keepdims=True) / n
    xc = x - mean
    var = jnp.sum(xc * xc, axis=0, keepdims=True) / n      # biased variance (PyTorch BN fwd)
    y = xc * jax.lax.rsqrt(var + eps) * g_ref[...] + b_ref[...]
    if act == "relu":
        y = jnp.maximum(y, 0.0)
    o_ref[...] = y.astype(o_ref.dtype)


# ---------------------------------------------------------------------------
# GEMM wrappers
# ---------------------------------------------------------------------------
def _grouped_gemm(a, b, bias, act="none", out_dtype=jnp.bfloat16):
    """act((G,M,K) @ (G,K,N) + bias[N]) with one pallas_call, grid = (G, Mtiles, Ntiles)."""
    G, M, K = a.shape
    Gb, Kb, N = b.shape
    assert G == Gb and K == Kb

    Kp = _round_up(K, 128)                      # zero-pad contraction (only fc1: 32 -> 128)
    Mp = _round_up(M, 8)
    if Mp <= 256:
        tm = Mp
    else:
        tm = 256
        Mp = _round_up(Mp, tm)
    Np = _round_up(N, 128)
    tn = _pick_n_tile(Np)

    ap = jnp.pad(a.astype(jnp.bfloat16), ((0, 0), (0, Mp - M), (0, Kp - K)))
    bp = jnp.pad(b.astype(jnp.bfloat16), ((0, 0), (0, Kp - K), (0, Np - N)))
    biasp = jnp.pad(bias.astype(jnp.float32).reshape(1, -1), ((0, 0), (0, Np - N)))

    out = pl.pallas_call(
        functools.partial(_gemm_bias_act_kernel, act=act),
        out_shape=jax.ShapeDtypeStruct((G, Mp, Np), out_dtype),
        grid_spec=pltpu.PrefetchScalarGridSpec(
            num_scalar_prefetch=0,
            grid=(G, Mp // tm, Np // tn),
            in_specs=[
                pl.BlockSpec((None, tm, Kp), lambda g, i, j: (g, i, 0)),
                pl.BlockSpec((None, Kp, tn), lambda g, i, j: (g, 0, j)),
                pl.BlockSpec((1, tn), lambda g, i, j: (0, j)),
            ],
            out_specs=pl.BlockSpec((None, tm, tn), lambda g, i, j: (g, i, j)),
        ),
        compiler_params=pltpu.CompilerParams(
            dimension_semantics=("parallel", "parallel", "parallel"),
            vmem_limit_bytes=_VMEM_LIMIT),
    )(ap, bp, biasp)
    return out[:, :M, :N]


def matmul_bias_act(a, b, bias, act="none", out_dtype=jnp.bfloat16):
    """act((M,K) @ (K,N) + bias[N])."""
    return _grouped_gemm(a[None], b[None], bias, act=act, out_dtype=out_dtype)[0]


# ---------------------------------------------------------------------------
# BatchNorm (+ optional ReLU), tiled over the channel axis
# ---------------------------------------------------------------------------
def batchnorm_act(x2d, gamma, beta, act="relu", eps=1e-5, out_dtype=jnp.bfloat16):
    M, F = x2d.shape
    Fp = _round_up(F, 128)
    tf = _pick_n_tile(Fp)

    xp = jnp.pad(x2d, ((0, 0), (0, Fp - F)))
    gp = jnp.pad(gamma.astype(jnp.float32).reshape(1, -1), ((0, 0), (0, Fp - F)))
    bp = jnp.pad(beta.astype(jnp.float32).reshape(1, -1), ((0, 0), (0, Fp - F)))

    out = pl.pallas_call(
        functools.partial(_bn_act_kernel, eps=eps, act=act),
        out_shape=jax.ShapeDtypeStruct((M, Fp), out_dtype),
        grid=(Fp // tf,),
        in_specs=[
            pl.BlockSpec((M, tf), lambda j: (0, j)),
            pl.BlockSpec((1, tf), lambda j: (0, j)),
            pl.BlockSpec((1, tf), lambda j: (0, j)),
        ],
        out_specs=pl.BlockSpec((M, tf), lambda j: (0, j)),
        compiler_params=pltpu.CompilerParams(
            dimension_semantics=("parallel",),
            vmem_limit_bytes=_VMEM_LIMIT),
    )(xp, gp, bp)
    return out[:, :F]


# ---------------------------------------------------------------------------
# ConvTranspose2d(k=4, s=2, p=1) via 4-way output-parity decomposition
# ---------------------------------------------------------------------------
def conv_transpose_4x2x1(x_nhwc, w_t, bias, act="none", out_dtype=jnp.bfloat16):
    """x_nhwc: (B,H,W,Cin); w_t: PyTorch ConvTranspose2d weight (Cin,Cout,4,4).

    Output pixel (2i+py, 2j+px) only touches a 2x2 input neighborhood, so the
    deconv splits into 4 parity sub-GEMMs with K = 4*Cin (vs 16*Cin for the
    zero-inserted 4x4 im2col).  Returns NHWC (B, 2H, 2W, Cout).
    """
    B, H, W, Cin = x_nhwc.shape
    _, Cout, kH, kW = w_t.shape
    assert (kH, kW) == (4, 4)

    # equivalent regular-conv weight: spatial flip + swap in/out channels
    w_conv = jnp.transpose(w_t[:, :, ::-1, ::-1], (1, 0, 2, 3))     # (Cout,Cin,4,4)

    xp = jnp.pad(x_nhwc, ((0, 0), (1, 1), (1, 1), (0, 0)))          # halo of 1
    taps = {0: (0, 2), 1: (1, 3)}      # flipped-kernel taps used by each parity
    offs = {0: (0, 1), 1: (1, 2)}      # matching slice starts into the padded input

    a_list, w_list = [], []
    for py in range(2):
        for px in range(2):
            pats, wrows = [], []
            for dy in range(2):
                for dx in range(2):
                    sy, sx = offs[py][dy], offs[px][dx]
                    pats.append(xp[:, sy:sy + H, sx:sx + W, :])
                    ky, kx = taps[py][dy], taps[px][dx]
                    wrows.append(w_conv[:, :, ky, kx].T)            # (Cin, Cout)
            a_list.append(jnp.concatenate(pats, axis=-1).reshape(B * H * W, 4 * Cin))
            w_list.append(jnp.concatenate(wrows, axis=0))           # (4*Cin, Cout)

    a = jnp.stack(a_list, axis=0)      # (4, B*H*W, 4*Cin)
    w = jnp.stack(w_list, axis=0)      # (4, 4*Cin, Cout)

    out = _grouped_gemm(a, w, bias, act=act, out_dtype=out_dtype)   # (4, B*H*W, Cout)
    out = out.reshape(2, 2, B, H, W, Cout)
    out = jnp.transpose(out, (2, 3, 0, 4, 1, 5)).reshape(B, 2 * H, 2 * W, Cout)
    return out


# ---------------------------------------------------------------------------
# Generator forward pass
# ---------------------------------------------------------------------------
def generator_forward(x, params, img_size):
    q = img_size // 4
    # fc block
    h = matmul_bias_act(x, params["fc1_w"], params["fc1_b"])                  # (B,1024)
    h = batchnorm_act(h, params["bn1_g"], params["bn1_b"], act="relu")
    h = matmul_bias_act(h, params["fc2_w"], params["fc2_b"])                  # (B,128*q*q)
    h = batchnorm_act(h, params["bn2_g"], params["bn2_b"], act="relu")
    # view(-1, 128, q, q) in PyTorch is channel-major; go NHWC once for the deconv path
    B = h.shape[0]
    h = h.reshape(B, 128, q, q).transpose(0, 2, 3, 1)                         # (B,q,q,128)
    # deconv block (NHWC end-to-end)
    h = conv_transpose_4x2x1(h, params["dc1_w"], params["dc1_b"])             # (B,2q,2q,64)
    B2, H2, W2, C2 = h.shape
    h = batchnorm_act(h.reshape(B2 * H2 * W2, C2),
                      params["bn3_g"], params["bn3_b"], act="relu")
    h = h.reshape(B2, H2, W2, C2)
    h = conv_transpose_4x2x1(h, params["dc2_w"], params["dc2_b"],
                             act="tanh", out_dtype=jnp.float32)               # (B,4q,4q,Cout)
    return h.transpose(0, 3, 1, 2)                                            # NCHW output


def init_params(key, dim_in, dim_out, img_size):
    q = img_size // 4
    f2 = 128 * q * q
    ks = jax.random.split(key, 12)

    def nrm(k, shape, scale=0.05):
        return scale * jax.random.normal(k, shape, dtype=jnp.float32)

    return {
        "fc1_w": nrm(ks[0], (dim_in, 1024)),
        "fc1_b": nrm(ks[1], (1024,)),
        "bn1_g": 1.0 + nrm(ks[2], (1024,), 0.02),
        "bn1_b": nrm(ks[3], (1024,), 0.02),
        "fc2_w": nrm(ks[4], (1024, f2)),
        "fc2_b": nrm(ks[5], (f2,)),
        "bn2_g": 1.0 + nrm(ks[6], (f2,), 0.02),
        "bn2_b": nrm(ks[7], (f2,), 0.02),
        "dc1_w": nrm(ks[8], (128, 64, 4, 4)),       # ConvTranspose2d weight (Cin,Cout,kH,kW)
        "dc1_b": nrm(ks[9], (64,)),
        "bn3_g": 1.0 + nrm(ks[10], (64,), 0.02),
        "bn3_b": nrm(ks[11], (64,), 0.02),
        "dc2_w": nrm(jax.random.fold_in(key, 101), (64, dim_out, 4, 4)),
        "dc2_b": nrm(jax.random.fold_in(key, 102), (dim_out,)),
    }


if __name__ == "__main__":
    dim_in, dim_out, img_size, batch = 32, 3, 16, 2
    key = jax.random.PRNGKey(0)
    kx, kp = jax.random.split(key)
    x = jax.random.normal(kx, (batch, dim_in), dtype=jnp.float32)
    params = init_params(kp, dim_in, dim_out, img_size)

    fwd = jax.jit(functools.partial(generator_forward, img_size=img_size))
    out = fwd(x, params)
    out = jax.block_until_ready(out)
    assert out.shape == (batch, dim_out, img_size, img_size), out.shape
    assert bool(jnp.all(jnp.isfinite(out))), "non-finite output"
    print("KERNEL_OK")
</pallas_src>

<mosaic_0001>
module attributes {stable_mosaic.version = 11 : i64} {
  func.func @_gemm_bias_act_kernel(%arg0: i32, %arg1: i32, %arg2: i32, %arg3: memref<1x8x128xbf16, #tpu.memory_space<vmem>>, %arg4: memref<1x128x512xbf16, #tpu.memory_space<vmem>>, %arg5: memref<1x512xf32, #tpu.memory_space<vmem>>, %arg6: memref<1x8x512xbf16, #tpu.memory_space<vmem>>) attributes {dimension_semantics = [#tpu.dimension_semantics<parallel>, #tpu.dimension_semantics<parallel>, #tpu.dimension_semantics<parallel>], iteration_bounds = array<i64: 1, 1, 2>, scalar_prefetch = 0 : i64, scratch_operands = 0 : i64, tpu.core_type = #tpu.core_type<tc>, window_params = [{transform_indices = @transform_0, window_bounds = array<i64: 1, 8, 128>}, {transform_indices = @transform_1, window_bounds = array<i64: 1, 128, 512>}, {transform_indices = @transform_2, window_bounds = array<i64: 1, 512>}, {transform_indices = @transform_3, window_bounds = array<i64: 1, 8, 512>}]} {
    %c0 = arith.constant 0 : index
    %c0_0 = arith.constant 0 : index
    %c0_1 = arith.constant 0 : index
    %0 = vector.load %arg3[%c0, %c0_0, %c0_1] : memref<1x8x128xbf16, #tpu.memory_space<vmem>>, vector<1x8x128xbf16>
    %1 = vector.shape_cast %0 : vector<1x8x128xbf16> to vector<8x128xbf16>
    %c0_2 = arith.constant 0 : index
    %c0_3 = arith.constant 0 : index
    %c0_4 = arith.constant 0 : index
    %2 = vector.load %arg4[%c0_2, %c0_3, %c0_4] : memref<1x128x512xbf16, #tpu.memory_space<vmem>>, vector<1x128x512xbf16>
    %3 = vector.shape_cast %2 : vector<1x128x512xbf16> to vector<128x512xbf16>
    %cst = arith.constant dense<0.000000e+00> : vector<8x512xf32>
    %4 = tpu.matmul %1, %3, %cst {dimension_numbers = #tpu.dot_dimension_numbers<[1], [0], [0], [1], [0, 0, 1, 1], [], []>} : vector<8x128xbf16>, vector<128x512xbf16>, vector<8x512xf32> -> vector<8x512xf32>
    %c0_5 = arith.constant 0 : index
    %c0_6 = arith.constant 0 : index
    %5 = vector.load %arg5[%c0_5, %c0_6] : memref<1x512xf32, #tpu.memory_space<vmem>>, vector<1x512xf32>
    %6 = vector.broadcast %5 : vector<1x512xf32> to vector<8x512xf32>
    %7 = arith.addf %4, %6 : vector<8x512xf32>
    %8 = arith.truncf %7 : vector<8x512xf32> to vector<8x512xbf16>
    %c0_7 = arith.constant 0 : index
    %c0_8 = arith.constant 0 : index
    %c0_9 = arith.constant 0 : index
    %9 = vector.load %arg6[%c0_7, %c0_8, %c0_9] : memref<1x8x512xbf16, #tpu.memory_space<vmem>>, vector<1x8x512xbf16>
    %10 = vector.shape_cast %9 : vector<1x8x512xbf16> to vector<8x512xbf16>
    %11 = vector.shape_cast %8 : vector<8x512xbf16> to vector<1x8x512xbf16>
    tpu.vector_store %arg6[%c0_7, %c0_8, %c0_9], %11 {strides = array<i32>} : memref<1x8x512xbf16, #tpu.memory_space<vmem>>, vector<1x8x512xbf16>,
    return
  }
  func.func @transform_0(%arg0: i32, %arg1: i32, %arg2: i32) -> (i32, i32, i32) {
    %c0_i32 = arith.constant 0 : i32
    %c0_i32_0 = arith.constant 0 : i32
    return %arg0, %arg1, %c0_i32 : i32, i32, i32
  }
  func.func @transform_1(%arg0: i32, %arg1: i32, %arg2: i32) -> (i32, i32, i32) {
    %c0_i32 = arith.constant 0 : i32
    %c0_i32_0 = arith.constant 0 : i32
    return %arg0, %c0_i32, %arg2 : i32, i32, i32
  }
  func.func @transform_2(%arg0: i32, %arg1: i32, %arg2: i32) -> (i32, i32) {
    %c0_i32 = arith.constant 0 : i32
    %c0_i32_0 = arith.constant 0 : i32
    return %c0_i32, %arg2 : i32, i32
  }
  func.func @transform_3(%arg0: i32, %arg1: i32, %arg2: i32) -> (i32, i32, i32) {
    %c0_i32 = arith.constant 0 : i32
    return %arg0, %arg1, %arg2 : i32, i32, i32
  }
}

module attributes {stable_mosaic.version = 11 : i64} {
  func.func @_bn_act_kernel(%arg0: i32, %arg1: memref<2x512xbf16, #tpu.memory_space<vmem>>, %arg2: memref<1x512xf32, #tpu.memory_space<vmem>>, %arg3: memref<1x512xf32, #tpu.memory_space<vmem>>, %arg4: memref<2x512xbf16, #tpu.memory_space<vmem>>) attributes {dimension_semantics = [#tpu.dimension_semantics<parallel>], iteration_bounds = array<i64: 2>, scalar_prefetch = 0 : i64, scratch_operands = 0 : i64, tpu.core_type = #tpu.core_type<tc>, window_params = [{transform_indices = @transform_0, window_bounds = array<i64: 2, 512>}, {transform_indices = @transform_1, window_bounds = array<i64: 1, 512>}, {transform_indices = @transform_2, window_bounds = array<i64: 1, 512>}, {transform_indices = @transform_3, window_bounds = array<i64: 2, 512>}]} {
    %c0 = arith.constant 0 : index
    %c0_0 = arith.constant 0 : index
    %0 = vector.load %arg1[%c0, %c0_0] : memref<2x512xbf16, #tpu.memory_space<vmem>>, vector<2x512xbf16>
    %1 = arith.extf %0 : vector<2x512xbf16> to vector<2x512xf32>
    %cst = arith.constant dense<0.000000e+00> : vector<512xf32>
    %2 = vector.multi_reduction <add>, %1, %cst [0] : vector<2x512xf32> to vector<512xf32>
    %3 = vector.shape_cast %2 : vector<512xf32> to vector<1x512xf32>
    %cst_1 = arith.constant 2.000000e+00 : f32
    %4 = vector.broadcast %cst_1 : f32 to vector<1x512xf32>
    %5 = arith.divf %3, %4 : vector<1x512xf32>
    %6 = vector.broadcast %5 : vector<1x512xf32> to vector<2x512xf32>
    %7 = arith.subf %1, %6 : vector<2x512xf32>
    %8 = arith.mulf %7, %7 : vector<2x512xf32>
    %cst_2 = arith.constant dense<0.000000e+00> : vector<512xf32>
    %9 = vector.multi_reduction <add>, %8, %cst_2 [0] : vector<2x512xf32> to vector<512xf32>
    %10 = vector.shape_cast %9 : vector<512xf32> to vector<1x512xf32>
    %cst_3 = arith.constant 2.000000e+00 : f32
    %11 = vector.broadcast %cst_3 : f32 to vector<1x512xf32>
    %12 = arith.divf %10, %11 : vector<1x512xf32>
    %cst_4 = arith.constant 9.99999974E-6 : f32
    %13 = vector.broadcast %cst_4 : f32 to vector<1x512xf32>
    %14 = arith.addf %12, %13 : vector<1x512xf32>
    %15 = math.rsqrt %14 : vector<1x512xf32>
    %16 = vector.broadcast %15 : vector<1x512xf32> to vector<2x512xf32>
    %17 = arith.mulf %7, %16 : vector<2x512xf32>
    %c0_5 = arith.constant 0 : index
    %c0_6 = arith.constant 0 : index
    %18 = vector.load %arg2[%c0_5, %c0_6] : memref<1x512xf32, #tpu.memory_space<vmem>>, vector<1x512xf32>
    %19 = vector.broadcast %18 : vector<1x512xf32> to vector<2x512xf32>
    %20 = arith.mulf %17, %19 : vector<2x512xf32>
    %c0_7 = arith.constant 0 : index
    %c0_8 = arith.constant 0 : index
    %21 = vector.load %arg3[%c0_7, %c0_8] : memref<1x512xf32, #tpu.memory_space<vmem>>, vector<1x512xf32>
    %22 = vector.broadcast %21 : vector<1x512xf32> to vector<2x512xf32>
    %23 = arith.addf %20, %22 : vector<2x512xf32>
    %cst_9 = arith.constant 0.000000e+00 : f32
    %24 = vector.broadcast %cst_9 : f32 to vector<2x512xf32>
    %25 = arith.maximumf %23, %24 : vector<2x512xf32>
    %26 = arith.truncf %25 : vector<2x512xf32> to vector<2x512xbf16>
    %c0_10 = arith.constant 0 : index
    %c0_11 = arith.constant 0 : index
    %27 = vector.load %arg4[%c0_10, %c0_11] : memref<2x512xbf16, #tpu.memory_space<vmem>>, vector<2x512xbf16>
    tpu.vector_store %arg4[%c0_10, %c0_11], %26 {strides = array<i32>} : memref<2x512xbf16, #tpu.memory_space<vmem>>, vector<2x512xbf16>,
    return
  }
  func.func @transform_0(%arg0: i32) -> (i32, i32) {
    %c0_i32 = arith.constant 0 : i32
    %c0_i32_0 = arith.constant 0 : i32
    return %c0_i32, %arg0 : i32, i32
  }
  func.func @transform_1(%arg0: i32) -> (i32, i32) {
    %c0_i32 = arith.constant 0 : i32
    %c0_i32_0 = arith.constant 0 : i32
    return %c0_i32, %arg0 : i32, i32
  }
  func.func @transform_2(%arg0: i32) -> (i32, i32) {
    %c0_i32 = arith.constant 0 : i32
    %c0_i32_0 = arith.constant 0 : i32
    return %c0_i32, %arg0 : i32, i32
  }
  func.func @transform_3(%arg0: i32) -> (i32, i32) {
    %c0_i32 = arith.constant 0 : i32
    %c0_i32_0 = arith.constant 0 : i32
    return %c0_i32, %arg0 : i32, i32
  }
}

module attributes {stable_mosaic.version = 11 : i64} {
  func.func @_gemm_bias_act_kernel(%arg0: i32, %arg1: i32, %arg2: i32, %arg3: memref<1x8x1024xbf16, #tpu.memory_space<vmem>>, %arg4: memref<1x1024x512xbf16, #tpu.memory_space<vmem>>, %arg5: memref<1x512xf32, #tpu.memory_space<vmem>>, %arg6: memref<1x8x512xbf16, #tpu.memory_space<vmem>>) attributes {dimension_semantics = [#tpu.dimension_semantics<parallel>, #tpu.dimension_semantics<parallel>, #tpu.dimension_semantics<parallel>], iteration_bounds = array<i64: 1, 1, 4>, scalar_prefetch = 0 : i64, scratch_operands = 0 : i64, tpu.core_type = #tpu.core_type<tc>, window_params = [{transform_indices = @transform_0, window_bounds = array<i64: 1, 8, 1024>}, {transform_indices = @transform_1, window_bounds = array<i64: 1, 1024, 512>}, {transform_indices = @transform_2, window_bounds = array<i64: 1, 512>}, {transform_indices = @transform_3, window_bounds = array<i64: 1, 8, 512>}]} {
    %c0 = arith.constant 0 : index
    %c0_0 = arith.constant 0 : index
    %c0_1 = arith.constant 0 : index
    %0 = vector.load %arg3[%c0, %c0_0, %c0_1] : memref<1x8x1024xbf16, #tpu.memory_space<vmem>>, vector<1x8x1024xbf16>
    %1 = vector.shape_cast %0 : vector<1x8x1024xbf16> to vector<8x1024xbf16>
    %c0_2 = arith.constant 0 : index
    %c0_3 = arith.constant 0 : index
    %c0_4 = arith.constant 0 : index
    %2 = vector.load %arg4[%c0_2, %c0_3, %c0_4] : memref<1x1024x512xbf16, #tpu.memory_space<vmem>>, vector<1x1024x512xbf16>
    %3 = vector.shape_cast %2 : vector<1x1024x512xbf16> to vector<1024x512xbf16>
    %cst = arith.constant dense<0.000000e+00> : vector<8x512xf32>
    %4 = tpu.matmul %1, %3, %cst {dimension_numbers = #tpu.dot_dimension_numbers<[1], [0], [0], [1], [0, 0, 1, 1], [], []>} : vector<8x1024xbf16>, vector<1024x512xbf16>, vector<8x512xf32> -> vector<8x512xf32>
    %c0_5 = arith.constant 0 : index
    %c0_6 = arith.constant 0 : index
    %5 = vector.load %arg5[%c0_5, %c0_6] : memref<1x512xf32, #tpu.memory_space<vmem>>, vector<1x512xf32>
    %6 = vector.broadcast %5 : vector<1x512xf32> to vector<8x512xf32>
    %7 = arith.addf %4, %6 : vector<8x512xf32>
    %8 = arith.truncf %7 : vector<8x512xf32> to vector<8x512xbf16>
    %c0_7 = arith.constant 0 : index
    %c0_8 = arith.constant 0 : index
    %c0_9 = arith.constant 0 : index
    %9 = vector.load %arg6[%c0_7, %c0_8, %c0_9] : memref<1x8x512xbf16, #tpu.memory_space<vmem>>, vector<1x8x512xbf16>
    %10 = vector.shape_cast %9 : vector<1x8x512xbf16> to vector<8x512xbf16>
    %11 = vector.shape_cast %8 : vector<8x512xbf16> to vector<1x8x512xbf16>
    tpu.vector_store %arg6[%c0_7, %c0_8, %c0_9], %11 {strides = array<i32>} : memref<1x8x512xbf16, #tpu.memory_space<vmem>>, vector<1x8x512xbf16>,
    return
  }
  func.func @transform_0(%arg0: i32, %arg1: i32, %arg2: i32) -> (i32, i32, i32) {
    %c0_i32 = arith.constant 0 : i32
    %c0_i32_0 = arith.constant 0 : i32
    return %arg0, %arg1, %c0_i32 : i32, i32, i32
  }
  func.func @transform_1(%arg0: i32, %arg1: i32, %arg2: i32) -> (i32, i32, i32) {
    %c0_i32 = arith.constant 0 : i32
    %c0_i32_0 = arith.constant 0 : i32
    return %arg0, %c0_i32, %arg2 : i32, i32, i32
  }
  func.func @transform_2(%arg0: i32, %arg1: i32, %arg2: i32) -> (i32, i32) {
    %c0_i32 = arith.constant 0 : i32
    %c0_i32_0 = arith.constant 0 : i32
    return %c0_i32, %arg2 : i32, i32
  }
  func.func @transform_3(%arg0: i32, %arg1: i32, %arg2: i32) -> (i32, i32, i32) {
    %c0_i32 = arith.constant 0 : i32
    return %arg0, %arg1, %arg2 : i32, i32, i32
  }
}

module attributes {stable_mosaic.version = 11 : i64} {
  func.func @_bn_act_kernel(%arg0: i32, %arg1: memref<2x512xbf16, #tpu.memory_space<vmem>>, %arg2: memref<1x512xf32, #tpu.memory_space<vmem>>, %arg3: memref<1x512xf32, #tpu.memory_space<vmem>>, %arg4: memref<2x512xbf16, #tpu.memory_space<vmem>>) attributes {dimension_semantics = [#tpu.dimension_semantics<parallel>], iteration_bounds = array<i64: 4>, scalar_prefetch = 0 : i64, scratch_operands = 0 : i64, tpu.core_type = #tpu.core_type<tc>, window_params = [{transform_indices = @transform_0, window_bounds = array<i64: 2, 512>}, {transform_indices = @transform_1, window_bounds = array<i64: 1, 512>}, {transform_indices = @transform_2, window_bounds = array<i64: 1, 512>}, {transform_indices = @transform_3, window_bounds = array<i64: 2, 512>}]} {
    %c0 = arith.constant 0 : index
    %c0_0 = arith.constant 0 : index
    %0 = vector.load %arg1[%c0, %c0_0] : memref<2x512xbf16, #tpu.memory_space<vmem>>, vector<2x512xbf16>
    %1 = arith.extf %0 : vector<2x512xbf16> to vector<2x512xf32>
    %cst = arith.constant dense<0.000000e+00> : vector<512xf32>
    %2 = vector.multi_reduction <add>, %1, %cst [0] : vector<2x512xf32> to vector<512xf32>
    %3 = vector.shape_cast %2 : vector<512xf32> to vector<1x512xf32>
    %cst_1 = arith.constant 2.000000e+00 : f32
    %4 = vector.broadcast %cst_1 : f32 to vector<1x512xf32>
    %5 = arith.divf %3, %4 : vector<1x512xf32>
    %6 = vector.broadcast %5 : vector<1x512xf32> to vector<2x512xf32>
    %7 = arith.subf %1, %6 : vector<2x512xf32>
    %8 = arith.mulf %7, %7 : vector<2x512xf32>
    %cst_2 = arith.constant dense<0.000000e+00> : vector<512xf32>
    %9 = vector.multi_reduction <add>, %8, %cst_2 [0] : vector<2x512xf32> to vector<512xf32>
    %10 = vector.shape_cast %9 : vector<512xf32> to vector<1x512xf32>
    %cst_3 = arith.constant 2.000000e+00 : f32
    %11 = vector.broadcast %cst_3 : f32 to vector<1x512xf32>
    %12 = arith.divf %10, %11 : vector<1x512xf32>
    %cst_4 = arith.constant 9.99999974E-6 : f32
    %13 = vector.broadcast %cst_4 : f32 to vector<1x512xf32>
    %14 = arith.addf %12, %13 : vector<1x512xf32>
    %15 = math.rsqrt %14 : vector<1x512xf32>
    %16 = vector.broadcast %15 : vector<1x512xf32> to vector<2x512xf32>
    %17 = arith.mulf %7, %16 : vector<2x512xf32>
    %c0_5 = arith.constant 0 : index
    %c0_6 = arith.constant 0 : index
    %18 = vector.load %arg2[%c0_5, %c0_6] : memref<1x512xf32, #tpu.memory_space<vmem>>, vector<1x512xf32>
    %19 = vector.broadcast %18 : vector<1x512xf32> to vector<2x512xf32>
    %20 = arith.mulf %17, %19 : vector<2x512xf32>
    %c0_7 = arith.constant 0 : index
    %c0_8 = arith.constant 0 : index
    %21 = vector.load %arg3[%c0_7, %c0_8] : memref<1x512xf32, #tpu.memory_space<vmem>>, vector<1x512xf32>
    %22 = vector.broadcast %21 : vector<1x512xf32> to vector<2x512xf32>
    %23 = arith.addf %20, %22 : vector<2x512xf32>
    %cst_9 = arith.constant 0.000000e+00 : f32
    %24 = vector.broadcast %cst_9 : f32 to vector<2x512xf32>
    %25 = arith.maximumf %23, %24 : vector<2x512xf32>
    %26 = arith.truncf %25 : vector<2x512xf32> to vector<2x512xbf16>
    %c0_10 = arith.constant 0 : index
    %c0_11 = arith.constant 0 : index
    %27 = vector.load %arg4[%c0_10, %c0_11] : memref<2x512xbf16, #tpu.memory_space<vmem>>, vector<2x512xbf16>
    tpu.vector_store %arg4[%c0_10, %c0_11], %26 {strides = array<i32>} : memref<2x512xbf16, #tpu.memory_space<vmem>>, vector<2x512xbf16>,
    return
  }
  func.func @transform_0(%arg0: i32) -> (i32, i32) {
    %c0_i32 = arith.constant 0 : i32
    %c0_i32_0 = arith.constant 0 : i32
    return %c0_i32, %arg0 : i32, i32
  }
  func.func @transform_1(%arg0: i32) -> (i32, i32) {
    %c0_i32 = arith.constant 0 : i32
    %c0_i32_0 = arith.constant 0 : i32
    return %c0_i32, %arg0 : i32, i32
  }
  func.func @transform_2(%arg0: i32) -> (i32, i32) {
    %c0_i32 = arith.constant 0 : i32
    %c0_i32_0 = arith.constant 0 : i32
    return %c0_i32, %arg0 : i32, i32
  }
  func.func @transform_3(%arg0: i32) -> (i32, i32) {
    %c0_i32 = arith.constant 0 : i32
    %c0_i32_0 = arith.constant 0 : i32
    return %c0_i32, %arg0 : i32, i32
  }
}

module attributes {stable_mosaic.version = 11 : i64} {
  func.func @_gemm_bias_act_kernel(%arg0: i32, %arg1: i32, %arg2: i32, %arg3: memref<1x32x512xbf16, #tpu.memory_space<vmem>>, %arg4: memref<1x512x128xbf16, #tpu.memory_space<vmem>>, %arg5: memref<1x128xf32, #tpu.memory_space<vmem>>, %arg6: memref<1x32x128xbf16, #tpu.memory_space<vmem>>) attributes {dimension_semantics = [#tpu.dimension_semantics<parallel>, #tpu.dimension_semantics<parallel>, #tpu.dimension_semantics<parallel>], iteration_bounds = array<i64: 4, 1, 1>, scalar_prefetch = 0 : i64, scratch_operands = 0 : i64, tpu.core_type = #tpu.core_type<tc>, window_params = [{transform_indices = @transform_0, window_bounds = array<i64: 1, 32, 512>}, {transform_indices = @transform_1, window_bounds = array<i64: 1, 512, 128>}, {transform_indices = @transform_2, window_bounds = array<i64: 1, 128>}, {transform_indices = @transform_3, window_bounds = array<i64: 1, 32, 128>}]} {
    %c0 = arith.constant 0 : index
    %c0_0 = arith.constant 0 : index
    %c0_1 = arith.constant 0 : index
    %0 = vector.load %arg3[%c0, %c0_0, %c0_1] : memref<1x32x512xbf16, #tpu.memory_space<vmem>>, vector<1x32x512xbf16>
    %1 = vector.shape_cast %0 : vector<1x32x512xbf16> to vector<32x512xbf16>
    %c0_2 = arith.constant 0 : index
    %c0_3 = arith.constant 0 : index
    %c0_4 = arith.constant 0 : index
    %2 = vector.load %arg4[%c0_2, %c0_3, %c0_4] : memref<1x512x128xbf16, #tpu.memory_space<vmem>>, vector<1x512x128xbf16>
    %3 = vector.shape_cast %2 : vector<1x512x128xbf16> to vector<512x128xbf16>
    %cst = arith.constant dense<0.000000e+00> : vector<32x128xf32>
    %4 = tpu.matmul %1, %3, %cst {dimension_numbers = #tpu.dot_dimension_numbers<[1], [0], [0], [1], [0, 0, 1, 1], [], []>} : vector<32x512xbf16>, vector<512x128xbf16>, vector<32x128xf32> -> vector<32x128xf32>
    %c0_5 = arith.constant 0 : index
    %c0_6 = arith.constant 0 : index
    %5 = vector.load %arg5[%c0_5, %c0_6] : memref<1x128xf32, #tpu.memory_space<vmem>>, vector<1x128xf32>
    %6 = vector.broadcast %5 : vector<1x128xf32> to vector<32x128xf32>
    %7 = arith.addf %4, %6 : vector<32x128xf32>
    %8 = arith.truncf %7 : vector<32x128xf32> to vector<32x128xbf16>
    %c0_7 = arith.constant 0 : index
    %c0_8 = arith.constant 0 : index
    %c0_9 = arith.constant 0 : index
    %9 = vector.load %arg6[%c0_7, %c0_8, %c0_9] : memref<1x32x128xbf16, #tpu.memory_space<vmem>>, vector<1x32x128xbf16>
    %10 = vector.shape_cast %9 : vector<1x32x128xbf16> to vector<32x128xbf16>
    %11 = vector.shape_cast %8 : vector<32x128xbf16> to vector<1x32x128xbf16>
    tpu.vector_store %arg6[%c0_7, %c0_8, %c0_9], %11 {strides = array<i32>} : memref<1x32x128xbf16, #tpu.memory_space<vmem>>, vector<1x32x128xbf16>,
    return
  }
  func.func @transform_0(%arg0: i32, %arg1: i32, %arg2: i32) -> (i32, i32, i32) {
    %c0_i32 = arith.constant 0 : i32
    %c0_i32_0 = arith.constant 0 : i32
    return %arg0, %arg1, %c0_i32 : i32, i32, i32
  }
  func.func @transform_1(%arg0: i32, %arg1: i32, %arg2: i32) -> (i32, i32, i32) {
    %c0_i32 = arith.constant 0 : i32
    %c0_i32_0 = arith.constant 0 : i32
    return %arg0, %c0_i32, %arg2 : i32, i32, i32
  }
  func.func @transform_2(%arg0: i32, %arg1: i32, %arg2: i32) -> (i32, i32) {
    %c0_i32 = arith.constant 0 : i32
    %c0_i32_0 = arith.constant 0 : i32
    return %c0_i32, %arg2 : i32, i32
  }
  func.func @transform_3(%arg0: i32, %arg1: i32, %arg2: i32) -> (i32, i32, i32) {
    %c0_i32 = arith.constant 0 : i32
    return %arg0, %arg1, %arg2 : i32, i32, i32
  }
}

module attributes {stable_mosaic.version = 11 : i64} {
  func.func @_bn_act_kernel(%arg0: i32, %arg1: memref<128x128xbf16, #tpu.memory_space<vmem>>, %arg2: memref<1x128xf32, #tpu.memory_space<vmem>>, %arg3: memref<1x128xf32, #tpu.memory_space<vmem>>, %arg4: memref<128x128xbf16, #tpu.memory_space<vmem>>) attributes {dimension_semantics = [#tpu.dimension_semantics<parallel>], iteration_bounds = array<i64: 1>, scalar_prefetch = 0 : i64, scratch_operands = 0 : i64, tpu.core_type = #tpu.core_type<tc>, window_params = [{transform_indices = @transform_0, window_bounds = array<i64: 128, 128>}, {transform_indices = @transform_1, window_bounds = array<i64: 1, 128>}, {transform_indices = @transform_2, window_bounds = array<i64: 1, 128>}, {transform_indices = @transform_3, window_bounds = array<i64: 128, 128>}]} {
    %c0 = arith.constant 0 : index
    %c0_0 = arith.constant 0 : index
    %0 = vector.load %arg1[%c0, %c0_0] : memref<128x128xbf16, #tpu.memory_space<vmem>>, vector<128x128xbf16>
    %1 = arith.extf %0 : vector<128x128xbf16> to vector<128x128xf32>
    %cst = arith.constant dense<0.000000e+00> : vector<128xf32>
    %2 = vector.multi_reduction <add>, %1, %cst [0] : vector<128x128xf32> to vector<128xf32>
    %3 = vector.shape_cast %2 : vector<128xf32> to vector<1x128xf32>
    %cst_1 = arith.constant 1.280000e+02 : f32
    %4 = vector.broadcast %cst_1 : f32 to vector<1x128xf32>
    %5 = arith.divf %3, %4 : vector<1x128xf32>
    %6 = vector.broadcast %5 : vector<1x128xf32> to vector<128x128xf32>
    %7 = arith.subf %1, %6 : vector<128x128xf32>
    %8 = arith.mulf %7, %7 : vector<128x128xf32>
    %cst_2 = arith.constant dense<0.000000e+00> : vector<128xf32>
    %9 = vector.multi_reduction <add>, %8, %cst_2 [0] : vector<128x128xf32> to vector<128xf32>
    %10 = vector.shape_cast %9 : vector<128xf32> to vector<1x128xf32>
    %cst_3 = arith.constant 1.280000e+02 : f32
    %11 = vector.broadcast %cst_3 : f32 to vector<1x128xf32>
    %12 = arith.divf %10, %11 : vector<1x128xf32>
    %cst_4 = arith.constant 9.99999974E-6 : f32
    %13 = vector.broadcast %cst_4 : f32 to vector<1x128xf32>
    %14 = arith.addf %12, %13 : vector<1x128xf32>
    %15 = math.rsqrt %14 : vector<1x128xf32>
    %16 = vector.broadcast %15 : vector<1x128xf32> to vector<128x128xf32>
    %17 = arith.mulf %7, %16 : vector<128x128xf32>
    %c0_5 = arith.constant 0 : index
    %c0_6 = arith.constant 0 : index
    %18 = vector.load %arg2[%c0_5, %c0_6] : memref<1x128xf32, #tpu.memory_space<vmem>>, vector<1x128xf32>
    %19 = vector.broadcast %18 : vector<1x128xf32> to vector<128x128xf32>
    %20 = arith.mulf %17, %19 : vector<128x128xf32>
    %c0_7 = arith.constant 0 : index
    %c0_8 = arith.constant 0 : index
    %21 = vector.load %arg3[%c0_7, %c0_8] : memref<1x128xf32, #tpu.memory_space<vmem>>, vector<1x128xf32>
    %22 = vector.broadcast %21 : vector<1x128xf32> to vector<128x128xf32>
    %23 = arith.addf %20, %22 : vector<128x128xf32>
    %cst_9 = arith.constant 0.000000e+00 : f32
    %24 = vector.broadcast %cst_9 : f32 to vector<128x128xf32>
    %25 = arith.maximumf %23, %24 : vector<128x128xf32>
    %26 = arith.truncf %25 : vector<128x128xf32> to vector<128x128xbf16>
    %c0_10 = arith.constant 0 : index
    %c0_11 = arith.constant 0 : index
    %27 = vector.load %arg4[%c0_10, %c0_11] : memref<128x128xbf16, #tpu.memory_space<vmem>>, vector<128x128xbf16>
    tpu.vector_store %arg4[%c0_10, %c0_11], %26 {strides = array<i32>} : memref<128x128xbf16, #tpu.memory_space<vmem>>, vector<128x128xbf16>,
    return
  }
  func.func @transform_0(%arg0: i32) -> (i32, i32) {
    %c0_i32 = arith.constant 0 : i32
    %c0_i32_0 = arith.constant 0 : i32
    return %c0_i32, %arg0 : i32, i32
  }
  func.func @transform_1(%arg0: i32) -> (i32, i32) {
    %c0_i32 = arith.constant 0 : i32
    %c0_i32_0 = arith.constant 0 : i32
    return %c0_i32, %arg0 : i32, i32
  }
  func.func @transform_2(%arg0: i32) -> (i32, i32) {
    %c0_i32 = arith.constant 0 : i32
    %c0_i32_0 = arith.constant 0 : i32
    return %c0_i32, %arg0 : i32, i32
  }
  func.func @transform_3(%arg0: i32) -> (i32, i32) {
    %c0_i32 = arith.constant 0 : i32
    %c0_i32_0 = arith.constant 0 : i32
    return %c0_i32, %arg0 : i32, i32
  }
}

module attributes {stable_mosaic.version = 11 : i64} {
  func.func @_gemm_bias_act_kernel(%arg0: i32, %arg1: i32, %arg2: i32, %arg3: memref<1x128x256xbf16, #tpu.memory_space<vmem>>, %arg4: memref<1x256x128xbf16, #tpu.memory_space<vmem>>, %arg5: memref<1x128xf32, #tpu.memory_space<vmem>>, %arg6: memref<1x128x128xf32, #tpu.memory_space<vmem>>) attributes {dimension_semantics = [#tpu.dimension_semantics<parallel>, #tpu.dimension_semantics<parallel>, #tpu.dimension_semantics<parallel>], iteration_bounds = array<i64: 4, 1, 1>, scalar_prefetch = 0 : i64, scratch_operands = 0 : i64, tpu.core_type = #tpu.core_type<tc>, window_params = [{transform_indices = @transform_0, window_bounds = array<i64: 1, 128, 256>}, {transform_indices = @transform_1, window_bounds = array<i64: 1, 256, 128>}, {transform_indices = @transform_2, window_bounds = array<i64: 1, 128>}, {transform_indices = @transform_3, window_bounds = array<i64: 1, 128, 128>}]} {
    %c0 = arith.constant 0 : index
    %c0_0 = arith.constant 0 : index
    %c0_1 = arith.constant 0 : index
    %0 = vector.load %arg3[%c0, %c0_0, %c0_1] : memref<1x128x256xbf16, #tpu.memory_space<vmem>>, vector<1x128x256xbf16>
    %1 = vector.shape_cast %0 : vector<1x128x256xbf16> to vector<128x256xbf16>
    %c0_2 = arith.constant 0 : index
    %c0_3 = arith.constant 0 : index
    %c0_4 = arith.constant 0 : index
    %2 = vector.load %arg4[%c0_2, %c0_3, %c0_4] : memref<1x256x128xbf16, #tpu.memory_space<vmem>>, vector<1x256x128xbf16>
    %3 = vector.shape_cast %2 : vector<1x256x128xbf16> to vector<256x128xbf16>
    %cst = arith.constant dense<0.000000e+00> : vector<128x128xf32>
    %4 = tpu.matmul %1, %3, %cst {dimension_numbers = #tpu.dot_dimension_numbers<[1], [0], [0], [1], [0, 0, 1, 1], [], []>} : vector<128x256xbf16>, vector<256x128xbf16>, vector<128x128xf32> -> vector<128x128xf32>
    %c0_5 = arith.constant 0 : index
    %c0_6 = arith.constant 0 : index
    %5 = vector.load %arg5[%c0_5, %c0_6] : memref<1x128xf32, #tpu.memory_space<vmem>>, vector<1x128xf32>
    %6 = vector.broadcast %5 : vector<1x128xf32> to vector<128x128xf32>
    %7 = arith.addf %4, %6 : vector<128x128xf32>
    %8 = math.tanh %7 : vector<128x128xf32>
    %c0_7 = arith.constant 0 : index
    %c0_8 = arith.constant 0 : index
    %c0_9 = arith.constant 0 : index
    %9 = vector.load %arg6[%c0_7, %c0_8, %c0_9] : memref<1x128x128xf32, #tpu.memory_space<vmem>>, vector<1x128x128xf32>
    %10 = vector.shape_cast %9 : vector<1x128x128xf32> to vector<128x128xf32>
    %11 = vector.shape_cast %8 : vector<128x128xf32> to vector<1x128x128xf32>
    tpu.vector_store %arg6[%c0_7, %c0_8, %c0_9], %11 {strides = array<i32>} : memref<1x128x128xf32, #tpu.memory_space<vmem>>, vector<1x128x128xf32>,
    return
  }
  func.func @transform_0(%arg0: i32, %arg1: i32, %arg2: i32) -> (i32, i32, i32) {
    %c0_i32 = arith.constant 0 : i32
    %c0_i32_0 = arith.constant 0 : i32
    return %arg0, %arg1, %c0_i32 : i32, i32, i32
  }
  func.func @transform_1(%arg0: i32, %arg1: i32, %arg2: i32) -> (i32, i32, i32) {
    %c0_i32 = arith.constant 0 : i32
    %c0_i32_0 = arith.constant 0 : i32
    return %arg0, %c0_i32, %arg2 : i32, i32, i32
  }
  func.func @transform_2(%arg0: i32, %arg1: i32, %arg2: i32) -> (i32, i32) {
    %c0_i32 = arith.constant 0 : i32
    %c0_i32_0 = arith.constant 0 : i32
    return %c0_i32, %arg2 : i32, i32
  }
  func.func @transform_3(%arg0: i32, %arg1: i32, %arg2: i32) -> (i32, i32, i32) {
    %c0_i32 = arith.constant 0 : i32
    return %arg0, %arg1, %arg2 : i32, i32, i32
  }
}

</mosaic_0001>

<bundles_post_ra>
// kernel: generator_forward.8
= control target key start
LH: loop header
LB: loop body
LE: loop exit
PB: predicated region body
PF: predicated region fallthrough
CT: control target
= control target key end

     0   :  { %8 = vsyncpa [#allocation3], 0  ;;  %s1041_s0 = inlined_call_operand.vmem [shape: bf16[2,1024], index: 0, kind: input, shape index: {}]   ;;  %s1042_s1 = inlined_call_operand.hbm [shape: f32[1,1024], index: 1, kind: input, shape index: {}]   ;;  %s1043_s2 = inlined_call_operand.hbm [shape: f32[1,1024], index: 2, kind: input, shape index: {}]   ;;  %s1044_s3 = inlined_call_operand.vmem [shape: bf16[2,1024], index: 3, kind: output, shape index: {}]  }
   0x1   :  { %10 = vsyncpa [#allocation3 + $0x1], 0 }
   0x2   :  { %11 = vsyncpa [#allocation5], 0 }
   0x3   :  { %13 = vsyncpa [#allocation5 + $0x1], 0  ;;  %s838_s12 = smov 0   ;;  %s840_s13 = smov 0  }
   0x4   :  { %s842_s14 = smov 0   ;;  %s844_s15 = smov 0  }
   0x5 LB: > { %s638_s16 = sadd.s32 4294967295, %s812_s15   ;;  %s858_s17 = sadd.s32 1, %s812_s15   ;;  %s812_s15 = sphi %s844_s15, %s1056_s15   ;;  %s808_s14 = sphi %s842_s14, %s1055_s14   ;;  %s804_s13 = sphi %s840_s13, %s1054_s13   ;;  %s800_s12 = sphi %s838_s12, %s1053_s12  }
   0x6   : > { %s49_s18 = ssub.s32 %s812_s15, %s858_s17  ;;  %s52_s19 = sadd.s32 1, %s808_s14 }
   0x7   : > { %p50_p0 = scmp.eq.s32.totalorder %s49_s18, 0  ;;  %p59_p1 = scmp.ne.s32.totalorder %s808_s14, %s804_s13 }
   0x8   : > { %p60_p2 = scmp.eq.s32.totalorder %s812_s15, 0  ;;  %p65_p3 = scmp.ne.s32.totalorder %s804_s13, %s800_s12 }
   0x9   : > { %s868_s20 = scalar_select %p50_p0, %s808_s14, %s52_s19  }
   0xa   : > { %p61_p4 = por %p60_p2, %p59_p1  ;;  %p66_p5 = scmp.eq.s32.totalorder %s638_s16, 0 }
   0xb   : > { %p671_p6 = scmp.lt.s32.totalorder %s812_s15, 2  ;;  %s878_s22 = sand.u32 1, %s808_s14  }
   0xc   : > { %p873_p7 = por %p66_p5, %p65_p3  ;;  %s642_s23 = sshll.u32 %s878_s22, 2 }
   0xd   : > { %s658_s24 = sshll.u32 %s812_s15, 6  ;;  %s153_s28 = scalar_lea.vmem [#allocation2], %s642_s23 }
   0xe   : > { %s1046_s21 = scalar_select %p873_p7, 1, 0 }
   0xf   : > { %s887_s27 = scalar_lea.hbm %s1042_s1, %s658_s24  ;;  %s161_s29 = sshll.u32 %s153_s28, 4  ;;  %s891_s29 = int_to_ptr.vmem [resolvable:$true] %s161_s29 }
  0x10   : > { %p893_p8 = pnand %p671_p6, %p61_p4  ;;  %s150_s4 = scalar_lea.sflag [#allocation3], %s878_s22 }
  0x11   : > { %s714_s5 = scalar_lea.hbm %s887_s27, 64  ;;  %s719_s8 = scalar_lea.hbm %s1042_s1, 128 }
  0x12   : > { %p715_p11 = scmp.ne.s32.totalorder %s887_s27, %s714_s5  ;;  %p716_p12 = pneg %p893_p8 }
  0x13   : > { %p720_p1 = scmp.lt.u32.totalorder %s887_s27, %s1042_s1  ;;  %p721_p2 = scmp.lt.u32.totalorder %s719_s8, %s714_s5 }
  0x14   : > { %p717_p13 = pnand %p716_p12, %p715_p11  ;;  %p723_p4 = scmp.lt.u32.totalorder %s714_s5, %s887_s27 }
  0x15   : > { %p722_p3 = por %p721_p2, %p720_p1 }
  0x16   : > { %p718_p0 = pneg %p717_p13 }
  0x17   : > { %p724_p5 = por %p723_p4, %p722_p3 }
  0x19   : > { %p725_p6 = pnand %p724_p5, %p718_p0 }
  0x1b   : > { %728 = shalt.err (!%p725_p6)
}
  0x1c   : > { %s729_s11 = scalar_lea.vmem %s891_s29, 64  ;;  %s814_s12 = smov [#allocation2]  }
  0x1d   : > { %p730_p11 = scmp.ne.s32.totalorder %s891_s29, %s729_s11  ;;  %s734_s18 = sshll.u32 %s814_s12, 4  ;;  %s735_s18 = int_to_ptr.vmem [resolvable:$false] %s734_s18 }
  0x1e   : > { %s736_s19 = scalar_lea.vmem %s735_s18, 128  ;;  %p737_p10 = scmp.lt.s32.totalorder %s891_s29, %s735_s18 }
  0x1f   : > { %p732_p13 = pnand %p730_p11, %p716_p12  ;;  %p738_p1 = scmp.lt.s32.totalorder %s736_s19, %s729_s11 }
  0x21   : > { %p733_p9 = pneg %p732_p13  ;;  %p739_p2 = por %p738_p1, %p737_p10 }
  0x23   : > { %p740_p3 = pnand %p739_p2, %p733_p9 }
  0x25   : > { %743 = shalt.err (!%p740_p3)
}
  0x26   : > { %667 = dma.hbm_to_vmem [thread:$0]  (!%p893_p8), %s887_s27, 64, %s891_s29, %s150_s4  }
  0x27   : > { %p1048_p0 = scmp.lt.s32.totalorder %s812_s15, 3  ;;  %p1049_p4 = scmp.ge.s32.totalorder %s812_s15, 1 }
  0x28   : > { %s938_s5 = scalar_lea.hbm %s1043_s2, %s658_s24  ;;  %s172_s6 = scalar_lea.vmem [#allocation4], %s642_s23 }
  0x29   : > { %p929_p5 = pnand %p1049_p4, %p1048_p0  ;;  %s180_s7 = sshll.u32 %s172_s6, 4  ;;  %s181_s7 = int_to_ptr.vmem [resolvable:$true] %s180_s7 }
  0x2a   : > { %s169_s27 = scalar_lea.sflag [#allocation5], %s878_s22  ;;  %s744_s29 = scalar_lea.hbm %s938_s5, 64 }
  0x2b   : > { %s1050_s25 = scalar_select %p929_p5, 1, 0 }
  0x2c   : > { %p745_p9 = scmp.ne.s32.totalorder %s938_s5, %s744_s29  ;;  %s749_s24 = scalar_lea.hbm %s1043_s2, 128 }
  0x2d   : > { %p750_p11 = scmp.lt.u32.totalorder %s938_s5, %s1043_s2  ;;  %p751_p13 = scmp.lt.u32.totalorder %s749_s24, %s744_s29 }
  0x2e   : > { %p747_p10 = pnand %p745_p9, %p716_p12  ;;  %p753_p2 = scmp.lt.u32.totalorder %s744_s29, %s938_s5 }
  0x2f   : > { %p752_p1 = por %p751_p13, %p750_p11 }
  0x30   : > { %p748_p6 = pneg %p747_p10 }
  0x31   : > { %p754_p3 = por %p753_p2, %p752_p1 }
  0x33   : > { %p755_p0 = pnand %p754_p3, %p748_p6 }
  0x35   : > { %758 = shalt.err (!%p755_p0)
}
  0x36   : > { %s759_s22 = scalar_lea.vmem %s181_s7, 64  ;;  %s815_s23 = smov [#allocation4]  }
  0x37   : > { %p760_p4 = scmp.ne.s32.totalorder %s181_s7, %s759_s22  ;;  %s764_s11 = sshll.u32 %s815_s23, 4  ;;  %s765_s11 = int_to_ptr.vmem [resolvable:$false] %s764_s11 }
  0x38   : > { %s766_s12 = scalar_lea.vmem %s765_s11, 128  ;;  %p767_p7 = scmp.lt.s32.totalorder %s181_s7, %s765_s11 }
  0x39   : > { %p762_p9 = pnand %p760_p4, %p716_p12  ;;  %p768_p5 = scmp.lt.s32.totalorder %s766_s12, %s759_s22 }
  0x3b   : > { %p763_p10 = pneg %p762_p9  ;;  %p769_p11 = por %p768_p5, %p767_p7 }
  0x3d   : > { %p770_p13 = pnand %p769_p11, %p763_p10 }
  0x3f   : > { %773 = shalt.err (!%p770_p13)
}
  0x40   : > { %670 = dma.hbm_to_vmem [thread:$0]  (!%p893_p8), %s938_s5, 64, %s181_s7, %s169_s27  }
  0x41   : > { %p1051_p6 = scmp.ne.s32.totalorder %s1050_s25, 0 }
  0x42   : > { %s191_s18 = sand.u32 (!%p1051_p6), 1, %s804_s13   ;;  %p1052_p12 = scmp.ne.s32.totalorder (!%p1051_p6), %s1046_s21, 0 }
  0x43   : > { %189 = sbr.rel (%p1051_p6) target bundleno = 177 (0xb1), region = 32  ;;  %s649_s19 = sshll.u32 (!%p1051_p6), %s191_s18, 2 }
  0x44   : > { %s192_s26 = scalar_lea.sflag (!%p1051_p6), [#allocation3], %s191_s18  ;;  %s965_s28 = scalar_lea.vmem (!%p1051_p6), [#allocation2], %s649_s19 }
  0x4a   : > { %791 = dma.done.wait (%p1052_p12), %s192_s26, 64  }
  0x4b   : > { %793 = vsyncadd (%p1052_p12), %s192_s26, 4294967232  ;;  %s201_s6 = scalar_lea.sflag [#allocation5], %s191_s18  ;;  %s971_s30 = scalar_lea.vmem [#allocation4], %s649_s19 }
  0x4c   : > { %795 = dma.done.wait (%p1052_p12), %s201_s6, 64  }
  0x4d   : > { %797 = vsyncadd (%p1052_p12), %s201_s6, 4294967232  ;;  %s651_s25 = sshll.u32 %s638_s16, 2  ;;  %v254_v0 = vlaneseq  ;;  %v816_v1 = vmov 1983009808   ;;  %vm271_vm0 = vcmask 1041408  }
  0x4e   : > { %p236_p7 = scmp.lt.s32.totalorder %s651_s25, 7  ;;  %v252_v2 = vunpack.c.l.s4 %v816_v1 }
  0x4f   : > { %v979_v3 = vshrl.u32 %v254_v0, 7 }
  0x50   : > { %s1058_s25 = smov (!%p236_p7, %s651_s25), 7  ;;  %v253_v4 = vunpack.c.0.s8 %v252_v2 }
  0x51   : > { %s238_s27 = scalar_lea.vmem %s1041_s0, %s1058_s25  ;;  %s245_s21 = scalar_lea.vmem %s1044_s3, %s1058_s25 }
  0x52   : > { %v988_v5 = vsub.s32 %v253_v4, %v979_v3  ;;  %v247_v6 = vld [vmem:[%s238_s27] sm:$0xf] }
  0x53   : > { %v248_v7 = vunpack.c.l.bf16 %v247_v6 }
  0x55   : > { %v250_v8 = vcombine.high %v248_v7, %v248_v7  ;;  %v257_v9 = vrot.slane %v248_v7, %v988_v5 }
  0x57   : > { %v264_v10 = vrot.slane %v250_v8, %v988_v5  ;;  %v265_v11 = vcombine.high %v257_v9, %v257_v9  ;;  %v272_v12 = vsel %vm271_vm0, %v257_v9, 0.0 }
  0x58   : > { %v273_v13 = vrot.slane %v272_v12, 4 }
  0x59   : > { %v266_v14 = vcombine.high %v264_v10, %v264_v10  ;;  %v279_v15 = vsel %vm271_vm0, %v265_v11, 0.0  ;;  %v286_v16 = vsel %vm271_vm0, %v264_v10, 0.0 }
  0x5a   : > { %v274_v17 = vadd.f32 %v273_v13, %v272_v12  ;;  %v280_v18 = vrot.slane %v279_v15, 4  ;;  %v287_v19 = vrot.slane %v286_v16, 4 }
  0x5b   : > { %v293_v20 = vsel %vm271_vm0, %v266_v14, 0.0 }
  0x5c   : > { %v275_v21 = vrot.slane %v274_v17, 2  ;;  %v281_v22 = vadd.f32 %v280_v18, %v279_v15  ;;  %v288_v23 = vadd.f32 %v287_v19, %v286_v16  ;;  %v294_v24 = vrot.slane %v293_v20, 4 }
  0x5e   : > { %v276_v25 = vadd.f32 %v275_v21, %v274_v17  ;;  %v282_v26 = vrot.slane %v281_v22, 2  ;;  %v289_v27 = vrot.slane %v288_v23, 2  ;;  %v295_v28 = vadd.f32 %v294_v24, %v293_v20 }
  0x60   : > { %v277_v29 = vrot.slane %v276_v25, 1  ;;  %v283_v30 = vadd.f32 %v282_v26, %v281_v22  ;;  %v290_v31 = vadd.f32 %v289_v27, %v288_v23  ;;  %v296_v32 = vrot.slane %v295_v28, 2 }
  0x62   : > { %v278_v33 = vadd.f32 %v277_v29, %v276_v25  ;;  %v284_v34 = vrot.slane %v283_v30, 1  ;;  %v291_v35 = vrot.slane %v290_v31, 1  ;;  %v297_v36 = vadd.f32 %v296_v32, %v295_v28 }
  0x63   : > { %v422_v32 = vsub.s32 1, %v979_v3 }
  0x64   : > { %v285_v37 = vadd.f32 %v284_v34, %v283_v30  ;;  %v292_v38 = vadd.f32 %v291_v35, %v290_v31  ;;  %v298_v39 = vrot.slane %v297_v36, 1  ;;  %v301_v40 = vmul.f32 0.5, %v278_v33  ;;  %v414_v35 = vld [vmem:[%s965_s28] sm:$0xf] }
  0x65   : > { %v418_v31 = vsub.s32 0, %v979_v3  ;;  %v426_v33 = vsub.s32 2, %v979_v3  ;;  %v430_v34 = vsub.s32 3, %v979_v3 }
  0x66   : > { %v299_v41 = vadd.f32 %v298_v39, %v297_v36  ;;  %v302_v42 = vmul.f32 0.5, %v285_v37  ;;  %v303_v43 = vmul.f32 0.5, %v292_v38  ;;  %v451_v36 = vld [vmem:[%s971_s30] sm:$0xf]  ;;  %v423_v38 = vrot.slane %v414_v35, %v422_v32 }
  0x67   : > { %v419_v37 = vrot.slane %v414_v35, %v418_v31  ;;  %v427_v39 = vrot.slane %v414_v35, %v426_v33 }
  0x68   : > { %v304_v44 = vmul.f32 0.5, %v299_v41  ;;  %v309_v45 = vcombine.low %v301_v40, %v302_v42  ;;  %v431_v40 = vrot.slane %v414_v35, %v430_v34  ;;  %v456_v41 = vrot.slane %v451_v36, %v418_v31 }
  0x69   : > { %v460_v42 = vrot.slane %v451_v36, %v422_v32 }
  0x6a   : > { %v310_v46 = vcombine.low %v303_v43, %v304_v44  ;;  %v317_v47 = vrot.slane %v309_v45, %v988_v5  ;;  %v464_v43 = vrot.slane %v451_v36, %v426_v33  ;;  %v468_v44 = vrot.slane %v451_v36, %v430_v34 }
  0x6c   : > { %v324_v48 = vrot.slane %v310_v46, %v988_v5  ;;  %v432_v46 = vcombine.low %v419_v37, %v423_v38 }
  0x6e   : > { %v325_v49 = vcombine.low %v317_v47, %v324_v48  ;;  %v433_v47 = vcombine.low %v427_v39, %v431_v40 }
  0x70   : > { %v998_v50 = vsub.f32 %v248_v7, %v325_v49 }
  0x72   : > { %v328_v51 = vmul.f32 %v998_v50, %v998_v50 }
  0x74   : > { %v330_v52 = vcombine.high %v328_v51, %v328_v51  ;;  %v337_v53 = vrot.slane %v328_v51, %v988_v5 }
  0x76   : > { %v344_v54 = vrot.slane %v330_v52, %v988_v5  ;;  %v345_v55 = vcombine.high %v337_v53, %v337_v53  ;;  %v351_v56 = vsel %vm271_vm0, %v337_v53, 0.0  ;;  %v469_v52 = vcombine.low %v456_v41, %v460_v42 }
  0x77   : > { %v352_v57 = vrot.slane %v351_v56, 4  ;;  %v470_v53 = vcombine.low %v464_v43, %v468_v44 }
  0x78   : > { %v346_v58 = vcombine.high %v344_v54, %v344_v54  ;;  %v358_v59 = vsel %vm271_vm0, %v345_v55, 0.0  ;;  %v365_v60 = vsel %vm271_vm0, %v344_v54, 0.0 }
  0x79   : > { %v353_v61 = vadd.f32 %v352_v57, %v351_v56  ;;  %v359_v62 = vrot.slane %v358_v59, 4  ;;  %v366_v63 = vrot.slane %v365_v60, 4  ;;  %v440_v57 = vrot.slane %v432_v46, %v988_v5 }
  0x7a   : > { %v372_v0 = vsel %vm271_vm0, %v346_v58, 0.0  ;;  %v447_v58 = vrot.slane %v433_v47, %v988_v5 }
  0x7b   : > { %v354_v1 = vrot.slane %v353_v61, 2  ;;  %v360_v2 = vadd.f32 %v359_v62, %v358_v59  ;;  %v367_v4 = vadd.f32 %v366_v63, %v365_v60  ;;  %v373_v6 = vrot.slane %v372_v0, 4 }
  0x7c   : > { %v477_v60 = vrot.slane %v469_v52, %v988_v5  ;;  %v448_v63 = vcombine.low %v440_v57, %v447_v58 }
  0x7d   : > { %v355_v7 = vadd.f32 %v354_v1, %v353_v61  ;;  %v361_v8 = vrot.slane %v360_v2, 2  ;;  %v368_v9 = vrot.slane %v367_v4, 2  ;;  %v374_v10 = vadd.f32 %v373_v6, %v372_v0 }
  0x7e   : > { %v484_v61 = vrot.slane %v470_v53, %v988_v5 }
  0x7f   : > { %v356_v11 = vrot.slane %v355_v7, 1  ;;  %v362_v12 = vadd.f32 %v361_v8, %v360_v2  ;;  %v369_v13 = vadd.f32 %v368_v9, %v367_v4  ;;  %v375_v14 = vrot.slane %v374_v10, 2 }
  0x80   : > { %v485_v1 = vcombine.low %v477_v60, %v484_v61  ;;  %v817_v4 = vmov 1966171168  }
  0x81   : > { %v357_v15 = vadd.f32 %v356_v11, %v355_v7  ;;  %v363_v16 = vrot.slane %v362_v12, 1  ;;  %v370_v17 = vrot.slane %v369_v13, 1  ;;  %v376_v18 = vadd.f32 %v375_v14, %v374_v10 }
  0x82   : > { %v522_v6 = vunpack.c.l.s4 %v817_v4 }
  0x83   : > { %v364_v19 = vadd.f32 %v363_v16, %v362_v12  ;;  %v371_v20 = vadd.f32 %v370_v17, %v369_v13  ;;  %v377_v21 = vrot.slane %v376_v18, 1  ;;  %v379_v22 = vmul.f32 0.5, %v357_v15 }
  0x84   : > { %v523_v9 = vunpack.c.0.s8 %v522_v6 }
  0x85   : > { %v378_v23 = vadd.f32 %v377_v21, %v376_v18  ;;  %v380_v24 = vmul.f32 0.5, %v364_v19  ;;  %v381_v25 = vmul.f32 0.5, %v371_v20  ;;  %v383_v26 = vadd.f32 1e-05, %v379_v22 }
  0x86   : > { %v526_v14 = vsub.s32 %v523_v9, %v979_v3 }
  0x87   : > { %v382_v27 = vmul.f32 0.5, %v378_v23  ;;  %v384_v28 = vadd.f32 1e-05, %v380_v24  ;;  %v385_v29 = vadd.f32 1e-05, %v381_v25  ;;  %706 = vrsqrt.f32 %v383_v26 }
  0x89   : > { %v386_v30 = vadd.f32 1e-05, %v382_v27  ;;  %708 = vrsqrt.f32 %v384_v28 }
  0x8a   : > { %710 = vrsqrt.f32 %v385_v29 }
  0x8b   : > { %712 = vrsqrt.f32 %v386_v30 }
  0x91   : > { %v707_v45 = vpop.eup %706 }
  0x93   : > { %v709_v48 = vpop.eup %708 }
  0x94   : > { %v711_v49 = vpop.eup %710  ;;  %v395_v51 = vcombine.low %v707_v45, %v709_v48 }
  0x95   : > { %v713_v54 = vpop.eup %712 }
  0x96   : > { %v396_v55 = vcombine.low %v711_v49, %v713_v54  ;;  %v403_v56 = vrot.slane %v395_v51, %v988_v5 }
  0x98   : > { %v410_v59 = vrot.slane %v396_v55, %v988_v5 }
  0x9a   : > { %v411_v62 = vcombine.low %v403_v56, %v410_v59 }
  0x9c   : > { %v413_v0 = vmul.f32 %v411_v62, %v998_v50 }
  0x9e   : > { %v450_v2 = vmul.f32 %v448_v63, %v413_v0 }
  0xa0   : > { %v487_v7 = vadd.f32 %v485_v1, %v450_v2 }
  0xa2   : > { %v488_v8 = vmax.f32 %v487_v7, 0.0 }
  0xa4   : > { %v490_v10 = vcombine.high %v488_v8, %v488_v8  ;;  %v497_v11 = vrot.slane %v488_v8, %v988_v5 }
  0xa6   : > { %v504_v12 = vrot.slane %v490_v10, %v988_v5  ;;  %v505_v13 = vcombine.high %v497_v11, %v497_v11 }
  0xa8   : > { %v506_v15 = vcombine.high %v504_v12, %v504_v12  ;;  %v653_v16 = vpack.c.bf16 %v505_v13, %v497_v11 }
  0xaa   : > { %v654_v17 = vpack.c.bf16 %v506_v15, %v504_v12  ;;  %v527_v50 = vrot.slane %v653_v16, %v526_v14 }
  0xac   : > { %v534_v18 = vrot.slane %v654_v17, %v526_v14 }
  0xae   : > { %v535_v19 = vcombine.low %v527_v50, %v534_v18 }
  0xb0   : > { %655 = vst.sshfl [vmem:[%s245_s21] sm:$0x55 pattern:$0x73625140] %v535_v19 }
  0xb1 PF: > { %p16_p8 = scmp.ge.s32.totalorder %s858_s17, 4   ;;  %s1053_s12 = smov %s804_s13 }
  0xb2   : > { %s1054_s13 = smov %s808_s14  ;;  %s1055_s14 = smov %s868_s20 }
  0xb3   : > { %s1056_s15 = smov %s858_s17  ;;  %18 = sbr.rel (!%p16_p8) target bundleno = 5 (0x5), region = 88 }
  0xba   :  { %565 = vsyncpa [#allocation3], 1 }
  0xbb   :  { %567 = vsyncpa [#allocation3 + $0x1], 1 }
  0xbc   :  { %568 = vsyncpa [#allocation5], 1 }
  0xbd   :  { %570 = vsyncpa [#allocation5 + $0x1], 1 }

// kernel: generator_forward.7
= control target key start
LH: loop header
LB: loop body
LE: loop exit
PB: predicated region body
PF: predicated region fallthrough
CT: control target
= control target key end

     0   :  { %8 = vsyncpa [#allocation4], 0  ;;  %s1307_s0 = inlined_call_operand.vmem [shape: bf16[1,8,128], index: 0, kind: input, shape index: {}]   ;;  %s1308_s1 = inlined_call_operand.vmem [shape: bf16[1,128,1024], index: 1, kind: input, shape index: {}]   ;;  %s1309_s2 = inlined_call_operand.hbm [shape: f32[1,1024], index: 2, kind: input, shape index: {}]   ;;  %s1310_s3 = inlined_call_operand.vmem [shape: bf16[1,8,1024], index: 3, kind: output, shape index: {}]  }
   0x1   :  { %10 = vsyncpa [#allocation4 + $0x1], 0  ;;  %s1088_s12 = smov 0   ;;  %s1090_s13 = smov 0  }
   0x2   :  { %s1092_s14 = smov 0   ;;  %s1094_s15 = smov 0  }
   0x3   :  { %s1096_s16 = smov 0   ;;  %s1098_s17 = smov 0  }
   0x4 LB: > { %s831_s18 = sadd.s32 4294967295, %s1064_s17   ;;  %s28_s19 = sadd.s32 1, %s1060_s16  ;;  %s1064_s17 = sphi %s1098_s17, %s16_s17   ;;  %s1060_s16 = sphi %s1096_s16, %s1319_s16   ;;  %s1056_s15 = sphi %s1094_s15, %s1318_s15   ;;  %s1052_s14 = sphi %s1092_s14, %s1317_s14   ;;  %s1048_s13 = sphi %s1090_s13, %s1316_s13   ;;  %s1044_s12 = sphi %s1088_s12, %s1315_s12  }
   0x5   : > { %p29_p0 = scmp.ge.s32.totalorder %s28_s19, 2  ;;  %s72_s20 = sadd.s32 1, %s1052_s14 }
   0x6   : > { %p79_p1 = scmp.ne.s32.totalorder %s1052_s14, %s1048_s13  ;;  %p80_p2 = scmp.eq.s32.totalorder %s1064_s17, 0 }
   0x7   : > { %s1321_s19 = smov (%p29_p0, %s28_s19), 0  ;;  %p111_p4 = scmp.ne.s32.totalorder %s1048_s13, %s1044_s12 }
   0x8   : > { %p1124_p3 = por %p80_p2, %p79_p1  ;;  %s68_s22 = ssub.s32 %s1060_s16, %s1321_s19 }
   0x9   : > { %p112_p5 = scmp.eq.s32.totalorder %s831_s18, 0  ;;  %p70_p6 = scmp.eq.s32.totalorder %s68_s22, 0 }
   0xa   : > { %p835_p8 = scmp.ge.s32.totalorder %s1064_s17, 2 }
   0xb   : > { %p1131_p7 = por %p112_p5, %p111_p4 }
   0xc   : > { %s1136_s24 = scalar_select %p70_p6, %s1052_s14, %s72_s20  }
   0xd   : > { %s1313_s23 = scalar_select %p1131_p7, 1, 0 }
   0xe   : > { %171 = sbr.rel (%p835_p8) target bundleno = 66 (0x42), region = 20 }
  0x15   : > { %174 = sbr.rel (!%p1124_p3) target bundleno = 41 (0x29), region = 24  ;;  %s176_s25 = sand.u32 (%p1124_p3), 1, %s1052_s14  }
  0x16   : > { %s883_s26 = sshll.u32 (%p1124_p3), %s1060_s16, 4  ;;  %s836_s27 = sshll.u32 (%p1124_p3), %s176_s25, 8 }
  0x17   : > { %s1146_s30 = scalar_lea.vmem (%p1124_p3), %s1308_s1, %s883_s26  ;;  %s1151_s4 = scalar_lea.vmem (%p1124_p3), [#allocation2], %s836_s27 }
  0x18   : > { %v196_v0 = vld [vmem:[%s1146_s30] sm:$0xff] (%p1124_p3)  ;;  %v198_v1 = vld [vmem:[%s1146_s30 + $0x8] sm:$0xff] (%p1124_p3) }
  0x19   : > { %v200_v2 = vld [vmem:[%s1146_s30 + $0x20] sm:$0xff] (%p1124_p3)  ;;  %197 = vst [vmem:[%s1151_s4] sm:$0xff] (%p1124_p3), %v196_v0  ;;  %199 = vst [vmem:[%s1151_s4 + $0x8] sm:$0xff] (%p1124_p3), %v198_v1  ;;  %v202_v3 = vld [vmem:[%s1146_s30 + $0x28] sm:$0xff] (%p1124_p3) }
  0x1a   : > { %201 = vst [vmem:[%s1151_s4 + $0x10] sm:$0xff] (%p1124_p3), %v200_v2  ;;  %v204_v4 = vld [vmem:[%s1146_s30 + $0x40] sm:$0xff] (%p1124_p3)  ;;  %v206_v5 = vld [vmem:[%s1146_s30 + $0x48] sm:$0xff] (%p1124_p3)  ;;  %203 = vst [vmem:[%s1151_s4 + $0x18] sm:$0xff] (%p1124_p3), %v202_v3 }
  0x1b   : > { %205 = vst [vmem:[%s1151_s4 + $0x20] sm:$0xff] (%p1124_p3), %v204_v4  ;;  %207 = vst [vmem:[%s1151_s4 + $0x28] sm:$0xff] (%p1124_p3), %v206_v5  ;;  %v208_v6 = vld [vmem:[%s1146_s30 + $0x60] sm:$0xff] (%p1124_p3)  ;;  %v210_v7 = vld [vmem:[%s1146_s30 + $0x68] sm:$0xff] (%p1124_p3) }
  0x1c   : > { %v212_v8 = vld [vmem:[%s1146_s30 + $0x80] sm:$0xff]  ;;  %209 = vst [vmem:[%s1151_s4 + $0x30] sm:$0xff] %v208_v6  ;;  %211 = vst [vmem:[%s1151_s4 + $0x38] sm:$0xff] %v210_v7  ;;  %v214_v9 = vld [vmem:[%s1146_s30 + $0x88] sm:$0xff] }
  0x1d   : > { %213 = vst [vmem:[%s1151_s4 + $0x40] sm:$0xff] %v212_v8  ;;  %v216_v10 = vld [vmem:[%s1146_s30 + $0xa0] sm:$0xff]  ;;  %v218_v11 = vld [vmem:[%s1146_s30 + $0xa8] sm:$0xff]  ;;  %215 = vst [vmem:[%s1151_s4 + $0x48] sm:$0xff] %v214_v9 }
  0x1e   : > { %217 = vst [vmem:[%s1151_s4 + $0x50] sm:$0xff] %v216_v10  ;;  %219 = vst [vmem:[%s1151_s4 + $0x58] sm:$0xff] %v218_v11  ;;  %v220_v12 = vld [vmem:[%s1146_s30 + $0xc0] sm:$0xff]  ;;  %v222_v13 = vld [vmem:[%s1146_s30 + $0xc8] sm:$0xff] }
  0x1f   : > { %v224_v14 = vld [vmem:[%s1146_s30 + $0xe0] sm:$0xff]  ;;  %221 = vst [vmem:[%s1151_s4 + $0x60] sm:$0xff] %v220_v12  ;;  %223 = vst [vmem:[%s1151_s4 + $0x68] sm:$0xff] %v222_v13  ;;  %v226_v15 = vld [vmem:[%s1146_s30 + $0xe8] sm:$0xff] }
  0x20   : > { %225 = vst [vmem:[%s1151_s4 + $0x70] sm:$0xff] %v224_v14  ;;  %v228_v16 = vld [vmem:[%s1146_s30 + $0x100] sm:$0xff]  ;;  %v230_v17 = vld [vmem:[%s1146_s30 + $0x108] sm:$0xff]  ;;  %227 = vst [vmem:[%s1151_s4 + $0x78] sm:$0xff] %v226_v15 }
  0x21   : > { %229 = vst [vmem:[%s1151_s4 + $0x80] sm:$0xff] %v228_v16  ;;  %231 = vst [vmem:[%s1151_s4 + $0x88] sm:$0xff] %v230_v17  ;;  %v232_v18 = vld [vmem:[%s1146_s30 + $0x120] sm:$0xff]  ;;  %v234_v19 = vld [vmem:[%s1146_s30 + $0x128] sm:$0xff] }
  0x22   : > { %v236_v20 = vld [vmem:[%s1146_s30 + $0x140] sm:$0xff]  ;;  %233 = vst [vmem:[%s1151_s4 + $0x90] sm:$0xff] %v232_v18  ;;  %235 = vst [vmem:[%s1151_s4 + $0x98] sm:$0xff] %v234_v19  ;;  %v238_v21 = vld [vmem:[%s1146_s30 + $0x148] sm:$0xff] }
  0x23   : > { %237 = vst [vmem:[%s1151_s4 + $0xa0] sm:$0xff] %v236_v20  ;;  %v240_v22 = vld [vmem:[%s1146_s30 + $0x160] sm:$0xff]  ;;  %v242_v23 = vld [vmem:[%s1146_s30 + $0x168] sm:$0xff]  ;;  %239 = vst [vmem:[%s1151_s4 + $0xa8] sm:$0xff] %v238_v21 }
  0x24   : > { %241 = vst [vmem:[%s1151_s4 + $0xb0] sm:$0xff] %v240_v22  ;;  %243 = vst [vmem:[%s1151_s4 + $0xb8] sm:$0xff] %v242_v23  ;;  %v244_v24 = vld [vmem:[%s1146_s30 + $0x180] sm:$0xff]  ;;  %v246_v25 = vld [vmem:[%s1146_s30 + $0x188] sm:$0xff] }
  0x25   : > { %v248_v26 = vld [vmem:[%s1146_s30 + $0x1a0] sm:$0xff]  ;;  %245 = vst [vmem:[%s1151_s4 + $0xc0] sm:$0xff] %v244_v24  ;;  %247 = vst [vmem:[%s1151_s4 + $0xc8] sm:$0xff] %v246_v25  ;;  %v250_v27 = vld [vmem:[%s1146_s30 + $0x1a8] sm:$0xff] }
  0x26   : > { %249 = vst [vmem:[%s1151_s4 + $0xd0] sm:$0xff] %v248_v26  ;;  %v252_v28 = vld [vmem:[%s1146_s30 + $0x1c0] sm:$0xff]  ;;  %v254_v29 = vld [vmem:[%s1146_s30 + $0x1c8] sm:$0xff]  ;;  %251 = vst [vmem:[%s1151_s4 + $0xd8] sm:$0xff] %v250_v27 }
  0x27   : > { %253 = vst [vmem:[%s1151_s4 + $0xe0] sm:$0xff] %v252_v28  ;;  %255 = vst [vmem:[%s1151_s4 + $0xe8] sm:$0xff] %v254_v29  ;;  %v256_v30 = vld [vmem:[%s1146_s30 + $0x1e0] sm:$0xff]  ;;  %v258_v31 = vld [vmem:[%s1146_s30 + $0x1e8] sm:$0xff] }
  0x28   : > { %257 = vst [vmem:[%s1151_s4 + $0xf0] sm:$0xff] %v256_v30  ;;  %259 = vst [vmem:[%s1151_s4 + $0xf8] sm:$0xff] %v258_v31 }
  0x29 PF: > { %s266_s5 = sand.u32 1, %s1052_s14   ;;  %s884_s6 = sshll.u32 %s1060_s16, 6 }
  0x2a   : > { %s839_s7 = sshll.u32 %s266_s5, 2  ;;  %s1219_s10 = scalar_lea.hbm %s1309_s2, %s884_s6 }
  0x2b   : > { %s270_s11 = scalar_lea.vmem [#allocation3], %s839_s7  ;;  %s267_s18 = scalar_lea.sflag [#allocation4], %s266_s5 }
  0x2c   : > { %s278_s12 = sshll.u32 %s270_s11, 4  ;;  %s986_s20 = scalar_lea.hbm %s1219_s10, 64  ;;  %s279_s12 = int_to_ptr.vmem [resolvable:$true] %s278_s12 }
  0x2d   : > { %p987_p9 = scmp.ne.s32.totalorder %s1219_s10, %s986_s20  ;;  %s990_s26 = scalar_lea.hbm %s1309_s2, 128 }
  0x2e   : > { %p991_p12 = scmp.lt.u32.totalorder %s1219_s10, %s1309_s2  ;;  %p992_p13 = scmp.lt.u32.totalorder %s990_s26, %s986_s20 }
  0x2f   : > { %p988_p10 = pnand %p987_p9, %p1124_p3  ;;  %p994_p1 = scmp.lt.u32.totalorder %s986_s20, %s1219_s10 }
  0x30   : > { %p993_p0 = por %p992_p13, %p991_p12 }
  0x31   : > { %p989_p11 = pneg %p988_p10 }
  0x32   : > { %p995_p2 = por %p994_p1, %p993_p0 }
  0x34   : > { %p996_p4 = pnand %p995_p2, %p989_p11 }
  0x36   : > { %999 = shalt.err (!%p996_p4)
}
  0x37   : > { %s1000_s29 = scalar_lea.vmem %s279_s12, 64  ;;  %s1066_s30 = smov [#allocation3]  }
  0x38   : > { %p1001_p5 = scmp.ne.s32.totalorder %s279_s12, %s1000_s29  ;;  %s1004_s4 = sshll.u32 %s1066_s30, 4  ;;  %s1005_s4 = int_to_ptr.vmem [resolvable:$false] %s1004_s4 }
  0x39   : > { %s1006_s5 = scalar_lea.vmem %s1005_s4, 128  ;;  %p1007_p9 = scmp.lt.s32.totalorder %s279_s12, %s1005_s4 }
  0x3a   : > { %p1002_p6 = pnand %p1001_p5, %p1124_p3  ;;  %p1008_p10 = scmp.lt.s32.totalorder %s1006_s5, %s1000_s29 }
  0x3c   : > { %p1003_p8 = pneg %p1002_p6  ;;  %p1009_p7 = por %p1008_p10, %p1007_p9 }
  0x3e   : > { %p1010_p12 = pnand %p1009_p7, %p1003_p8 }
  0x40   : > { %1013 = shalt.err (!%p1010_p12)
}
  0x41   : > { %887 = dma.hbm_to_vmem [thread:$0]  (%p1124_p3), %s1219_s10, 64, %s279_s12, %s267_s18  }
  0x42 PF: > { %p842_p11 = scmp.ge.s32.totalorder %s1064_s17, 1  ;;  %p283_p13 = scmp.lt.s32.totalorder %s1064_s17, 3 }
  0x44   : > { %p284_p0 = pnand %p842_p11, %p283_p13 }
  0x45   : > { %s290_s6 = sand.u32 (!%p284_p0), 1, %s1048_s13   ;;  %p1314_p7 = scmp.ne.s32.totalorder (!%p284_p0), %s1313_s23, 0 }
  0x46   : > { %287 = sbr.rel (%p284_p0) target bundleno = 330 (0x14a), region = 51  ;;  %s843_s7 = sshll.u32 (!%p284_p0), %s290_s6, 8 }
  0x47   : > { %s844_s8 = sshll.u32 (!%p284_p0), %s290_s6, 2  ;;  %s1241_s9 = scalar_lea.vmem (!%p284_p0), [#allocation2], %s843_s7 }
  0x48   : > { %s297_s11 = scalar_lea.sflag (!%p284_p0), [#allocation4], %s290_s6  ;;  %s1243_s20 = scalar_lea.vmem (!%p284_p0), [#allocation3], %s844_s8 }
  0x4d   : > { %1039 = dma.done.wait (%p1314_p7), %s297_s11, 64  }
  0x4e   : > { %1041 = vsyncadd (%p1314_p7), %s297_s11, 4294967232  ;;  %v1067_v32 = vmov 0   ;;  %v938_v33 = vld [vmem:[%s1241_s9 + $0x4] ss:$16 sps:$4 sm:$0xff]   ;;  %v940_v34 = vld [vmem:[%s1241_s9 + $0xc] ss:$16 sps:$4 sm:$0xff]   ;;  %v401_v2 = vlaneseq }
  0x4f   : > { %613 = vmatprep.mubr.bf16.mxu0 %v1067_v32  ;;  %654 = vmatprep.mubr.bf16.mxu1 %v1067_v32  ;;  %v942_v35 = vld [vmem:[%s1241_s9] ss:$16 sps:$4 sm:$0xff]   ;;  %v943_v36 = vld [vmem:[%s1241_s9 + $0x8] ss:$16 sps:$4 sm:$0xff]   ;;  %v944_v37 = vld [vmem:[%s1241_s9 + $0x24] ss:$16 sps:$4 sm:$0xff]  }
  0x50   : > { %581 = vmatprep.subr.bf16.mxu0 %v938_v33  ;;  %622 = vmatprep.subr.bf16.mxu1 %v940_v34  ;;  %v946_v38 = vld [vmem:[%s1241_s9 + $0x2c] ss:$16 sps:$4 sm:$0xff]   ;;  %v948_v39 = vld [vmem:[%s1241_s9 + $0x20] ss:$16 sps:$4 sm:$0xff]   ;;  %v949_v40 = vld [vmem:[%s1241_s9 + $0x28] ss:$16 sps:$4 sm:$0xff]  }
  0x51   : > { %582 = vmatpush1.bf16.msra.mxu0 %v942_v35  ;;  %623 = vmatpush1.bf16.msra.mxu1 %v943_v36  ;;  %v950_v41 = vld [vmem:[%s1241_s9 + $0x44] ss:$16 sps:$4 sm:$0xff]   ;;  %v952_v42 = vld [vmem:[%s1241_s9 + $0x4c] ss:$16 sps:$4 sm:$0xff]   ;;  %v954_v43 = vld [vmem:[%s1241_s9 + $0x40] ss:$16 sps:$4 sm:$0xff]  }
  0x52   : > { %583 = vmatprep.subr.bf16.mxu0 %v944_v37  ;;  %624 = vmatprep.subr.bf16.mxu1 %v946_v38  ;;  %v955_v44 = vld [vmem:[%s1241_s9 + $0x48] ss:$16 sps:$4 sm:$0xff]   ;;  %v956_v45 = vld [vmem:[%s1241_s9 + $0x64] ss:$16 sps:$4 sm:$0xff]   ;;  %v958_v46 = vld [vmem:[%s1241_s9 + $0x6c] ss:$16 sps:$4 sm:$0xff]  }
  0x53   : > { %v960_v47 = vld [vmem:[%s1241_s9 + $0x60] ss:$16 sps:$4 sm:$0xff]   ;;  %v961_v48 = vld [vmem:[%s1241_s9 + $0x68] ss:$16 sps:$4 sm:$0xff]   ;;  %v962_v49 = vld [vmem:[%s1241_s9 + $0x84] ss:$16 sps:$4 sm:$0xff]  }
  0x54   : > { %v964_v50 = vld [vmem:[%s1241_s9 + $0x8c] ss:$16 sps:$4 sm:$0xff]   ;;  %v966_v51 = vld [vmem:[%s1241_s9 + $0x80] ss:$16 sps:$4 sm:$0xff]   ;;  %v967_v52 = vld [vmem:[%s1241_s9 + $0x88] ss:$16 sps:$4 sm:$0xff]  }
  0x55   : > { %584 = vmatpush1.bf16.msra.mxu0 %v948_v39  ;;  %625 = vmatpush1.bf16.msra.mxu1 %v949_v40  ;;  %v968_v53 = vld [vmem:[%s1241_s9 + $0xa4] ss:$16 sps:$4 sm:$0xff]   ;;  %v970_v54 = vld [vmem:[%s1241_s9 + $0xac] ss:$16 sps:$4 sm:$0xff]   ;;  %v972_v55 = vld [vmem:[%s1241_s9 + $0xa0] ss:$16 sps:$4 sm:$0xff]  }
  0x56   : > { %585 = vmatprep.subr.bf16.mxu0 %v950_v41  ;;  %626 = vmatprep.subr.bf16.mxu1 %v952_v42  ;;  %v973_v56 = vld [vmem:[%s1241_s9 + $0xa8] ss:$16 sps:$4 sm:$0xff]   ;;  %v974_v57 = vld [vmem:[%s1241_s9 + $0xc4] ss:$16 sps:$4 sm:$0xff]   ;;  %v976_v58 = vld [vmem:[%s1241_s9 + $0xcc] ss:$16 sps:$4 sm:$0xff]  }
  0x57   : > { %v978_v59 = vld [vmem:[%s1241_s9 + $0xc0] ss:$16 sps:$4 sm:$0xff]   ;;  %v979_v60 = vld [vmem:[%s1241_s9 + $0xc8] ss:$16 sps:$4 sm:$0xff]   ;;  %v980_v61 = vld [vmem:[%s1241_s9 + $0xe4] ss:$16 sps:$4 sm:$0xff]  }
  0x58   : > { %v982_v62 = vld [vmem:[%s1241_s9 + $0xec] ss:$16 sps:$4 sm:$0xff]   ;;  %v984_v63 = vld [vmem:[%s1241_s9 + $0xe0] ss:$16 sps:$4 sm:$0xff]   ;;  %v985_v0 = vld [vmem:[%s1241_s9 + $0xe8] ss:$16 sps:$4 sm:$0xff]  }
  0x59   : > { %586 = vmatpush1.bf16.msra.mxu0 %v954_v43  ;;  %627 = vmatpush1.bf16.msra.mxu1 %v955_v44  ;;  %v366_v1 = vld [vmem:[%s1307_s0] sm:$0xf]  ;;  %v402_v3 = vshrl.u32 %v401_v2, 7  ;;  %s845_s10 = sshll.u32 %s1056_s15, 2 }
  0x5a   : > { %587 = vmatprep.subr.bf16.mxu0 %v956_v45  ;;  %628 = vmatprep.subr.bf16.mxu1 %v958_v46  ;;  %p356_p3 = scmp.lt.s32.totalorder %s845_s10, 7  ;;  %v399_v6 = vld [vmem:[%s1243_s20] sm:$0xf] }
  0x5b   : > { %v403_v4 = vsub.s32 0, %v402_v3  ;;  %v411_v5 = vsub.s32 2, %v402_v3  ;;  %v407_v7 = vsub.s32 1, %v402_v3  ;;  %v415_v8 = vsub.s32 3, %v402_v3 }
  0x5c   : > { %s1323_s10 = smov (!%p356_p3, %s845_s10), 7 }
  0x5d   : > { %588 = vmatpush1.bf16.msra.mxu0 %v960_v47  ;;  %629 = vmatpush1.bf16.msra.mxu1 %v961_v48  ;;  %v404_v9 = vrot.slane %v399_v6, %v403_v4  ;;  %v412_v10 = vrot.slane %v399_v6, %v411_v5  ;;  %v408_v11 = vrot.slane %v399_v6, %v407_v7  ;;  %s846_s12 = sshll.u32 %s1323_s10, 2 }
  0x5e   : > { %589 = vmatprep.subr.bf16.mxu0 %v962_v49  ;;  %630 = vmatprep.subr.bf16.mxu1 %v964_v50  ;;  %v416_v12 = vrot.slane %v399_v6, %v415_v8  ;;  %s363_s22 = scalar_lea.vmem %s1310_s3, %s846_s12 }
  0x61   : > { %590 = vmatpush1.bf16.msra.mxu0 %v966_v51  ;;  %631 = vmatpush1.bf16.msra.mxu1 %v967_v52 }
  0x62   : > { %591 = vmatprep.subr.bf16.mxu0 %v968_v53  ;;  %632 = vmatprep.subr.bf16.mxu1 %v970_v54 }
  0x65   : > { %592 = vmatpush1.bf16.msra.mxu0 %v972_v55  ;;  %633 = vmatpush1.bf16.msra.mxu1 %v973_v56 }
  0x66   : > { %593 = vmatprep.subr.bf16.mxu0 %v974_v57  ;;  %634 = vmatprep.subr.bf16.mxu1 %v976_v58 }
  0x69   : > { %594 = vmatpush1.bf16.msra.mxu0 %v978_v59  ;;  %635 = vmatpush1.bf16.msra.mxu1 %v979_v60 }
  0x6a   : > { %595 = vmatprep.subr.bf16.mxu0 %v980_v61  ;;  %636 = vmatprep.subr.bf16.mxu1 %v982_v62 }
  0x6d   : > { %596 = vmatpush1.bf16.msra.mxu0 %v984_v63  ;;  %637 = vmatpush1.bf16.msra.mxu1 %v985_v0 }
  0x70   : > { %614 = vmatmul.mubr.bf16.vlgmr.msra.gmra.mrb[0].mxu0 %v366_v1  ;;  %655 = vmatmul.mubr.bf16.vlgmr.msra.gmra.mrb[0].mxu1 %v366_v1 }
 0x143   : > { %v615_v13 = vpop.f32.mrb[0].mxu0  ;;  %v656_v14 = vpop.f32.mrb[0].mxu1 }
 0x144   : > { %v616_v15 = vadd.f32 %v615_v13, %v404_v9  ;;  %v657_v16 = vadd.f32 %v656_v14, %v412_v10  ;;  %v617_v17 = vpop.f32.mrb[1].mxu0  ;;  %v658_v18 = vpop.f32.mrb[1].mxu1 }
 0x145   : > { %v618_v19 = vadd.f32 %v617_v17, %v408_v11  ;;  %v659_v20 = vadd.f32 %v658_v18, %v416_v12  ;;  %v619_v21 = vpop.f32.mrb[2].mxu0  ;;  %v660_v22 = vpop.f32.mrb[2].mxu1 }
 0x146   : > { %v620_v23 = vpop.f32.mrb[3].mxu0  ;;  %v661_v24 = vpop.f32.mrb[3].mxu1 }
 0x147   : > { %v885_v25 = vpack.c.bf16 %v618_v19, %v616_v15  ;;  %v886_v26 = vpack.c.bf16 %v659_v20, %v657_v16 }
 0x149   : > { %679 = vst [vmem:[%s363_s22] sm:$0xff] %v885_v25  ;;  %680 = vst [vmem:[%s363_s22 + $0x8] sm:$0xff] %v886_v26 }
 0x14a PF: > { %s16_s17 = sadd.s32 1, %s1064_s17   ;;  %s1315_s12 = smov %s1048_s13 }
 0x14b   : > { %p13_p1 = scmp.ge.s32.totalorder %s16_s17, 4   ;;  %s1316_s13 = smov %s1052_s14 }
 0x14c   : > { %s1317_s14 = smov %s1136_s24  ;;  %s1318_s15 = smov %s1060_s16 }
 0x14d   : > { %s1319_s16 = smov %s1321_s19  ;;  %15 = sbr.rel (!%p13_p1) target bundleno = 4 (0x4), region = 106 }
 0x154   :  { %719 = vsyncpa [#allocation4], 1 }
 0x155   :  { %721 = vsyncpa [#allocation4 + $0x1], 1 }

// kernel: generator_forward.10
= control target key start
LH: loop header
LB: loop body
LE: loop exit
PB: predicated region body
PF: predicated region fallthrough
CT: control target
= control target key end

     0   :  { %s632_s12 = smov 0   ;;  %s711_s0 = inlined_call_operand.vmem [shape: bf16[2,2048], index: 0, kind: input, shape index: {}]   ;;  %s712_s1 = inlined_call_operand.vmem [shape: f32[1,2048], index: 1, kind: input, shape index: {}]   ;;  %s713_s2 = inlined_call_operand.vmem [shape: f32[1,2048], index: 2, kind: input, shape index: {}]   ;;  %s714_s3 = inlined_call_operand.vmem [shape: bf16[2,2048], index: 3, kind: output, shape index: {}]  }
   0x1 LB: > { %s570_s13 = sadd.s32 4294967295, %s608_s12   ;;  %p574_p0 = scmp.ge.s32.totalorder %s608_s12, 1  ;;  %s608_s12 = sphi %s632_s12, %s13_s12  }
   0x2   : > { %p157_p1 = scmp.lt.s32.totalorder %s608_s12, 5 }
   0x4   : > { %p158_p2 = pnand %p574_p0, %p157_p1 }
   0x5   : > { %s575_s14 = sshll.u32 (!%p158_p2), %s570_s13, 2  ;;  %v214_v0 = vlaneseq (!%p158_p2)  ;;  %v610_v1 = vmov (!%p158_p2), 1983009808   ;;  %vm231_vm0 = vcmask (!%p158_p2), 1041408  }
   0x6   : > { %161 = sbr.rel (%p158_p2) target bundleno = 110 (0x6e), region = 32  ;;  %p188_p3 = scmp.lt.s32.totalorder (!%p158_p2), %s575_s14, 15  ;;  %v212_v2 = vunpack.c.l.s4 (!%p158_p2), %v610_v1 }
   0x7   : > { %v640_v3 = vshrl.u32 (!%p158_p2), %v214_v0, 7 }
   0x8   : > { %v213_v4 = vunpack.c.0.s8 (!%p158_p2), %v212_v2 }
   0x9   : > { %v378_v5 = vsub.s32 (!%p158_p2), 0, %v640_v3  ;;  %v382_v6 = vsub.s32 (!%p158_p2), 1, %v640_v3  ;;  %v386_v7 = vsub.s32 (!%p158_p2), 2, %v640_v3  ;;  %v390_v8 = vsub.s32 (!%p158_p2), 3, %v640_v3 }
   0xa   : > { %v657_v9 = vsub.s32 (!%p158_p2), %v213_v4, %v640_v3 }
   0xd   : > { %s716_s14 = smov (!%p188_p3, %s575_s14), 15 }
   0xe   : > { %s190_s17 = scalar_lea.vmem %s711_s0, %s716_s14  ;;  %s195_s20 = scalar_lea.vmem %s712_s1, %s716_s14 }
   0xf   : > { %s200_s23 = scalar_lea.vmem %s713_s2, %s716_s14  ;;  %v207_v10 = vld [vmem:[%s190_s17] sm:$0xf]  ;;  %s205_s26 = scalar_lea.vmem %s714_s3, %s716_s14 }
  0x10   : > { %v374_v11 = vld [vmem:[%s195_s20] sm:$0xf]  ;;  %v208_v12 = vunpack.c.l.bf16 %v207_v10 }
  0x11   : > { %v379_v13 = vrot.slane %v374_v11, %v378_v5  ;;  %v383_v14 = vrot.slane %v374_v11, %v382_v6  ;;  %v387_v15 = vrot.slane %v374_v11, %v386_v7  ;;  %v411_v16 = vld [vmem:[%s200_s23] sm:$0xf]  ;;  %v391_v17 = vrot.slane %v374_v11, %v390_v8 }
  0x12   : > { %v416_v18 = vrot.slane %v411_v16, %v378_v5  ;;  %v420_v19 = vrot.slane %v411_v16, %v382_v6  ;;  %v424_v20 = vrot.slane %v411_v16, %v386_v7  ;;  %v210_v21 = vcombine.high %v208_v12, %v208_v12 }
  0x13   : > { %v217_v22 = vrot.slane %v208_v12, %v657_v9  ;;  %v392_v23 = vcombine.low %v379_v13, %v383_v14  ;;  %v428_v24 = vrot.slane %v411_v16, %v390_v8  ;;  %v393_v25 = vcombine.low %v387_v15, %v391_v17 }
  0x14   : > { %v429_v26 = vcombine.low %v416_v18, %v420_v19  ;;  %v224_v27 = vrot.slane %v210_v21, %v657_v9 }
  0x15   : > { %v225_v28 = vcombine.high %v217_v22, %v217_v22  ;;  %v232_v29 = vsel %vm231_vm0, %v217_v22, 0.0  ;;  %v667_v30 = vrot.slane %v392_v23, %v657_v9  ;;  %v670_v32 = vrot.slane %v393_v25, %v657_v9 }
  0x16   : > { %v233_v31 = vrot.slane %v232_v29, 4  ;;  %v430_v33 = vcombine.low %v424_v20, %v428_v24  ;;  %v226_v34 = vcombine.high %v224_v27, %v224_v27  ;;  %v246_v36 = vsel %vm231_vm0, %v224_v27, 0.0 }
  0x17   : > { %v239_v35 = vsel %vm231_vm0, %v225_v28, 0.0  ;;  %v675_v37 = vrot.slane %v429_v26, %v657_v9  ;;  %v247_v40 = vrot.slane %v246_v36, 4  ;;  %v408_v41 = vcombine.low %v667_v30, %v670_v32 }
  0x18   : > { %v234_v38 = vadd.f32 %v233_v31, %v232_v29  ;;  %v240_v39 = vrot.slane %v239_v35, 4  ;;  %v253_v42 = vsel %vm231_vm0, %v226_v34, 0.0  ;;  %v681_v43 = vrot.slane %v430_v33, %v657_v9 }
  0x19   : > { %v248_v46 = vadd.f32 %v247_v40, %v246_v36  ;;  %v254_v47 = vrot.slane %v253_v42, 4 }
  0x1a   : > { %v235_v44 = vrot.slane %v234_v38, 2  ;;  %v241_v45 = vadd.f32 %v240_v39, %v239_v35  ;;  %v445_v48 = vcombine.low %v675_v37, %v681_v43 }
  0x1b   : > { %v249_v51 = vrot.slane %v248_v46, 2  ;;  %v255_v52 = vadd.f32 %v254_v47, %v253_v42 }
  0x1c   : > { %v236_v49 = vadd.f32 %v235_v44, %v234_v38  ;;  %v242_v50 = vrot.slane %v241_v45, 2 }
  0x1d   : > { %v250_v55 = vadd.f32 %v249_v51, %v248_v46  ;;  %v256_v56 = vrot.slane %v255_v52, 2 }
  0x1e   : > { %v237_v53 = vrot.slane %v236_v49, 1  ;;  %v243_v54 = vadd.f32 %v242_v50, %v241_v45 }
  0x1f   : > { %v251_v59 = vrot.slane %v250_v55, 1  ;;  %v257_v60 = vadd.f32 %v256_v56, %v255_v52 }
  0x20   : > { %v238_v57 = vadd.f32 %v237_v53, %v236_v49  ;;  %v244_v58 = vrot.slane %v243_v54, 1 }
  0x21   : > { %v252_v62 = vadd.f32 %v251_v59, %v250_v55  ;;  %v258_v63 = vrot.slane %v257_v60, 1 }
  0x22   : > { %v245_v61 = vadd.f32 %v244_v58, %v243_v54  ;;  %v261_v0 = vmul.f32 0.5, %v238_v57 }
  0x23   : > { %v259_v1 = vadd.f32 %v258_v63, %v257_v60  ;;  %v263_v4 = vmul.f32 0.5, %v252_v62 }
  0x24   : > { %v262_v2 = vmul.f32 0.5, %v245_v61 }
  0x25   : > { %v264_v5 = vmul.f32 0.5, %v259_v1 }
  0x26   : > { %v269_v6 = vcombine.low %v261_v0, %v262_v2 }
  0x27   : > { %v270_v7 = vcombine.low %v263_v4, %v264_v5 }
  0x28   : > { %v277_v8 = vrot.slane %v269_v6, %v657_v9 }
  0x29   : > { %v284_v10 = vrot.slane %v270_v7, %v657_v9 }
  0x2b   : > { %v285_v11 = vcombine.low %v277_v8, %v284_v10  ;;  %v611_v10 = vmov 1966171168  }
  0x2d   : > { %v287_v13 = vsub.f32 %v208_v12, %v285_v11  ;;  %v482_v11 = vunpack.c.l.s4 %v611_v10 }
  0x2f   : > { %v288_v14 = vmul.f32 %v287_v13, %v287_v13 }
  0x31   : > { %v290_v15 = vcombine.high %v288_v14, %v288_v14  ;;  %v297_v16 = vrot.slane %v288_v14, %v657_v9 }
  0x33   : > { %v304_v17 = vrot.slane %v290_v15, %v657_v9  ;;  %v305_v18 = vcombine.high %v297_v16, %v297_v16  ;;  %v311_v19 = vsel %vm231_vm0, %v297_v16, 0.0  ;;  %v483_v16 = vunpack.c.0.s8 %v482_v11 }
  0x34   : > { %v312_v20 = vrot.slane %v311_v19, 4 }
  0x35   : > { %v306_v21 = vcombine.high %v304_v17, %v304_v17  ;;  %v318_v22 = vsel %vm231_vm0, %v305_v18, 0.0  ;;  %v325_v23 = vsel %vm231_vm0, %v304_v17, 0.0 }
  0x36   : > { %v313_v24 = vadd.f32 %v312_v20, %v311_v19  ;;  %v319_v25 = vrot.slane %v318_v22, 4  ;;  %v326_v26 = vrot.slane %v325_v23, 4 }
  0x37   : > { %v332_v12 = vsel %vm231_vm0, %v306_v21, 0.0 }
  0x38   : > { %v314_v27 = vrot.slane %v313_v24, 2  ;;  %v320_v28 = vadd.f32 %v319_v25, %v318_v22  ;;  %v327_v29 = vadd.f32 %v326_v26, %v325_v23  ;;  %v333_v31 = vrot.slane %v332_v12, 4 }
  0x3a   : > { %v315_v33 = vadd.f32 %v314_v27, %v313_v24  ;;  %v321_v34 = vrot.slane %v320_v28, 2  ;;  %v328_v35 = vrot.slane %v327_v29, 2  ;;  %v334_v36 = vadd.f32 %v333_v31, %v332_v12 }
  0x3c   : > { %v316_v38 = vrot.slane %v315_v33, 1  ;;  %v322_v39 = vadd.f32 %v321_v34, %v320_v28  ;;  %v329_v40 = vadd.f32 %v328_v35, %v327_v29  ;;  %v335_v42 = vrot.slane %v334_v36, 2 }
  0x3e   : > { %v317_v44 = vadd.f32 %v316_v38, %v315_v33  ;;  %v323_v45 = vrot.slane %v322_v39, 1  ;;  %v330_v46 = vrot.slane %v329_v40, 1  ;;  %v336_v47 = vadd.f32 %v335_v42, %v334_v36 }
  0x40   : > { %v324_v49 = vadd.f32 %v323_v45, %v322_v39  ;;  %v331_v50 = vadd.f32 %v330_v46, %v329_v40  ;;  %v337_v51 = vrot.slane %v336_v47, 1  ;;  %v339_v52 = vmul.f32 0.5, %v317_v44 }
  0x42   : > { %v338_v53 = vadd.f32 %v337_v51, %v336_v47  ;;  %v340_v54 = vmul.f32 0.5, %v324_v49  ;;  %v341_v55 = vmul.f32 0.5, %v331_v50  ;;  %v343_v56 = vadd.f32 1e-05, %v339_v52 }
  0x44   : > { %v342_v57 = vmul.f32 0.5, %v338_v53  ;;  %v344_v58 = vadd.f32 1e-05, %v340_v54  ;;  %v345_v59 = vadd.f32 1e-05, %v341_v55  ;;  %594 = vrsqrt.f32 %v343_v56 }
  0x46   : > { %v346_v60 = vadd.f32 1e-05, %v342_v57  ;;  %596 = vrsqrt.f32 %v344_v58 }
  0x47   : > { %598 = vrsqrt.f32 %v345_v59 }
  0x48   : > { %600 = vrsqrt.f32 %v346_v60 }
  0x4e   : > { %v595_v61 = vpop.eup %594 }
  0x50   : > { %v597_v62 = vpop.eup %596 }
  0x51   : > { %v599_v63 = vpop.eup %598  ;;  %v355_v0 = vcombine.low %v595_v61, %v597_v62 }
  0x52   : > { %v601_v1 = vpop.eup %600 }
  0x53   : > { %v356_v2 = vcombine.low %v599_v63, %v601_v1  ;;  %v363_v4 = vrot.slane %v355_v0, %v657_v9 }
  0x55   : > { %v370_v5 = vrot.slane %v356_v2, %v657_v9 }
  0x57   : > { %v371_v6 = vcombine.low %v363_v4, %v370_v5 }
  0x59   : > { %v373_v7 = vmul.f32 %v371_v6, %v287_v13  ;;  %v486_v13 = vsub.s32 %v483_v16, %v640_v3 }
  0x5b   : > { %v410_v8 = vmul.f32 %v408_v41, %v373_v7 }
  0x5d   : > { %v447_v14 = vadd.f32 %v445_v48, %v410_v8 }
  0x5f   : > { %v448_v15 = vmax.f32 %v447_v14, 0.0 }
  0x61   : > { %v450_v17 = vcombine.high %v448_v15, %v448_v15  ;;  %v457_v18 = vrot.slane %v448_v15, %v657_v9 }
  0x63   : > { %v464_v19 = vrot.slane %v450_v17, %v657_v9  ;;  %v465_v20 = vcombine.high %v457_v18, %v457_v18 }
  0x65   : > { %v466_v21 = vcombine.high %v464_v19, %v464_v19  ;;  %v579_v30 = vpack.c.bf16 %v465_v20, %v457_v18 }
  0x67   : > { %v580_v32 = vpack.c.bf16 %v466_v21, %v464_v19  ;;  %v487_v41 = vrot.slane %v579_v30, %v486_v13 }
  0x69   : > { %v494_v22 = vrot.slane %v580_v32, %v486_v13 }
  0x6b   : > { %v495_v37 = vcombine.low %v487_v41, %v494_v22 }
  0x6d   : > { %581 = vst.sshfl [vmem:[%s205_s26] sm:$0x55 pattern:$0x73625140] %v495_v37 }
  0x6e PF: > { %s13_s12 = sadd.s32 1, %s608_s12  }
  0x6f   : > { %p10_p4 = scmp.ge.s32.totalorder %s13_s12, 6  }
  0x71   :  { %12 = sbr.rel (!%p10_p4) target bundleno = 1 (0x1), region = 68 }

// kernel: generator_forward.9
= control target key start
LH: loop header
LB: loop body
LE: loop exit
PB: predicated region body
PF: predicated region fallthrough
CT: control target
= control target key end

     0   :  { %s3681_s12 = smov 0   ;;  %s3683_s13 = smov 0   ;;  %s4559_s0 = inlined_call_operand.vmem [shape: bf16[1,8,1024], index: 0, kind: input, shape index: {}]   ;;  %s4560_s1 = inlined_call_operand.vmem [shape: bf16[1,1024,2048], index: 1, kind: input, shape index: {}]   ;;  %s4561_s2 = inlined_call_operand.vmem [shape: f32[1,2048], index: 2, kind: input, shape index: {}]   ;;  %s4562_s3 = inlined_call_operand.vmem [shape: bf16[1,8,2048], index: 3, kind: output, shape index: {}]  }
   0x1   :  { %s3685_s14 = smov 0   ;;  %s3687_s15 = smov 0  }
   0x2   :  { %s3689_s16 = smov 0  }
   0x3 LB: > { %s25_s17 = sadd.s32 1, %s3655_s15  ;;  %p76_p1 = scmp.ne.s32.totalorder %s3647_s13, %s3643_s12  ;;  %s3659_s16 = sphi %s3689_s16, %s13_s16   ;;  %s3655_s15 = sphi %s3687_s15, %s4566_s15   ;;  %s3651_s14 = sphi %s3685_s14, %s4565_s14   ;;  %s3647_s13 = sphi %s3683_s13, %s4564_s13   ;;  %s3643_s12 = sphi %s3681_s12, %s4563_s12  }
   0x4   : > { %p26_p0 = scmp.ge.s32.totalorder %s25_s17, 4  ;;  %p77_p2 = scmp.eq.s32.totalorder %s3659_s16, 0 }
   0x5   : > { %s69_s19 = sadd.s32 1, %s3647_s13  ;;  %p2881_p5 = scmp.ge.s32.totalorder %s3659_s16, 4 }
   0x6   : > { %s4568_s17 = smov (%p26_p0, %s25_s17), 0  ;;  %p78_p3 = por %p77_p2, %p76_p1 }
   0x7   : > { %s65_s18 = ssub.s32 %s3655_s15, %s4568_s17  ;;  %170 = sbr.rel (%p2881_p5) target bundleno = 146 (0x92), region = 20 }
   0x8   : > { %p67_p4 = scmp.eq.s32.totalorder %s65_s18, 0 }
   0xa   : > { %s3716_s20 = scalar_select %p67_p4, %s3647_s13, %s69_s19  }
   0xe   : > { %173 = sbr.rel (!%p78_p3) target bundleno = 146 (0x92), region = 24  ;;  %s175_s21 = sand.u32 (%p78_p3), 1, %s3647_s13  }
   0xf   : > { %s3158_s22 = sshll.u32 (%p78_p3), %s3655_s15, 4  ;;  %s2882_s23 = sshll.u32 (%p78_p3), %s175_s21, 11 }
  0x10   : > { %s3724_s26 = scalar_lea.vmem (%p78_p3), %s4560_s1, %s3158_s22  ;;  %s3729_s27 = scalar_lea.vmem (%p78_p3), [#allocation2], %s2882_s23 }
  0x11   : > { %v195_v0 = vld [vmem:[%s3724_s26] sm:$0xff] (%p78_p3)  ;;  %v197_v1 = vld [vmem:[%s3724_s26 + $0x8] sm:$0xff] (%p78_p3) }
  0x12   : > { %v199_v2 = vld [vmem:[%s3724_s26 + $0x40] sm:$0xff] (%p78_p3)  ;;  %196 = vst [vmem:[%s3729_s27] sm:$0xff] (%p78_p3), %v195_v0  ;;  %198 = vst [vmem:[%s3729_s27 + $0x8] sm:$0xff] (%p78_p3), %v197_v1  ;;  %v201_v3 = vld [vmem:[%s3724_s26 + $0x48] sm:$0xff] (%p78_p3) }
  0x13   : > { %200 = vst [vmem:[%s3729_s27 + $0x10] sm:$0xff] (%p78_p3), %v199_v2  ;;  %v203_v4 = vld [vmem:[%s3724_s26 + $0x80] sm:$0xff] (%p78_p3)  ;;  %v205_v5 = vld [vmem:[%s3724_s26 + $0x88] sm:$0xff] (%p78_p3)  ;;  %202 = vst [vmem:[%s3729_s27 + $0x18] sm:$0xff] (%p78_p3), %v201_v3 }
  0x14   : > { %204 = vst [vmem:[%s3729_s27 + $0x20] sm:$0xff] (%p78_p3), %v203_v4  ;;  %206 = vst [vmem:[%s3729_s27 + $0x28] sm:$0xff] (%p78_p3), %v205_v5  ;;  %v207_v6 = vld [vmem:[%s3724_s26 + $0xc0] sm:$0xff] (%p78_p3)  ;;  %v209_v7 = vld [vmem:[%s3724_s26 + $0xc8] sm:$0xff] (%p78_p3) }
  0x15   : > { %v211_v8 = vld [vmem:[%s3724_s26 + $0x100] sm:$0xff]  ;;  %208 = vst [vmem:[%s3729_s27 + $0x30] sm:$0xff] %v207_v6  ;;  %210 = vst [vmem:[%s3729_s27 + $0x38] sm:$0xff] %v209_v7  ;;  %v213_v9 = vld [vmem:[%s3724_s26 + $0x108] sm:$0xff] }
  0x16   : > { %212 = vst [vmem:[%s3729_s27 + $0x40] sm:$0xff] %v211_v8  ;;  %v215_v10 = vld [vmem:[%s3724_s26 + $0x140] sm:$0xff]  ;;  %v217_v11 = vld [vmem:[%s3724_s26 + $0x148] sm:$0xff]  ;;  %214 = vst [vmem:[%s3729_s27 + $0x48] sm:$0xff] %v213_v9 }
  0x17   : > { %216 = vst [vmem:[%s3729_s27 + $0x50] sm:$0xff] %v215_v10  ;;  %218 = vst [vmem:[%s3729_s27 + $0x58] sm:$0xff] %v217_v11  ;;  %v219_v12 = vld [vmem:[%s3724_s26 + $0x180] sm:$0xff]  ;;  %v221_v13 = vld [vmem:[%s3724_s26 + $0x188] sm:$0xff] }
  0x18   : > { %v223_v14 = vld [vmem:[%s3724_s26 + $0x1c0] sm:$0xff]  ;;  %220 = vst [vmem:[%s3729_s27 + $0x60] sm:$0xff] %v219_v12  ;;  %222 = vst [vmem:[%s3729_s27 + $0x68] sm:$0xff] %v221_v13  ;;  %v225_v15 = vld [vmem:[%s3724_s26 + $0x1c8] sm:$0xff] }
  0x19   : > { %224 = vst [vmem:[%s3729_s27 + $0x70] sm:$0xff] %v223_v14  ;;  %v227_v16 = vld [vmem:[%s3724_s26 + $0x200] sm:$0xff]  ;;  %v229_v17 = vld [vmem:[%s3724_s26 + $0x208] sm:$0xff]  ;;  %226 = vst [vmem:[%s3729_s27 + $0x78] sm:$0xff] %v225_v15 }
  0x1a   : > { %228 = vst [vmem:[%s3729_s27 + $0x80] sm:$0xff] %v227_v16  ;;  %230 = vst [vmem:[%s3729_s27 + $0x88] sm:$0xff] %v229_v17  ;;  %v231_v18 = vld [vmem:[%s3724_s26 + $0x240] sm:$0xff]  ;;  %v233_v19 = vld [vmem:[%s3724_s26 + $0x248] sm:$0xff] }
  0x1b   : > { %v235_v20 = vld [vmem:[%s3724_s26 + $0x280] sm:$0xff]  ;;  %232 = vst [vmem:[%s3729_s27 + $0x90] sm:$0xff] %v231_v18  ;;  %234 = vst [vmem:[%s3729_s27 + $0x98] sm:$0xff] %v233_v19  ;;  %v237_v21 = vld [vmem:[%s3724_s26 + $0x288] sm:$0xff] }
  0x1c   : > { %236 = vst [vmem:[%s3729_s27 + $0xa0] sm:$0xff] %v235_v20  ;;  %v239_v22 = vld [vmem:[%s3724_s26 + $0x2c0] sm:$0xff]  ;;  %v241_v23 = vld [vmem:[%s3724_s26 + $0x2c8] sm:$0xff]  ;;  %238 = vst [vmem:[%s3729_s27 + $0xa8] sm:$0xff] %v237_v21 }
  0x1d   : > { %240 = vst [vmem:[%s3729_s27 + $0xb0] sm:$0xff] %v239_v22  ;;  %242 = vst [vmem:[%s3729_s27 + $0xb8] sm:$0xff] %v241_v23  ;;  %v243_v24 = vld [vmem:[%s3724_s26 + $0x300] sm:$0xff]  ;;  %v245_v25 = vld [vmem:[%s3724_s26 + $0x308] sm:$0xff] }
  0x1e   : > { %v247_v26 = vld [vmem:[%s3724_s26 + $0x340] sm:$0xff]  ;;  %244 = vst [vmem:[%s3729_s27 + $0xc0] sm:$0xff] %v243_v24  ;;  %246 = vst [vmem:[%s3729_s27 + $0xc8] sm:$0xff] %v245_v25  ;;  %v249_v27 = vld [vmem:[%s3724_s26 + $0x348] sm:$0xff] }
  0x1f   : > { %248 = vst [vmem:[%s3729_s27 + $0xd0] sm:$0xff] %v247_v26  ;;  %v251_v28 = vld [vmem:[%s3724_s26 + $0x380] sm:$0xff]  ;;  %v253_v29 = vld [vmem:[%s3724_s26 + $0x388] sm:$0xff]  ;;  %250 = vst [vmem:[%s3729_s27 + $0xd8] sm:$0xff] %v249_v27 }
  0x20   : > { %252 = vst [vmem:[%s3729_s27 + $0xe0] sm:$0xff] %v251_v28  ;;  %254 = vst [vmem:[%s3729_s27 + $0xe8] sm:$0xff] %v253_v29  ;;  %v255_v30 = vld [vmem:[%s3724_s26 + $0x3c0] sm:$0xff]  ;;  %v257_v31 = vld [vmem:[%s3724_s26 + $0x3c8] sm:$0xff] }
  0x21   : > { %v259_v32 = vld [vmem:[%s3724_s26 + $0x400] sm:$0xff]  ;;  %256 = vst [vmem:[%s3729_s27 + $0xf0] sm:$0xff] %v255_v30  ;;  %258 = vst [vmem:[%s3729_s27 + $0xf8] sm:$0xff] %v257_v31  ;;  %v261_v33 = vld [vmem:[%s3724_s26 + $0x408] sm:$0xff] }
  0x22   : > { %260 = vst [vmem:[%s3729_s27 + $0x100] sm:$0xff] %v259_v32  ;;  %v263_v34 = vld [vmem:[%s3724_s26 + $0x440] sm:$0xff]  ;;  %v265_v35 = vld [vmem:[%s3724_s26 + $0x448] sm:$0xff]  ;;  %262 = vst [vmem:[%s3729_s27 + $0x108] sm:$0xff] %v261_v33 }
  0x23   : > { %264 = vst [vmem:[%s3729_s27 + $0x110] sm:$0xff] %v263_v34  ;;  %266 = vst [vmem:[%s3729_s27 + $0x118] sm:$0xff] %v265_v35  ;;  %v267_v36 = vld [vmem:[%s3724_s26 + $0x480] sm:$0xff]  ;;  %v269_v37 = vld [vmem:[%s3724_s26 + $0x488] sm:$0xff] }
  0x24   : > { %v271_v38 = vld [vmem:[%s3724_s26 + $0x4c0] sm:$0xff]  ;;  %268 = vst [vmem:[%s3729_s27 + $0x120] sm:$0xff] %v267_v36  ;;  %270 = vst [vmem:[%s3729_s27 + $0x128] sm:$0xff] %v269_v37  ;;  %v273_v39 = vld [vmem:[%s3724_s26 + $0x4c8] sm:$0xff] }
  0x25   : > { %272 = vst [vmem:[%s3729_s27 + $0x130] sm:$0xff] %v271_v38  ;;  %v275_v40 = vld [vmem:[%s3724_s26 + $0x500] sm:$0xff]  ;;  %v277_v41 = vld [vmem:[%s3724_s26 + $0x508] sm:$0xff]  ;;  %274 = vst [vmem:[%s3729_s27 + $0x138] sm:$0xff] %v273_v39 }
  0x26   : > { %276 = vst [vmem:[%s3729_s27 + $0x140] sm:$0xff] %v275_v40  ;;  %278 = vst [vmem:[%s3729_s27 + $0x148] sm:$0xff] %v277_v41  ;;  %v279_v42 = vld [vmem:[%s3724_s26 + $0x540] sm:$0xff]  ;;  %v281_v43 = vld [vmem:[%s3724_s26 + $0x548] sm:$0xff] }
  0x27   : > { %v283_v44 = vld [vmem:[%s3724_s26 + $0x580] sm:$0xff]  ;;  %280 = vst [vmem:[%s3729_s27 + $0x150] sm:$0xff] %v279_v42  ;;  %282 = vst [vmem:[%s3729_s27 + $0x158] sm:$0xff] %v281_v43  ;;  %v285_v45 = vld [vmem:[%s3724_s26 + $0x588] sm:$0xff] }
  0x28   : > { %284 = vst [vmem:[%s3729_s27 + $0x160] sm:$0xff] %v283_v44  ;;  %v287_v46 = vld [vmem:[%s3724_s26 + $0x5c0] sm:$0xff]  ;;  %v289_v47 = vld [vmem:[%s3724_s26 + $0x5c8] sm:$0xff]  ;;  %286 = vst [vmem:[%s3729_s27 + $0x168] sm:$0xff] %v285_v45 }
  0x29   : > { %288 = vst [vmem:[%s3729_s27 + $0x170] sm:$0xff] %v287_v46  ;;  %290 = vst [vmem:[%s3729_s27 + $0x178] sm:$0xff] %v289_v47  ;;  %v291_v48 = vld [vmem:[%s3724_s26 + $0x600] sm:$0xff]  ;;  %v293_v49 = vld [vmem:[%s3724_s26 + $0x608] sm:$0xff] }
  0x2a   : > { %v295_v50 = vld [vmem:[%s3724_s26 + $0x640] sm:$0xff]  ;;  %292 = vst [vmem:[%s3729_s27 + $0x180] sm:$0xff] %v291_v48  ;;  %294 = vst [vmem:[%s3729_s27 + $0x188] sm:$0xff] %v293_v49  ;;  %v297_v51 = vld [vmem:[%s3724_s26 + $0x648] sm:$0xff] }
  0x2b   : > { %296 = vst [vmem:[%s3729_s27 + $0x190] sm:$0xff] %v295_v50  ;;  %v299_v52 = vld [vmem:[%s3724_s26 + $0x680] sm:$0xff]  ;;  %v301_v53 = vld [vmem:[%s3724_s26 + $0x688] sm:$0xff]  ;;  %298 = vst [vmem:[%s3729_s27 + $0x198] sm:$0xff] %v297_v51 }
  0x2c   : > { %300 = vst [vmem:[%s3729_s27 + $0x1a0] sm:$0xff] %v299_v52  ;;  %302 = vst [vmem:[%s3729_s27 + $0x1a8] sm:$0xff] %v301_v53  ;;  %v303_v54 = vld [vmem:[%s3724_s26 + $0x6c0] sm:$0xff]  ;;  %v305_v55 = vld [vmem:[%s3724_s26 + $0x6c8] sm:$0xff] }
  0x2d   : > { %v307_v56 = vld [vmem:[%s3724_s26 + $0x700] sm:$0xff]  ;;  %304 = vst [vmem:[%s3729_s27 + $0x1b0] sm:$0xff] %v303_v54  ;;  %306 = vst [vmem:[%s3729_s27 + $0x1b8] sm:$0xff] %v305_v55  ;;  %v309_v57 = vld [vmem:[%s3724_s26 + $0x708] sm:$0xff] }
  0x2e   : > { %308 = vst [vmem:[%s3729_s27 + $0x1c0] sm:$0xff] %v307_v56  ;;  %v311_v58 = vld [vmem:[%s3724_s26 + $0x740] sm:$0xff]  ;;  %v313_v59 = vld [vmem:[%s3724_s26 + $0x748] sm:$0xff]  ;;  %310 = vst [vmem:[%s3729_s27 + $0x1c8] sm:$0xff] %v309_v57 }
  0x2f   : > { %312 = vst [vmem:[%s3729_s27 + $0x1d0] sm:$0xff] %v311_v58  ;;  %314 = vst [vmem:[%s3729_s27 + $0x1d8] sm:$0xff] %v313_v59  ;;  %v315_v60 = vld [vmem:[%s3724_s26 + $0x780] sm:$0xff]  ;;  %v317_v61 = vld [vmem:[%s3724_s26 + $0x788] sm:$0xff] }
  0x30   : > { %v319_v62 = vld [vmem:[%s3724_s26 + $0x7c0] sm:$0xff]  ;;  %316 = vst [vmem:[%s3729_s27 + $0x1e0] sm:$0xff] %v315_v60  ;;  %318 = vst [vmem:[%s3729_s27 + $0x1e8] sm:$0xff] %v317_v61  ;;  %v321_v63 = vld [vmem:[%s3724_s26 + $0x7c8] sm:$0xff] }
  0x31   : > { %320 = vst [vmem:[%s3729_s27 + $0x1f0] sm:$0xff] %v319_v62  ;;  %v323_v0 = vld [vmem:[%s3724_s26 + $0x800] sm:$0xff]  ;;  %v325_v1 = vld [vmem:[%s3724_s26 + $0x808] sm:$0xff]  ;;  %322 = vst [vmem:[%s3729_s27 + $0x1f8] sm:$0xff] %v321_v63 }
  0x32   : > { %324 = vst [vmem:[%s3729_s27 + $0x200] sm:$0xff] %v323_v0  ;;  %326 = vst [vmem:[%s3729_s27 + $0x208] sm:$0xff] %v325_v1  ;;  %v327_v2 = vld [vmem:[%s3724_s26 + $0x840] sm:$0xff]  ;;  %v329_v3 = vld [vmem:[%s3724_s26 + $0x848] sm:$0xff] }
  0x33   : > { %v331_v4 = vld [vmem:[%s3724_s26 + $0x880] sm:$0xff]  ;;  %328 = vst [vmem:[%s3729_s27 + $0x210] sm:$0xff] %v327_v2  ;;  %330 = vst [vmem:[%s3729_s27 + $0x218] sm:$0xff] %v329_v3  ;;  %v333_v5 = vld [vmem:[%s3724_s26 + $0x888] sm:$0xff] }
  0x34   : > { %332 = vst [vmem:[%s3729_s27 + $0x220] sm:$0xff] %v331_v4  ;;  %v335_v6 = vld [vmem:[%s3724_s26 + $0x8c0] sm:$0xff]  ;;  %v337_v7 = vld [vmem:[%s3724_s26 + $0x8c8] sm:$0xff]  ;;  %334 = vst [vmem:[%s3729_s27 + $0x228] sm:$0xff] %v333_v5 }
  0x35   : > { %336 = vst [vmem:[%s3729_s27 + $0x230] sm:$0xff] %v335_v6  ;;  %338 = vst [vmem:[%s3729_s27 + $0x238] sm:$0xff] %v337_v7  ;;  %v339_v8 = vld [vmem:[%s3724_s26 + $0x900] sm:$0xff]  ;;  %v341_v9 = vld [vmem:[%s3724_s26 + $0x908] sm:$0xff] }
  0x36   : > { %v343_v10 = vld [vmem:[%s3724_s26 + $0x940] sm:$0xff]  ;;  %340 = vst [vmem:[%s3729_s27 + $0x240] sm:$0xff] %v339_v8  ;;  %342 = vst [vmem:[%s3729_s27 + $0x248] sm:$0xff] %v341_v9  ;;  %v345_v11 = vld [vmem:[%s3724_s26 + $0x948] sm:$0xff] }
  0x37   : > { %344 = vst [vmem:[%s3729_s27 + $0x250] sm:$0xff] %v343_v10  ;;  %v347_v12 = vld [vmem:[%s3724_s26 + $0x980] sm:$0xff]  ;;  %v349_v13 = vld [vmem:[%s3724_s26 + $0x988] sm:$0xff]  ;;  %346 = vst [vmem:[%s3729_s27 + $0x258] sm:$0xff] %v345_v11 }
  0x38   : > { %348 = vst [vmem:[%s3729_s27 + $0x260] sm:$0xff] %v347_v12  ;;  %350 = vst [vmem:[%s3729_s27 + $0x268] sm:$0xff] %v349_v13  ;;  %v351_v14 = vld [vmem:[%s3724_s26 + $0x9c0] sm:$0xff]  ;;  %v353_v15 = vld [vmem:[%s3724_s26 + $0x9c8] sm:$0xff] }
  0x39   : > { %v355_v16 = vld [vmem:[%s3724_s26 + $0xa00] sm:$0xff]  ;;  %352 = vst [vmem:[%s3729_s27 + $0x270] sm:$0xff] %v351_v14  ;;  %354 = vst [vmem:[%s3729_s27 + $0x278] sm:$0xff] %v353_v15  ;;  %v357_v17 = vld [vmem:[%s3724_s26 + $0xa08] sm:$0xff] }
  0x3a   : > { %356 = vst [vmem:[%s3729_s27 + $0x280] sm:$0xff] %v355_v16  ;;  %v359_v18 = vld [vmem:[%s3724_s26 + $0xa40] sm:$0xff]  ;;  %v361_v19 = vld [vmem:[%s3724_s26 + $0xa48] sm:$0xff]  ;;  %358 = vst [vmem:[%s3729_s27 + $0x288] sm:$0xff] %v357_v17 }
  0x3b   : > { %360 = vst [vmem:[%s3729_s27 + $0x290] sm:$0xff] %v359_v18  ;;  %362 = vst [vmem:[%s3729_s27 + $0x298] sm:$0xff] %v361_v19  ;;  %v363_v20 = vld [vmem:[%s3724_s26 + $0xa80] sm:$0xff]  ;;  %v365_v21 = vld [vmem:[%s3724_s26 + $0xa88] sm:$0xff] }
  0x3c   : > { %v367_v22 = vld [vmem:[%s3724_s26 + $0xac0] sm:$0xff]  ;;  %364 = vst [vmem:[%s3729_s27 + $0x2a0] sm:$0xff] %v363_v20  ;;  %366 = vst [vmem:[%s3729_s27 + $0x2a8] sm:$0xff] %v365_v21  ;;  %v369_v23 = vld [vmem:[%s3724_s26 + $0xac8] sm:$0xff] }
  0x3d   : > { %368 = vst [vmem:[%s3729_s27 + $0x2b0] sm:$0xff] %v367_v22  ;;  %v371_v24 = vld [vmem:[%s3724_s26 + $0xb00] sm:$0xff]  ;;  %v373_v25 = vld [vmem:[%s3724_s26 + $0xb08] sm:$0xff]  ;;  %370 = vst [vmem:[%s3729_s27 + $0x2b8] sm:$0xff] %v369_v23 }
  0x3e   : > { %372 = vst [vmem:[%s3729_s27 + $0x2c0] sm:$0xff] %v371_v24  ;;  %374 = vst [vmem:[%s3729_s27 + $0x2c8] sm:$0xff] %v373_v25  ;;  %v375_v26 = vld [vmem:[%s3724_s26 + $0xb40] sm:$0xff]  ;;  %v377_v27 = vld [vmem:[%s3724_s26 + $0xb48] sm:$0xff] }
  0x3f   : > { %v379_v28 = vld [vmem:[%s3724_s26 + $0xb80] sm:$0xff]  ;;  %376 = vst [vmem:[%s3729_s27 + $0x2d0] sm:$0xff] %v375_v26  ;;  %378 = vst [vmem:[%s3729_s27 + $0x2d8] sm:$0xff] %v377_v27  ;;  %v381_v29 = vld [vmem:[%s3724_s26 + $0xb88] sm:$0xff] }
  0x40   : > { %380 = vst [vmem:[%s3729_s27 + $0x2e0] sm:$0xff] %v379_v28  ;;  %v383_v30 = vld [vmem:[%s3724_s26 + $0xbc0] sm:$0xff]  ;;  %v385_v31 = vld [vmem:[%s3724_s26 + $0xbc8] sm:$0xff]  ;;  %382 = vst [vmem:[%s3729_s27 + $0x2e8] sm:$0xff] %v381_v29 }
  0x41   : > { %384 = vst [vmem:[%s3729_s27 + $0x2f0] sm:$0xff] %v383_v30  ;;  %386 = vst [vmem:[%s3729_s27 + $0x2f8] sm:$0xff] %v385_v31  ;;  %v387_v32 = vld [vmem:[%s3724_s26 + $0xc00] sm:$0xff]  ;;  %v389_v33 = vld [vmem:[%s3724_s26 + $0xc08] sm:$0xff] }
  0x42   : > { %v391_v34 = vld [vmem:[%s3724_s26 + $0xc40] sm:$0xff]  ;;  %388 = vst [vmem:[%s3729_s27 + $0x300] sm:$0xff] %v387_v32  ;;  %390 = vst [vmem:[%s3729_s27 + $0x308] sm:$0xff] %v389_v33  ;;  %v393_v35 = vld [vmem:[%s3724_s26 + $0xc48] sm:$0xff] }
  0x43   : > { %392 = vst [vmem:[%s3729_s27 + $0x310] sm:$0xff] %v391_v34  ;;  %v395_v36 = vld [vmem:[%s3724_s26 + $0xc80] sm:$0xff]  ;;  %v397_v37 = vld [vmem:[%s3724_s26 + $0xc88] sm:$0xff]  ;;  %394 = vst [vmem:[%s3729_s27 + $0x318] sm:$0xff] %v393_v35 }
  0x44   : > { %396 = vst [vmem:[%s3729_s27 + $0x320] sm:$0xff] %v395_v36  ;;  %398 = vst [vmem:[%s3729_s27 + $0x328] sm:$0xff] %v397_v37  ;;  %v399_v38 = vld [vmem:[%s3724_s26 + $0xcc0] sm:$0xff]  ;;  %v401_v39 = vld [vmem:[%s3724_s26 + $0xcc8] sm:$0xff] }
  0x45   : > { %v403_v40 = vld [vmem:[%s3724_s26 + $0xd00] sm:$0xff]  ;;  %400 = vst [vmem:[%s3729_s27 + $0x330] sm:$0xff] %v399_v38  ;;  %402 = vst [vmem:[%s3729_s27 + $0x338] sm:$0xff] %v401_v39  ;;  %v405_v41 = vld [vmem:[%s3724_s26 + $0xd08] sm:$0xff] }
  0x46   : > { %404 = vst [vmem:[%s3729_s27 + $0x340] sm:$0xff] %v403_v40  ;;  %v407_v42 = vld [vmem:[%s3724_s26 + $0xd40] sm:$0xff]  ;;  %v409_v43 = vld [vmem:[%s3724_s26 + $0xd48] sm:$0xff]  ;;  %406 = vst [vmem:[%s3729_s27 + $0x348] sm:$0xff] %v405_v41 }
  0x47   : > { %408 = vst [vmem:[%s3729_s27 + $0x350] sm:$0xff] %v407_v42  ;;  %410 = vst [vmem:[%s3729_s27 + $0x358] sm:$0xff] %v409_v43  ;;  %v411_v44 = vld [vmem:[%s3724_s26 + $0xd80] sm:$0xff]  ;;  %v413_v45 = vld [vmem:[%s3724_s26 + $0xd88] sm:$0xff] }
  0x48   : > { %v415_v46 = vld [vmem:[%s3724_s26 + $0xdc0] sm:$0xff]  ;;  %412 = vst [vmem:[%s3729_s27 + $0x360] sm:$0xff] %v411_v44  ;;  %414 = vst [vmem:[%s3729_s27 + $0x368] sm:$0xff] %v413_v45  ;;  %v417_v47 = vld [vmem:[%s3724_s26 + $0xdc8] sm:$0xff] }
  0x49   : > { %416 = vst [vmem:[%s3729_s27 + $0x370] sm:$0xff] %v415_v46  ;;  %v419_v48 = vld [vmem:[%s3724_s26 + $0xe00] sm:$0xff]  ;;  %v421_v49 = vld [vmem:[%s3724_s26 + $0xe08] sm:$0xff]  ;;  %418 = vst [vmem:[%s3729_s27 + $0x378] sm:$0xff] %v417_v47 }
  0x4a   : > { %420 = vst [vmem:[%s3729_s27 + $0x380] sm:$0xff] %v419_v48  ;;  %422 = vst [vmem:[%s3729_s27 + $0x388] sm:$0xff] %v421_v49  ;;  %v423_v50 = vld [vmem:[%s3724_s26 + $0xe40] sm:$0xff]  ;;  %v425_v51 = vld [vmem:[%s3724_s26 + $0xe48] sm:$0xff] }
  0x4b   : > { %v427_v52 = vld [vmem:[%s3724_s26 + $0xe80] sm:$0xff]  ;;  %424 = vst [vmem:[%s3729_s27 + $0x390] sm:$0xff] %v423_v50  ;;  %426 = vst [vmem:[%s3729_s27 + $0x398] sm:$0xff] %v425_v51  ;;  %v429_v53 = vld [vmem:[%s3724_s26 + $0xe88] sm:$0xff] }
  0x4c   : > { %428 = vst [vmem:[%s3729_s27 + $0x3a0] sm:$0xff] %v427_v52  ;;  %v431_v54 = vld [vmem:[%s3724_s26 + $0xec0] sm:$0xff]  ;;  %v433_v55 = vld [vmem:[%s3724_s26 + $0xec8] sm:$0xff]  ;;  %430 = vst [vmem:[%s3729_s27 + $0x3a8] sm:$0xff] %v429_v53 }
  0x4d   : > { %432 = vst [vmem:[%s3729_s27 + $0x3b0] sm:$0xff] %v431_v54  ;;  %434 = vst [vmem:[%s3729_s27 + $0x3b8] sm:$0xff] %v433_v55  ;;  %v435_v56 = vld [vmem:[%s3724_s26 + $0xf00] sm:$0xff]  ;;  %v437_v57 = vld [vmem:[%s3724_s26 + $0xf08] sm:$0xff] }
  0x4e   : > { %v439_v58 = vld [vmem:[%s3724_s26 + $0xf40] sm:$0xff]  ;;  %436 = vst [vmem:[%s3729_s27 + $0x3c0] sm:$0xff] %v435_v56  ;;  %438 = vst [vmem:[%s3729_s27 + $0x3c8] sm:$0xff] %v437_v57  ;;  %v441_v59 = vld [vmem:[%s3724_s26 + $0xf48] sm:$0xff] }
  0x4f   : > { %440 = vst [vmem:[%s3729_s27 + $0x3d0] sm:$0xff] %v439_v58  ;;  %v443_v60 = vld [vmem:[%s3724_s26 + $0xf80] sm:$0xff]  ;;  %v445_v61 = vld [vmem:[%s3724_s26 + $0xf88] sm:$0xff]  ;;  %442 = vst [vmem:[%s3729_s27 + $0x3d8] sm:$0xff] %v441_v59 }
  0x50   : > { %444 = vst [vmem:[%s3729_s27 + $0x3e0] sm:$0xff] %v443_v60  ;;  %446 = vst [vmem:[%s3729_s27 + $0x3e8] sm:$0xff] %v445_v61  ;;  %v447_v62 = vld [vmem:[%s3724_s26 + $0xfc0] sm:$0xff]  ;;  %v449_v63 = vld [vmem:[%s3724_s26 + $0xfc8] sm:$0xff] }
  0x51   : > { %v451_v0 = vld [vmem:[%s3724_s26 + $0x1000] sm:$0xff]  ;;  %448 = vst [vmem:[%s3729_s27 + $0x3f0] sm:$0xff] %v447_v62  ;;  %450 = vst [vmem:[%s3729_s27 + $0x3f8] sm:$0xff] %v449_v63  ;;  %v453_v1 = vld [vmem:[%s3724_s26 + $0x1008] sm:$0xff] }
  0x52   : > { %452 = vst [vmem:[%s3729_s27 + $0x400] sm:$0xff] %v451_v0  ;;  %v455_v2 = vld [vmem:[%s3724_s26 + $0x1040] sm:$0xff]  ;;  %v457_v3 = vld [vmem:[%s3724_s26 + $0x1048] sm:$0xff]  ;;  %454 = vst [vmem:[%s3729_s27 + $0x408] sm:$0xff] %v453_v1 }
  0x53   : > { %456 = vst [vmem:[%s3729_s27 + $0x410] sm:$0xff] %v455_v2  ;;  %458 = vst [vmem:[%s3729_s27 + $0x418] sm:$0xff] %v457_v3  ;;  %v459_v4 = vld [vmem:[%s3724_s26 + $0x1080] sm:$0xff]  ;;  %v461_v5 = vld [vmem:[%s3724_s26 + $0x1088] sm:$0xff] }
  0x54   : > { %v463_v6 = vld [vmem:[%s3724_s26 + $0x10c0] sm:$0xff]  ;;  %460 = vst [vmem:[%s3729_s27 + $0x420] sm:$0xff] %v459_v4  ;;  %462 = vst [vmem:[%s3729_s27 + $0x428] sm:$0xff] %v461_v5  ;;  %v465_v7 = vld [vmem:[%s3724_s26 + $0x10c8] sm:$0xff] }
  0x55   : > { %464 = vst [vmem:[%s3729_s27 + $0x430] sm:$0xff] %v463_v6  ;;  %v467_v8 = vld [vmem:[%s3724_s26 + $0x1100] sm:$0xff]  ;;  %v469_v9 = vld [vmem:[%s3724_s26 + $0x1108] sm:$0xff]  ;;  %466 = vst [vmem:[%s3729_s27 + $0x438] sm:$0xff] %v465_v7 }
  0x56   : > { %468 = vst [vmem:[%s3729_s27 + $0x440] sm:$0xff] %v467_v8  ;;  %470 = vst [vmem:[%s3729_s27 + $0x448] sm:$0xff] %v469_v9  ;;  %v471_v10 = vld [vmem:[%s3724_s26 + $0x1140] sm:$0xff]  ;;  %v473_v11 = vld [vmem:[%s3724_s26 + $0x1148] sm:$0xff] }
  0x57   : > { %v475_v12 = vld [vmem:[%s3724_s26 + $0x1180] sm:$0xff]  ;;  %472 = vst [vmem:[%s3729_s27 + $0x450] sm:$0xff] %v471_v10  ;;  %474 = vst [vmem:[%s3729_s27 + $0x458] sm:$0xff] %v473_v11  ;;  %v477_v13 = vld [vmem:[%s3724_s26 + $0x1188] sm:$0xff] }
  0x58   : > { %476 = vst [vmem:[%s3729_s27 + $0x460] sm:$0xff] %v475_v12  ;;  %v479_v14 = vld [vmem:[%s3724_s26 + $0x11c0] sm:$0xff]  ;;  %v481_v15 = vld [vmem:[%s3724_s26 + $0x11c8] sm:$0xff]  ;;  %478 = vst [vmem:[%s3729_s27 + $0x468] sm:$0xff] %v477_v13 }
  0x59   : > { %480 = vst [vmem:[%s3729_s27 + $0x470] sm:$0xff] %v479_v14  ;;  %482 = vst [vmem:[%s3729_s27 + $0x478] sm:$0xff] %v481_v15  ;;  %v483_v16 = vld [vmem:[%s3724_s26 + $0x1200] sm:$0xff]  ;;  %v485_v17 = vld [vmem:[%s3724_s26 + $0x1208] sm:$0xff] }
  0x5a   : > { %v487_v18 = vld [vmem:[%s3724_s26 + $0x1240] sm:$0xff]  ;;  %484 = vst [vmem:[%s3729_s27 + $0x480] sm:$0xff] %v483_v16  ;;  %486 = vst [vmem:[%s3729_s27 + $0x488] sm:$0xff] %v485_v17  ;;  %v489_v19 = vld [vmem:[%s3724_s26 + $0x1248] sm:$0xff] }
  0x5b   : > { %488 = vst [vmem:[%s3729_s27 + $0x490] sm:$0xff] %v487_v18  ;;  %v491_v20 = vld [vmem:[%s3724_s26 + $0x1280] sm:$0xff]  ;;  %v493_v21 = vld [vmem:[%s3724_s26 + $0x1288] sm:$0xff]  ;;  %490 = vst [vmem:[%s3729_s27 + $0x498] sm:$0xff] %v489_v19 }
  0x5c   : > { %492 = vst [vmem:[%s3729_s27 + $0x4a0] sm:$0xff] %v491_v20  ;;  %494 = vst [vmem:[%s3729_s27 + $0x4a8] sm:$0xff] %v493_v21  ;;  %v495_v22 = vld [vmem:[%s3724_s26 + $0x12c0] sm:$0xff]  ;;  %v497_v23 = vld [vmem:[%s3724_s26 + $0x12c8] sm:$0xff] }
  0x5d   : > { %v499_v24 = vld [vmem:[%s3724_s26 + $0x1300] sm:$0xff]  ;;  %496 = vst [vmem:[%s3729_s27 + $0x4b0] sm:$0xff] %v495_v22  ;;  %498 = vst [vmem:[%s3729_s27 + $0x4b8] sm:$0xff] %v497_v23  ;;  %v501_v25 = vld [vmem:[%s3724_s26 + $0x1308] sm:$0xff] }
  0x5e   : > { %500 = vst [vmem:[%s3729_s27 + $0x4c0] sm:$0xff] %v499_v24  ;;  %v503_v26 = vld [vmem:[%s3724_s26 + $0x1340] sm:$0xff]  ;;  %v505_v27 = vld [vmem:[%s3724_s26 + $0x1348] sm:$0xff]  ;;  %502 = vst [vmem:[%s3729_s27 + $0x4c8] sm:$0xff] %v501_v25 }
  0x5f   : > { %504 = vst [vmem:[%s3729_s27 + $0x4d0] sm:$0xff] %v503_v26  ;;  %506 = vst [vmem:[%s3729_s27 + $0x4d8] sm:$0xff] %v505_v27  ;;  %v507_v28 = vld [vmem:[%s3724_s26 + $0x1380] sm:$0xff]  ;;  %v509_v29 = vld [vmem:[%s3724_s26 + $0x1388] sm:$0xff] }
  0x60   : > { %v511_v30 = vld [vmem:[%s3724_s26 + $0x13c0] sm:$0xff]  ;;  %508 = vst [vmem:[%s3729_s27 + $0x4e0] sm:$0xff] %v507_v28  ;;  %510 = vst [vmem:[%s3729_s27 + $0x4e8] sm:$0xff] %v509_v29  ;;  %v513_v31 = vld [vmem:[%s3724_s26 + $0x13c8] sm:$0xff] }
  0x61   : > { %512 = vst [vmem:[%s3729_s27 + $0x4f0] sm:$0xff] %v511_v30  ;;  %v515_v32 = vld [vmem:[%s3724_s26 + $0x1400] sm:$0xff]  ;;  %v517_v33 = vld [vmem:[%s3724_s26 + $0x1408] sm:$0xff]  ;;  %514 = vst [vmem:[%s3729_s27 + $0x4f8] sm:$0xff] %v513_v31 }
  0x62   : > { %516 = vst [vmem:[%s3729_s27 + $0x500] sm:$0xff] %v515_v32  ;;  %518 = vst [vmem:[%s3729_s27 + $0x508] sm:$0xff] %v517_v33  ;;  %v519_v34 = vld [vmem:[%s3724_s26 + $0x1440] sm:$0xff]  ;;  %v521_v35 = vld [vmem:[%s3724_s26 + $0x1448] sm:$0xff] }
  0x63   : > { %v523_v36 = vld [vmem:[%s3724_s26 + $0x1480] sm:$0xff]  ;;  %520 = vst [vmem:[%s3729_s27 + $0x510] sm:$0xff] %v519_v34  ;;  %522 = vst [vmem:[%s3729_s27 + $0x518] sm:$0xff] %v521_v35  ;;  %v525_v37 = vld [vmem:[%s3724_s26 + $0x1488] sm:$0xff] }
  0x64   : > { %524 = vst [vmem:[%s3729_s27 + $0x520] sm:$0xff] %v523_v36  ;;  %v527_v38 = vld [vmem:[%s3724_s26 + $0x14c0] sm:$0xff]  ;;  %v529_v39 = vld [vmem:[%s3724_s26 + $0x14c8] sm:$0xff]  ;;  %526 = vst [vmem:[%s3729_s27 + $0x528] sm:$0xff] %v525_v37 }
  0x65   : > { %528 = vst [vmem:[%s3729_s27 + $0x530] sm:$0xff] %v527_v38  ;;  %530 = vst [vmem:[%s3729_s27 + $0x538] sm:$0xff] %v529_v39  ;;  %v531_v40 = vld [vmem:[%s3724_s26 + $0x1500] sm:$0xff]  ;;  %v533_v41 = vld [vmem:[%s3724_s26 + $0x1508] sm:$0xff] }
  0x66   : > { %v535_v42 = vld [vmem:[%s3724_s26 + $0x1540] sm:$0xff]  ;;  %532 = vst [vmem:[%s3729_s27 + $0x540] sm:$0xff] %v531_v40  ;;  %534 = vst [vmem:[%s3729_s27 + $0x548] sm:$0xff] %v533_v41  ;;  %v537_v43 = vld [vmem:[%s3724_s26 + $0x1548] sm:$0xff] }
  0x67   : > { %536 = vst [vmem:[%s3729_s27 + $0x550] sm:$0xff] %v535_v42  ;;  %v539_v44 = vld [vmem:[%s3724_s26 + $0x1580] sm:$0xff]  ;;  %v541_v45 = vld [vmem:[%s3724_s26 + $0x1588] sm:$0xff]  ;;  %538 = vst [vmem:[%s3729_s27 + $0x558] sm:$0xff] %v537_v43 }
  0x68   : > { %540 = vst [vmem:[%s3729_s27 + $0x560] sm:$0xff] %v539_v44  ;;  %542 = vst [vmem:[%s3729_s27 + $0x568] sm:$0xff] %v541_v45  ;;  %v543_v46 = vld [vmem:[%s3724_s26 + $0x15c0] sm:$0xff]  ;;  %v545_v47 = vld [vmem:[%s3724_s26 + $0x15c8] sm:$0xff] }
  0x69   : > { %v547_v48 = vld [vmem:[%s3724_s26 + $0x1600] sm:$0xff]  ;;  %544 = vst [vmem:[%s3729_s27 + $0x570] sm:$0xff] %v543_v46  ;;  %546 = vst [vmem:[%s3729_s27 + $0x578] sm:$0xff] %v545_v47  ;;  %v549_v49 = vld [vmem:[%s3724_s26 + $0x1608] sm:$0xff] }
  0x6a   : > { %548 = vst [vmem:[%s3729_s27 + $0x580] sm:$0xff] %v547_v48  ;;  %v551_v50 = vld [vmem:[%s3724_s26 + $0x1640] sm:$0xff]  ;;  %v553_v51 = vld [vmem:[%s3724_s26 + $0x1648] sm:$0xff]  ;;  %550 = vst [vmem:[%s3729_s27 + $0x588] sm:$0xff] %v549_v49 }
  0x6b   : > { %552 = vst [vmem:[%s3729_s27 + $0x590] sm:$0xff] %v551_v50  ;;  %554 = vst [vmem:[%s3729_s27 + $0x598] sm:$0xff] %v553_v51  ;;  %v555_v52 = vld [vmem:[%s3724_s26 + $0x1680] sm:$0xff]  ;;  %v557_v53 = vld [vmem:[%s3724_s26 + $0x1688] sm:$0xff] }
  0x6c   : > { %v559_v54 = vld [vmem:[%s3724_s26 + $0x16c0] sm:$0xff]  ;;  %556 = vst [vmem:[%s3729_s27 + $0x5a0] sm:$0xff] %v555_v52  ;;  %558 = vst [vmem:[%s3729_s27 + $0x5a8] sm:$0xff] %v557_v53  ;;  %v561_v55 = vld [vmem:[%s3724_s26 + $0x16c8] sm:$0xff] }
  0x6d   : > { %560 = vst [vmem:[%s3729_s27 + $0x5b0] sm:$0xff] %v559_v54  ;;  %v563_v56 = vld [vmem:[%s3724_s26 + $0x1700] sm:$0xff]  ;;  %v565_v57 = vld [vmem:[%s3724_s26 + $0x1708] sm:$0xff]  ;;  %562 = vst [vmem:[%s3729_s27 + $0x5b8] sm:$0xff] %v561_v55 }
  0x6e   : > { %564 = vst [vmem:[%s3729_s27 + $0x5c0] sm:$0xff] %v563_v56  ;;  %566 = vst [vmem:[%s3729_s27 + $0x5c8] sm:$0xff] %v565_v57  ;;  %v567_v58 = vld [vmem:[%s3724_s26 + $0x1740] sm:$0xff]  ;;  %v569_v59 = vld [vmem:[%s3724_s26 + $0x1748] sm:$0xff] }
  0x6f   : > { %v571_v60 = vld [vmem:[%s3724_s26 + $0x1780] sm:$0xff]  ;;  %568 = vst [vmem:[%s3729_s27 + $0x5d0] sm:$0xff] %v567_v58  ;;  %570 = vst [vmem:[%s3729_s27 + $0x5d8] sm:$0xff] %v569_v59  ;;  %v573_v61 = vld [vmem:[%s3724_s26 + $0x1788] sm:$0xff] }
  0x70   : > { %572 = vst [vmem:[%s3729_s27 + $0x5e0] sm:$0xff] %v571_v60  ;;  %v575_v62 = vld [vmem:[%s3724_s26 + $0x17c0] sm:$0xff]  ;;  %v577_v63 = vld [vmem:[%s3724_s26 + $0x17c8] sm:$0xff]  ;;  %574 = vst [vmem:[%s3729_s27 + $0x5e8] sm:$0xff] %v573_v61 }
  0x71   : > { %576 = vst [vmem:[%s3729_s27 + $0x5f0] sm:$0xff] %v575_v62  ;;  %578 = vst [vmem:[%s3729_s27 + $0x5f8] sm:$0xff] %v577_v63  ;;  %v579_v0 = vld [vmem:[%s3724_s26 + $0x1800] sm:$0xff]  ;;  %v581_v1 = vld [vmem:[%s3724_s26 + $0x1808] sm:$0xff] }
  0x72   : > { %v583_v2 = vld [vmem:[%s3724_s26 + $0x1840] sm:$0xff]  ;;  %580 = vst [vmem:[%s3729_s27 + $0x600] sm:$0xff] %v579_v0  ;;  %582 = vst [vmem:[%s3729_s27 + $0x608] sm:$0xff] %v581_v1  ;;  %v585_v3 = vld [vmem:[%s3724_s26 + $0x1848] sm:$0xff] }
  0x73   : > { %584 = vst [vmem:[%s3729_s27 + $0x610] sm:$0xff] %v583_v2  ;;  %v587_v4 = vld [vmem:[%s3724_s26 + $0x1880] sm:$0xff]  ;;  %v589_v5 = vld [vmem:[%s3724_s26 + $0x1888] sm:$0xff]  ;;  %586 = vst [vmem:[%s3729_s27 + $0x618] sm:$0xff] %v585_v3 }
  0x74   : > { %588 = vst [vmem:[%s3729_s27 + $0x620] sm:$0xff] %v587_v4  ;;  %590 = vst [vmem:[%s3729_s27 + $0x628] sm:$0xff] %v589_v5  ;;  %v591_v6 = vld [vmem:[%s3724_s26 + $0x18c0] sm:$0xff]  ;;  %v593_v7 = vld [vmem:[%s3724_s26 + $0x18c8] sm:$0xff] }
  0x75   : > { %v595_v8 = vld [vmem:[%s3724_s26 + $0x1900] sm:$0xff]  ;;  %592 = vst [vmem:[%s3729_s27 + $0x630] sm:$0xff] %v591_v6  ;;  %594 = vst [vmem:[%s3729_s27 + $0x638] sm:$0xff] %v593_v7  ;;  %v597_v9 = vld [vmem:[%s3724_s26 + $0x1908] sm:$0xff] }
  0x76   : > { %596 = vst [vmem:[%s3729_s27 + $0x640] sm:$0xff] %v595_v8  ;;  %v599_v10 = vld [vmem:[%s3724_s26 + $0x1940] sm:$0xff]  ;;  %v601_v11 = vld [vmem:[%s3724_s26 + $0x1948] sm:$0xff]  ;;  %598 = vst [vmem:[%s3729_s27 + $0x648] sm:$0xff] %v597_v9 }
  0x77   : > { %600 = vst [vmem:[%s3729_s27 + $0x650] sm:$0xff] %v599_v10  ;;  %602 = vst [vmem:[%s3729_s27 + $0x658] sm:$0xff] %v601_v11  ;;  %v603_v12 = vld [vmem:[%s3724_s26 + $0x1980] sm:$0xff]  ;;  %v605_v13 = vld [vmem:[%s3724_s26 + $0x1988] sm:$0xff] }
  0x78   : > { %v607_v14 = vld [vmem:[%s3724_s26 + $0x19c0] sm:$0xff]  ;;  %604 = vst [vmem:[%s3729_s27 + $0x660] sm:$0xff] %v603_v12  ;;  %606 = vst [vmem:[%s3729_s27 + $0x668] sm:$0xff] %v605_v13  ;;  %v609_v15 = vld [vmem:[%s3724_s26 + $0x19c8] sm:$0xff] }
  0x79   : > { %608 = vst [vmem:[%s3729_s27 + $0x670] sm:$0xff] %v607_v14  ;;  %v611_v16 = vld [vmem:[%s3724_s26 + $0x1a00] sm:$0xff]  ;;  %v613_v17 = vld [vmem:[%s3724_s26 + $0x1a08] sm:$0xff]  ;;  %610 = vst [vmem:[%s3729_s27 + $0x678] sm:$0xff] %v609_v15 }
  0x7a   : > { %612 = vst [vmem:[%s3729_s27 + $0x680] sm:$0xff] %v611_v16  ;;  %614 = vst [vmem:[%s3729_s27 + $0x688] sm:$0xff] %v613_v17  ;;  %v615_v18 = vld [vmem:[%s3724_s26 + $0x1a40] sm:$0xff]  ;;  %v617_v19 = vld [vmem:[%s3724_s26 + $0x1a48] sm:$0xff] }
  0x7b   : > { %v619_v20 = vld [vmem:[%s3724_s26 + $0x1a80] sm:$0xff]  ;;  %616 = vst [vmem:[%s3729_s27 + $0x690] sm:$0xff] %v615_v18  ;;  %618 = vst [vmem:[%s3729_s27 + $0x698] sm:$0xff] %v617_v19  ;;  %v621_v21 = vld [vmem:[%s3724_s26 + $0x1a88] sm:$0xff] }
  0x7c   : > { %620 = vst [vmem:[%s3729_s27 + $0x6a0] sm:$0xff] %v619_v20  ;;  %v623_v22 = vld [vmem:[%s3724_s26 + $0x1ac0] sm:$0xff]  ;;  %v625_v23 = vld [vmem:[%s3724_s26 + $0x1ac8] sm:$0xff]  ;;  %622 = vst [vmem:[%s3729_s27 + $0x6a8] sm:$0xff] %v621_v21 }
  0x7d   : > { %624 = vst [vmem:[%s3729_s27 + $0x6b0] sm:$0xff] %v623_v22  ;;  %626 = vst [vmem:[%s3729_s27 + $0x6b8] sm:$0xff] %v625_v23  ;;  %v627_v24 = vld [vmem:[%s3724_s26 + $0x1b00] sm:$0xff]  ;;  %v629_v25 = vld [vmem:[%s3724_s26 + $0x1b08] sm:$0xff] }
  0x7e   : > { %v631_v26 = vld [vmem:[%s3724_s26 + $0x1b40] sm:$0xff]  ;;  %628 = vst [vmem:[%s3729_s27 + $0x6c0] sm:$0xff] %v627_v24  ;;  %630 = vst [vmem:[%s3729_s27 + $0x6c8] sm:$0xff] %v629_v25  ;;  %v633_v27 = vld [vmem:[%s3724_s26 + $0x1b48] sm:$0xff] }
  0x7f   : > { %632 = vst [vmem:[%s3729_s27 + $0x6d0] sm:$0xff] %v631_v26  ;;  %v635_v28 = vld [vmem:[%s3724_s26 + $0x1b80] sm:$0xff]  ;;  %v637_v29 = vld [vmem:[%s3724_s26 + $0x1b88] sm:$0xff]  ;;  %634 = vst [vmem:[%s3729_s27 + $0x6d8] sm:$0xff] %v633_v27 }
  0x80   : > { %636 = vst [vmem:[%s3729_s27 + $0x6e0] sm:$0xff] %v635_v28  ;;  %638 = vst [vmem:[%s3729_s27 + $0x6e8] sm:$0xff] %v637_v29  ;;  %v639_v30 = vld [vmem:[%s3724_s26 + $0x1bc0] sm:$0xff]  ;;  %v641_v31 = vld [vmem:[%s3724_s26 + $0x1bc8] sm:$0xff] }
  0x81   : > { %v643_v32 = vld [vmem:[%s3724_s26 + $0x1c00] sm:$0xff]  ;;  %640 = vst [vmem:[%s3729_s27 + $0x6f0] sm:$0xff] %v639_v30  ;;  %642 = vst [vmem:[%s3729_s27 + $0x6f8] sm:$0xff] %v641_v31  ;;  %v645_v33 = vld [vmem:[%s3724_s26 + $0x1c08] sm:$0xff] }
  0x82   : > { %644 = vst [vmem:[%s3729_s27 + $0x700] sm:$0xff] %v643_v32  ;;  %v647_v34 = vld [vmem:[%s3724_s26 + $0x1c40] sm:$0xff]  ;;  %v649_v35 = vld [vmem:[%s3724_s26 + $0x1c48] sm:$0xff]  ;;  %646 = vst [vmem:[%s3729_s27 + $0x708] sm:$0xff] %v645_v33 }
  0x83   : > { %648 = vst [vmem:[%s3729_s27 + $0x710] sm:$0xff] %v647_v34  ;;  %650 = vst [vmem:[%s3729_s27 + $0x718] sm:$0xff] %v649_v35  ;;  %v651_v36 = vld [vmem:[%s3724_s26 + $0x1c80] sm:$0xff]  ;;  %v653_v37 = vld [vmem:[%s3724_s26 + $0x1c88] sm:$0xff] }
  0x84   : > { %v655_v38 = vld [vmem:[%s3724_s26 + $0x1cc0] sm:$0xff]  ;;  %652 = vst [vmem:[%s3729_s27 + $0x720] sm:$0xff] %v651_v36  ;;  %654 = vst [vmem:[%s3729_s27 + $0x728] sm:$0xff] %v653_v37  ;;  %v657_v39 = vld [vmem:[%s3724_s26 + $0x1cc8] sm:$0xff] }
  0x85   : > { %656 = vst [vmem:[%s3729_s27 + $0x730] sm:$0xff] %v655_v38  ;;  %v659_v40 = vld [vmem:[%s3724_s26 + $0x1d00] sm:$0xff]  ;;  %v661_v41 = vld [vmem:[%s3724_s26 + $0x1d08] sm:$0xff]  ;;  %658 = vst [vmem:[%s3729_s27 + $0x738] sm:$0xff] %v657_v39 }
  0x86   : > { %660 = vst [vmem:[%s3729_s27 + $0x740] sm:$0xff] %v659_v40  ;;  %662 = vst [vmem:[%s3729_s27 + $0x748] sm:$0xff] %v661_v41  ;;  %v663_v42 = vld [vmem:[%s3724_s26 + $0x1d40] sm:$0xff]  ;;  %v665_v43 = vld [vmem:[%s3724_s26 + $0x1d48] sm:$0xff] }
  0x87   : > { %v667_v44 = vld [vmem:[%s3724_s26 + $0x1d80] sm:$0xff]  ;;  %664 = vst [vmem:[%s3729_s27 + $0x750] sm:$0xff] %v663_v42  ;;  %666 = vst [vmem:[%s3729_s27 + $0x758] sm:$0xff] %v665_v43  ;;  %v669_v45 = vld [vmem:[%s3724_s26 + $0x1d88] sm:$0xff] }
  0x88   : > { %668 = vst [vmem:[%s3729_s27 + $0x760] sm:$0xff] %v667_v44  ;;  %v671_v46 = vld [vmem:[%s3724_s26 + $0x1dc0] sm:$0xff]  ;;  %v673_v47 = vld [vmem:[%s3724_s26 + $0x1dc8] sm:$0xff]  ;;  %670 = vst [vmem:[%s3729_s27 + $0x768] sm:$0xff] %v669_v45 }
  0x89   : > { %672 = vst [vmem:[%s3729_s27 + $0x770] sm:$0xff] %v671_v46  ;;  %674 = vst [vmem:[%s3729_s27 + $0x778] sm:$0xff] %v673_v47  ;;  %v675_v48 = vld [vmem:[%s3724_s26 + $0x1e00] sm:$0xff]  ;;  %v677_v49 = vld [vmem:[%s3724_s26 + $0x1e08] sm:$0xff] }
  0x8a   : > { %v679_v50 = vld [vmem:[%s3724_s26 + $0x1e40] sm:$0xff]  ;;  %676 = vst [vmem:[%s3729_s27 + $0x780] sm:$0xff] %v675_v48  ;;  %678 = vst [vmem:[%s3729_s27 + $0x788] sm:$0xff] %v677_v49  ;;  %v681_v51 = vld [vmem:[%s3724_s26 + $0x1e48] sm:$0xff] }
  0x8b   : > { %680 = vst [vmem:[%s3729_s27 + $0x790] sm:$0xff] %v679_v50  ;;  %v683_v52 = vld [vmem:[%s3724_s26 + $0x1e80] sm:$0xff]  ;;  %v685_v53 = vld [vmem:[%s3724_s26 + $0x1e88] sm:$0xff]  ;;  %682 = vst [vmem:[%s3729_s27 + $0x798] sm:$0xff] %v681_v51 }
  0x8c   : > { %684 = vst [vmem:[%s3729_s27 + $0x7a0] sm:$0xff] %v683_v52  ;;  %686 = vst [vmem:[%s3729_s27 + $0x7a8] sm:$0xff] %v685_v53  ;;  %v687_v54 = vld [vmem:[%s3724_s26 + $0x1ec0] sm:$0xff]  ;;  %v689_v55 = vld [vmem:[%s3724_s26 + $0x1ec8] sm:$0xff] }
  0x8d   : > { %v691_v56 = vld [vmem:[%s3724_s26 + $0x1f00] sm:$0xff]  ;;  %688 = vst [vmem:[%s3729_s27 + $0x7b0] sm:$0xff] %v687_v54  ;;  %690 = vst [vmem:[%s3729_s27 + $0x7b8] sm:$0xff] %v689_v55  ;;  %v693_v57 = vld [vmem:[%s3724_s26 + $0x1f08] sm:$0xff] }
  0x8e   : > { %692 = vst [vmem:[%s3729_s27 + $0x7c0] sm:$0xff] %v691_v56  ;;  %v695_v58 = vld [vmem:[%s3724_s26 + $0x1f40] sm:$0xff]  ;;  %v697_v59 = vld [vmem:[%s3724_s26 + $0x1f48] sm:$0xff]  ;;  %694 = vst [vmem:[%s3729_s27 + $0x7c8] sm:$0xff] %v693_v57 }
  0x8f   : > { %696 = vst [vmem:[%s3729_s27 + $0x7d0] sm:$0xff] %v695_v58  ;;  %698 = vst [vmem:[%s3729_s27 + $0x7d8] sm:$0xff] %v697_v59  ;;  %v699_v60 = vld [vmem:[%s3724_s26 + $0x1f80] sm:$0xff]  ;;  %v701_v61 = vld [vmem:[%s3724_s26 + $0x1f88] sm:$0xff] }
  0x90   : > { %v703_v62 = vld [vmem:[%s3724_s26 + $0x1fc0] sm:$0xff]  ;;  %700 = vst [vmem:[%s3729_s27 + $0x7e0] sm:$0xff] %v699_v60  ;;  %702 = vst [vmem:[%s3729_s27 + $0x7e8] sm:$0xff] %v701_v61  ;;  %v705_v63 = vld [vmem:[%s3724_s26 + $0x1fc8] sm:$0xff] }
  0x91   : > { %704 = vst [vmem:[%s3729_s27 + $0x7f0] sm:$0xff] %v703_v62  ;;  %706 = vst [vmem:[%s3729_s27 + $0x7f8] sm:$0xff] %v705_v63 }
  0x92 PF: > { %p2885_p6 = scmp.ge.s32.totalorder %s3659_s16, 1  ;;  %p719_p7 = scmp.lt.s32.totalorder %s3659_s16, 5 }
  0x94   : > { %p720_p8 = pnand %p2885_p6, %p719_p7 }
  0x95   : > { %s726_s28 = sand.u32 (!%p720_p8), 1, %s3643_s12   ;;  %v4246_v0 = vld [vmem:[%s4559_s0] sm:$0xff] (!%p720_p8)  ;;  %s2887_s12 = sshll.u32 (!%p720_p8), %s3651_s14, 2 }
  0x96   : > { %723 = sbr.rel (%p720_p8) target bundleno = 627 (0x273), region = 51  ;;  %s2886_s4 = sshll.u32 (!%p720_p8), %s726_s28, 11  ;;  %v2891_v1 = vcombine.high (!%p720_p8), %v4246_v0, %v4246_v0 }
  0x97   : > { %s4250_s5 = scalar_lea.vmem (!%p720_p8), [#allocation2], %s2886_s4  ;;  %p781_p9 = scmp.lt.s32.totalorder (!%p720_p8), %s2887_s12, 15 }
  0x98   : > { %v3229_v2 = vld [vmem:[%s4250_s5 + $0x4] ss:$16 sps:$4 sm:$0xff] (!%p720_p8)   ;;  %2421 = vmatprep.mubr.bf16.mxu0 (!%p720_p8), %v2891_v1  ;;  %2585 = vmatprep.mubr.bf16.mxu1 (!%p720_p8), %v2891_v1  ;;  %v3231_v3 = vld [vmem:[%s4250_s5 + $0xc] ss:$16 sps:$4 sm:$0xff] (!%p720_p8)   ;;  %v3233_v4 = vld [vmem:[%s4250_s5] ss:$16 sps:$4 sm:$0xff] (!%p720_p8)  }
  0x99   : > { %2389 = vmatprep.subr.bf16.mxu0 (!%p720_p8), %v3229_v2  ;;  %v3234_v5 = vld [vmem:[%s4250_s5 + $0x8] ss:$16 sps:$4 sm:$0xff] (!%p720_p8)   ;;  %2553 = vmatprep.subr.bf16.mxu1 (!%p720_p8), %v3231_v3  ;;  %v3235_v6 = vld [vmem:[%s4250_s5 + $0x24] ss:$16 sps:$4 sm:$0xff] (!%p720_p8)   ;;  %v3237_v7 = vld [vmem:[%s4250_s5 + $0x2c] ss:$16 sps:$4 sm:$0xff] (!%p720_p8)  }
  0x9a   : > { %2390 = vmatpush1.bf16.msra.mxu0 (!%p720_p8), %v3233_v4  ;;  %2554 = vmatpush1.bf16.msra.mxu1 (!%p720_p8), %v3234_v5  ;;  %v3239_v8 = vld [vmem:[%s4250_s5 + $0x20] ss:$16 sps:$4 sm:$0xff] (!%p720_p8)   ;;  %v3240_v9 = vld [vmem:[%s4250_s5 + $0x28] ss:$16 sps:$4 sm:$0xff] (!%p720_p8)   ;;  %v3241_v10 = vld [vmem:[%s4250_s5 + $0x44] ss:$16 sps:$4 sm:$0xff] (!%p720_p8)   ;;  %v2890_v5 = vcombine.low (!%p720_p8), %v4246_v0, %v4246_v0 }
  0x9b   : > { %2391 = vmatprep.subr.bf16.mxu0 (!%p720_p8), %v3235_v6  ;;  %2555 = vmatprep.subr.bf16.mxu1 (!%p720_p8), %v3237_v7  ;;  %v3243_v11 = vld [vmem:[%s4250_s5 + $0x4c] ss:$16 sps:$4 sm:$0xff] (!%p720_p8)   ;;  %v3245_v12 = vld [vmem:[%s4250_s5 + $0x40] ss:$16 sps:$4 sm:$0xff] (!%p720_p8)   ;;  %v3246_v13 = vld [vmem:[%s4250_s5 + $0x48] ss:$16 sps:$4 sm:$0xff] (!%p720_p8)  }
  0x9c   : > { %v3247_v14 = vld [vmem:[%s4250_s5 + $0x64] ss:$16 sps:$4 sm:$0xff] (!%p720_p8)   ;;  %v3249_v15 = vld [vmem:[%s4250_s5 + $0x6c] ss:$16 sps:$4 sm:$0xff] (!%p720_p8)   ;;  %v3251_v16 = vld [vmem:[%s4250_s5 + $0x60] ss:$16 sps:$4 sm:$0xff] (!%p720_p8)  }
  0x9d   : > { %v3252_v17 = vld [vmem:[%s4250_s5 + $0x68] ss:$16 sps:$4 sm:$0xff]   ;;  %v3253_v18 = vld [vmem:[%s4250_s5 + $0x84] ss:$16 sps:$4 sm:$0xff]   ;;  %v3255_v19 = vld [vmem:[%s4250_s5 + $0x8c] ss:$16 sps:$4 sm:$0xff]  }
  0x9e   : > { %2392 = vmatpush1.bf16.msra.mxu0 %v3239_v8  ;;  %2556 = vmatpush1.bf16.msra.mxu1 %v3240_v9  ;;  %v3257_v20 = vld [vmem:[%s4250_s5 + $0x80] ss:$16 sps:$4 sm:$0xff]   ;;  %v3258_v21 = vld [vmem:[%s4250_s5 + $0x88] ss:$16 sps:$4 sm:$0xff]   ;;  %v3259_v22 = vld [vmem:[%s4250_s5 + $0xa4] ss:$16 sps:$4 sm:$0xff]  }
  0x9f   : > { %2393 = vmatprep.subr.bf16.mxu0 %v3241_v10  ;;  %2557 = vmatprep.subr.bf16.mxu1 %v3243_v11  ;;  %v3261_v23 = vld [vmem:[%s4250_s5 + $0xac] ss:$16 sps:$4 sm:$0xff]   ;;  %v3263_v24 = vld [vmem:[%s4250_s5 + $0xa0] ss:$16 sps:$4 sm:$0xff]   ;;  %v3264_v25 = vld [vmem:[%s4250_s5 + $0xa8] ss:$16 sps:$4 sm:$0xff]  }
  0xa0   : > { %v3265_v26 = vld [vmem:[%s4250_s5 + $0xc4] ss:$16 sps:$4 sm:$0xff]   ;;  %v3267_v27 = vld [vmem:[%s4250_s5 + $0xcc] ss:$16 sps:$4 sm:$0xff]   ;;  %v3269_v28 = vld [vmem:[%s4250_s5 + $0xc0] ss:$16 sps:$4 sm:$0xff]  }
  0xa1   : > { %v3270_v29 = vld [vmem:[%s4250_s5 + $0xc8] ss:$16 sps:$4 sm:$0xff]   ;;  %v3271_v30 = vld [vmem:[%s4250_s5 + $0xe4] ss:$16 sps:$4 sm:$0xff]   ;;  %v3273_v31 = vld [vmem:[%s4250_s5 + $0xec] ss:$16 sps:$4 sm:$0xff]  }
  0xa2   : > { %2394 = vmatpush1.bf16.msra.mxu0 %v3245_v12  ;;  %2558 = vmatpush1.bf16.msra.mxu1 %v3246_v13  ;;  %v3275_v32 = vld [vmem:[%s4250_s5 + $0xe0] ss:$16 sps:$4 sm:$0xff]   ;;  %v3276_v33 = vld [vmem:[%s4250_s5 + $0xe8] ss:$16 sps:$4 sm:$0xff]   ;;  %v3277_v34 = vld [vmem:[%s4250_s5 + $0x104] ss:$16 sps:$4 sm:$0xff]  }
  0xa3   : > { %2395 = vmatprep.subr.bf16.mxu0 %v3247_v14  ;;  %2559 = vmatprep.subr.bf16.mxu1 %v3249_v15  ;;  %v3279_v35 = vld [vmem:[%s4250_s5 + $0x10c] ss:$16 sps:$4 sm:$0xff]   ;;  %v3281_v36 = vld [vmem:[%s4250_s5 + $0x100] ss:$16 sps:$4 sm:$0xff]   ;;  %v3282_v37 = vld [vmem:[%s4250_s5 + $0x108] ss:$16 sps:$4 sm:$0xff]  }
  0xa4   : > { %v3283_v38 = vld [vmem:[%s4250_s5 + $0x124] ss:$16 sps:$4 sm:$0xff]   ;;  %v3285_v39 = vld [vmem:[%s4250_s5 + $0x12c] ss:$16 sps:$4 sm:$0xff]   ;;  %v3287_v40 = vld [vmem:[%s4250_s5 + $0x120] ss:$16 sps:$4 sm:$0xff]  }
  0xa5   : > { %v3288_v41 = vld [vmem:[%s4250_s5 + $0x128] ss:$16 sps:$4 sm:$0xff]   ;;  %v3289_v42 = vld [vmem:[%s4250_s5 + $0x144] ss:$16 sps:$4 sm:$0xff]   ;;  %v3291_v43 = vld [vmem:[%s4250_s5 + $0x14c] ss:$16 sps:$4 sm:$0xff]  }
  0xa6   : > { %2396 = vmatpush1.bf16.msra.mxu0 %v3251_v16  ;;  %2560 = vmatpush1.bf16.msra.mxu1 %v3252_v17  ;;  %v3293_v44 = vld [vmem:[%s4250_s5 + $0x140] ss:$16 sps:$4 sm:$0xff]   ;;  %v3294_v45 = vld [vmem:[%s4250_s5 + $0x148] ss:$16 sps:$4 sm:$0xff]   ;;  %v3295_v46 = vld [vmem:[%s4250_s5 + $0x164] ss:$16 sps:$4 sm:$0xff]  }
  0xa7   : > { %2397 = vmatprep.subr.bf16.mxu0 %v3253_v18  ;;  %2561 = vmatprep.subr.bf16.mxu1 %v3255_v19  ;;  %v3297_v47 = vld [vmem:[%s4250_s5 + $0x16c] ss:$16 sps:$4 sm:$0xff]   ;;  %v3299_v48 = vld [vmem:[%s4250_s5 + $0x160] ss:$16 sps:$4 sm:$0xff]   ;;  %v3300_v49 = vld [vmem:[%s4250_s5 + $0x168] ss:$16 sps:$4 sm:$0xff]  }
  0xa8   : > { %v3301_v50 = vld [vmem:[%s4250_s5 + $0x184] ss:$16 sps:$4 sm:$0xff]   ;;  %v3303_v51 = vld [vmem:[%s4250_s5 + $0x18c] ss:$16 sps:$4 sm:$0xff]   ;;  %v3305_v52 = vld [vmem:[%s4250_s5 + $0x180] ss:$16 sps:$4 sm:$0xff]  }
  0xa9   : > { %v3306_v53 = vld [vmem:[%s4250_s5 + $0x188] ss:$16 sps:$4 sm:$0xff]   ;;  %v3307_v54 = vld [vmem:[%s4250_s5 + $0x1a4] ss:$16 sps:$4 sm:$0xff]   ;;  %v3309_v55 = vld [vmem:[%s4250_s5 + $0x1ac] ss:$16 sps:$4 sm:$0xff]  }
  0xaa   : > { %2398 = vmatpush1.bf16.msra.mxu0 %v3257_v20  ;;  %2562 = vmatpush1.bf16.msra.mxu1 %v3258_v21  ;;  %v3311_v56 = vld [vmem:[%s4250_s5 + $0x1a0] ss:$16 sps:$4 sm:$0xff]   ;;  %v3312_v57 = vld [vmem:[%s4250_s5 + $0x1a8] ss:$16 sps:$4 sm:$0xff]   ;;  %v3313_v58 = vld [vmem:[%s4250_s5 + $0x1c4] ss:$16 sps:$4 sm:$0xff]  }
  0xab   : > { %2399 = vmatprep.subr.bf16.mxu0 %v3259_v22  ;;  %2563 = vmatprep.subr.bf16.mxu1 %v3261_v23  ;;  %v3315_v59 = vld [vmem:[%s4250_s5 + $0x1cc] ss:$16 sps:$4 sm:$0xff]   ;;  %v3317_v60 = vld [vmem:[%s4250_s5 + $0x1c0] ss:$16 sps:$4 sm:$0xff]   ;;  %v3318_v61 = vld [vmem:[%s4250_s5 + $0x1c8] ss:$16 sps:$4 sm:$0xff]  }
  0xac   : > { %v3319_v62 = vld [vmem:[%s4250_s5 + $0x1e4] ss:$16 sps:$4 sm:$0xff]   ;;  %v3321_v63 = vld [vmem:[%s4250_s5 + $0x1ec] ss:$16 sps:$4 sm:$0xff]   ;;  %v3323_v1 = vld [vmem:[%s4250_s5 + $0x1e0] ss:$16 sps:$4 sm:$0xff]  }
  0xad   : > { %v3324_v2 = vld [vmem:[%s4250_s5 + $0x1e8] ss:$16 sps:$4 sm:$0xff]   ;;  %v3329_v3 = vld [vmem:[%s4250_s5 + $0x204] ss:$16 sps:$4 sm:$0xff]   ;;  %v3332_v4 = vld [vmem:[%s4250_s5 + $0x20c] ss:$16 sps:$4 sm:$0xff]  }
  0xae   : > { %2400 = vmatpush1.bf16.msra.mxu0 %v3263_v24  ;;  %2564 = vmatpush1.bf16.msra.mxu1 %v3264_v25  ;;  %v3327_v6 = vld [vmem:[%s4250_s5 + $0x200] ss:$16 sps:$4 sm:$0xff]   ;;  %v3330_v7 = vld [vmem:[%s4250_s5 + $0x208] ss:$16 sps:$4 sm:$0xff]   ;;  %v3335_v8 = vld [vmem:[%s4250_s5 + $0x224] ss:$16 sps:$4 sm:$0xff]  }
  0xaf   : > { %2401 = vmatprep.subr.bf16.mxu0 %v3265_v26  ;;  %2565 = vmatprep.subr.bf16.mxu1 %v3267_v27  ;;  %v3338_v9 = vld [vmem:[%s4250_s5 + $0x22c] ss:$16 sps:$4 sm:$0xff]   ;;  %v3333_v10 = vld [vmem:[%s4250_s5 + $0x220] ss:$16 sps:$4 sm:$0xff]   ;;  %v3336_v11 = vld [vmem:[%s4250_s5 + $0x228] ss:$16 sps:$4 sm:$0xff]  }
  0xb0   : > { %v3341_v0 = vld [vmem:[%s4250_s5 + $0x244] ss:$16 sps:$4 sm:$0xff]   ;;  %v3344_v12 = vld [vmem:[%s4250_s5 + $0x24c] ss:$16 sps:$4 sm:$0xff]   ;;  %v3339_v13 = vld [vmem:[%s4250_s5 + $0x240] ss:$16 sps:$4 sm:$0xff]  }
  0xb1   : > { %v3342_v14 = vld [vmem:[%s4250_s5 + $0x248] ss:$16 sps:$4 sm:$0xff]   ;;  %v3347_v15 = vld [vmem:[%s4250_s5 + $0x264] ss:$16 sps:$4 sm:$0xff]   ;;  %v3350_v16 = vld [vmem:[%s4250_s5 + $0x26c] ss:$16 sps:$4 sm:$0xff]  }
  0xb2   : > { %2402 = vmatpush1.bf16.msra.mxu0 %v3269_v28  ;;  %2566 = vmatpush1.bf16.msra.mxu1 %v3270_v29  ;;  %v3345_v17 = vld [vmem:[%s4250_s5 + $0x260] ss:$16 sps:$4 sm:$0xff]   ;;  %v3348_v18 = vld [vmem:[%s4250_s5 + $0x268] ss:$16 sps:$4 sm:$0xff]   ;;  %v3353_v19 = vld [vmem:[%s4250_s5 + $0x284] ss:$16 sps:$4 sm:$0xff]  }
  0xb3   : > { %2403 = vmatprep.subr.bf16.mxu0 %v3271_v30  ;;  %2567 = vmatprep.subr.bf16.mxu1 %v3273_v31  ;;  %v3356_v20 = vld [vmem:[%s4250_s5 + $0x28c] ss:$16 sps:$4 sm:$0xff]   ;;  %v3351_v21 = vld [vmem:[%s4250_s5 + $0x280] ss:$16 sps:$4 sm:$0xff]   ;;  %v3354_v22 = vld [vmem:[%s4250_s5 + $0x288] ss:$16 sps:$4 sm:$0xff]  }
  0xb4   : > { %v3359_v23 = vld [vmem:[%s4250_s5 + $0x2a4] ss:$16 sps:$4 sm:$0xff]   ;;  %v3362_v24 = vld [vmem:[%s4250_s5 + $0x2ac] ss:$16 sps:$4 sm:$0xff]   ;;  %v3357_v25 = vld [vmem:[%s4250_s5 + $0x2a0] ss:$16 sps:$4 sm:$0xff]  }
  0xb5   : > { %v3360_v26 = vld [vmem:[%s4250_s5 + $0x2a8] ss:$16 sps:$4 sm:$0xff]   ;;  %v3365_v27 = vld [vmem:[%s4250_s5 + $0x2c4] ss:$16 sps:$4 sm:$0xff]   ;;  %v3368_v28 = vld [vmem:[%s4250_s5 + $0x2cc] ss:$16 sps:$4 sm:$0xff]  }
  0xb6   : > { %2404 = vmatpush1.bf16.msra.mxu0 %v3275_v32  ;;  %2568 = vmatpush1.bf16.msra.mxu1 %v3276_v33  ;;  %v4347_v29 = vld [vmem:[%s4559_s0 + $0x8] sm:$0xff]  ;;  %v3363_v31 = vld [vmem:[%s4250_s5 + $0x2c0] ss:$16 sps:$4 sm:$0xff]   ;;  %v3371_v33 = vld [vmem:[%s4250_s5 + $0x2e4] ss:$16 sps:$4 sm:$0xff]   ;;  %s4570_s12 = smov (!%p781_p9, %s2887_s12), 15 }
  0xb7   : > { %2405 = vmatprep.subr.bf16.mxu0 %v3277_v34  ;;  %2569 = vmatprep.subr.bf16.mxu1 %v3279_v35  ;;  %v2893_v30 = vcombine.high %v4347_v29, %v4347_v29  ;;  %v3366_v32 = vld [vmem:[%s4250_s5 + $0x2c8] ss:$16 sps:$4 sm:$0xff]   ;;  %v3374_v34 = vld [vmem:[%s4250_s5 + $0x2ec] ss:$16 sps:$4 sm:$0xff]   ;;  %v3369_v35 = vld [vmem:[%s4250_s5 + $0x2e0] ss:$16 sps:$4 sm:$0xff]   ;;  %s783_s21 = scalar_lea.vmem %s4561_s2, %s4570_s12 }
  0xb8   : > { %s2889_s14 = sshll.u32 %s4570_s12, 2 }
  0xb9   : > { %s797_s24 = scalar_lea.vmem %s4562_s3, %s2889_s14 }
  0xba   : > { %2406 = vmatpush1.bf16.msra.mxu0 %v3281_v36  ;;  %2570 = vmatpush1.bf16.msra.mxu1 %v3282_v37  ;;  %v3372_v36 = vld [vmem:[%s4250_s5 + $0x2e8] ss:$16 sps:$4 sm:$0xff]   ;;  %v3377_v37 = vld [vmem:[%s4250_s5 + $0x304] ss:$16 sps:$4 sm:$0xff]  }
  0xbb   : > { %2407 = vmatprep.subr.bf16.mxu0 %v3283_v38  ;;  %2571 = vmatprep.subr.bf16.mxu1 %v3285_v39  ;;  %v3380_v38 = vld [vmem:[%s4250_s5 + $0x30c] ss:$16 sps:$4 sm:$0xff]   ;;  %v3375_v39 = vld [vmem:[%s4250_s5 + $0x300] ss:$16 sps:$4 sm:$0xff]  }
  0xbe   : > { %2408 = vmatpush1.bf16.msra.mxu0 %v3287_v40  ;;  %2572 = vmatpush1.bf16.msra.mxu1 %v3288_v41  ;;  %v3378_v40 = vld [vmem:[%s4250_s5 + $0x308] ss:$16 sps:$4 sm:$0xff]   ;;  %v3383_v41 = vld [vmem:[%s4250_s5 + $0x324] ss:$16 sps:$4 sm:$0xff]  }
  0xbf   : > { %2409 = vmatprep.subr.bf16.mxu0 %v3289_v42  ;;  %2573 = vmatprep.subr.bf16.mxu1 %v3291_v43  ;;  %v3386_v42 = vld [vmem:[%s4250_s5 + $0x32c] ss:$16 sps:$4 sm:$0xff]   ;;  %v3381_v43 = vld [vmem:[%s4250_s5 + $0x320] ss:$16 sps:$4 sm:$0xff]  }
  0xc2   : > { %2410 = vmatpush1.bf16.msra.mxu0 %v3293_v44  ;;  %2574 = vmatpush1.bf16.msra.mxu1 %v3294_v45  ;;  %v3384_v44 = vld [vmem:[%s4250_s5 + $0x328] ss:$16 sps:$4 sm:$0xff]   ;;  %v3389_v45 = vld [vmem:[%s4250_s5 + $0x344] ss:$16 sps:$4 sm:$0xff]  }
  0xc3   : > { %2411 = vmatprep.subr.bf16.mxu0 %v3295_v46  ;;  %2575 = vmatprep.subr.bf16.mxu1 %v3297_v47  ;;  %v3392_v46 = vld [vmem:[%s4250_s5 + $0x34c] ss:$16 sps:$4 sm:$0xff]   ;;  %v3387_v47 = vld [vmem:[%s4250_s5 + $0x340] ss:$16 sps:$4 sm:$0xff]  }
  0xc6   : > { %2412 = vmatpush1.bf16.msra.mxu0 %v3299_v48  ;;  %2576 = vmatpush1.bf16.msra.mxu1 %v3300_v49  ;;  %v3390_v48 = vld [vmem:[%s4250_s5 + $0x348] ss:$16 sps:$4 sm:$0xff]   ;;  %v3395_v49 = vld [vmem:[%s4250_s5 + $0x364] ss:$16 sps:$4 sm:$0xff]  }
  0xc7   : > { %2413 = vmatprep.subr.bf16.mxu0 %v3301_v50  ;;  %2577 = vmatprep.subr.bf16.mxu1 %v3303_v51  ;;  %v3398_v50 = vld [vmem:[%s4250_s5 + $0x36c] ss:$16 sps:$4 sm:$0xff]   ;;  %v3393_v51 = vld [vmem:[%s4250_s5 + $0x360] ss:$16 sps:$4 sm:$0xff]  }
  0xca   : > { %2414 = vmatpush1.bf16.msra.mxu0 %v3305_v52  ;;  %2578 = vmatpush1.bf16.msra.mxu1 %v3306_v53  ;;  %v3396_v52 = vld [vmem:[%s4250_s5 + $0x368] ss:$16 sps:$4 sm:$0xff]   ;;  %v3401_v53 = vld [vmem:[%s4250_s5 + $0x384] ss:$16 sps:$4 sm:$0xff]  }
  0xcb   : > { %2415 = vmatprep.subr.bf16.mxu0 %v3307_v54  ;;  %2579 = vmatprep.subr.bf16.mxu1 %v3309_v55  ;;  %v3404_v54 = vld [vmem:[%s4250_s5 + $0x38c] ss:$16 sps:$4 sm:$0xff]   ;;  %v3399_v55 = vld [vmem:[%s4250_s5 + $0x380] ss:$16 sps:$4 sm:$0xff]  }
  0xce   : > { %2416 = vmatpush1.bf16.msra.mxu0 %v3311_v56  ;;  %2580 = vmatpush1.bf16.msra.mxu1 %v3312_v57  ;;  %v3402_v56 = vld [vmem:[%s4250_s5 + $0x388] ss:$16 sps:$4 sm:$0xff]   ;;  %v3407_v57 = vld [vmem:[%s4250_s5 + $0x3a4] ss:$16 sps:$4 sm:$0xff]  }
  0xcf   : > { %2417 = vmatprep.subr.bf16.mxu0 %v3313_v58  ;;  %2581 = vmatprep.subr.bf16.mxu1 %v3315_v59  ;;  %v3410_v58 = vld [vmem:[%s4250_s5 + $0x3ac] ss:$16 sps:$4 sm:$0xff]   ;;  %v3405_v59 = vld [vmem:[%s4250_s5 + $0x3a0] ss:$16 sps:$4 sm:$0xff]  }
  0xd2   : > { %2418 = vmatpush1.bf16.msra.mxu0 %v3317_v60  ;;  %2582 = vmatpush1.bf16.msra.mxu1 %v3318_v61  ;;  %v3408_v60 = vld [vmem:[%s4250_s5 + $0x3a8] ss:$16 sps:$4 sm:$0xff]   ;;  %v3413_v61 = vld [vmem:[%s4250_s5 + $0x3c4] ss:$16 sps:$4 sm:$0xff]  }
  0xd3   : > { %2419 = vmatprep.subr.bf16.mxu0 %v3319_v62  ;;  %2583 = vmatprep.subr.bf16.mxu1 %v3321_v63  ;;  %v3416_v62 = vld [vmem:[%s4250_s5 + $0x3cc] ss:$16 sps:$4 sm:$0xff]   ;;  %v3411_v63 = vld [vmem:[%s4250_s5 + $0x3c0] ss:$16 sps:$4 sm:$0xff]  }
  0xd6   : > { %2420 = vmatpush1.bf16.msra.mxu0 %v3323_v1  ;;  %2584 = vmatpush1.bf16.msra.mxu1 %v3324_v2  ;;  %v3414_v1 = vld [vmem:[%s4250_s5 + $0x3c8] ss:$16 sps:$4 sm:$0xff]   ;;  %v3419_v2 = vld [vmem:[%s4250_s5 + $0x3e4] ss:$16 sps:$4 sm:$0xff]  }
  0xd7   : > { %2430 = vmatprep.subr.bf16.mxu0 %v3329_v3  ;;  %2594 = vmatprep.subr.bf16.mxu1 %v3332_v4  ;;  %v3422_v3 = vld [vmem:[%s4250_s5 + $0x3ec] ss:$16 sps:$4 sm:$0xff]   ;;  %v3417_v4 = vld [vmem:[%s4250_s5 + $0x3e0] ss:$16 sps:$4 sm:$0xff]  }
  0xd9   : > { %2422 = vmatmul.mubr.bf16.vlgmr.msra.gmra.mrb[0].mxu0 %v2890_v5  ;;  %2586 = vmatmul.mubr.bf16.vlgmr.msra.gmra.mrb[0].mxu1 %v2890_v5  ;;  %v3420_v5 = vld [vmem:[%s4250_s5 + $0x3e8] ss:$16 sps:$4 sm:$0xff]  }
  0xda   : > { %2431 = vmatpush1.bf16.msra.mxu0 %v3327_v6  ;;  %2595 = vmatpush1.bf16.msra.mxu1 %v3330_v7  ;;  %v3427_v6 = vld [vmem:[%s4250_s5 + $0x404] ss:$16 sps:$4 sm:$0xff]   ;;  %v3430_v7 = vld [vmem:[%s4250_s5 + $0x40c] ss:$16 sps:$4 sm:$0xff]  }
  0xdb   : > { %2432 = vmatprep.subr.bf16.mxu0 %v3335_v8  ;;  %2596 = vmatprep.subr.bf16.mxu1 %v3338_v9  ;;  %v2892_v8 = vcombine.low %v4347_v29, %v4347_v29  ;;  %v3425_v9 = vld [vmem:[%s4250_s5 + $0x400] ss:$16 sps:$4 sm:$0xff]   ;;  %v3460_v29 = vld [vmem:[%s4250_s5 + $0x4ac] ss:$16 sps:$4 sm:$0xff]  }
  0xdc   : > { %2462 = vmatprep.mubr.bf16.mxu0 %v2893_v30  ;;  %2626 = vmatprep.mubr.bf16.mxu1 %v2893_v30  ;;  %v3455_v30 = vld [vmem:[%s4250_s5 + $0x4a0] ss:$16 sps:$4 sm:$0xff]  }
  0xde   : > { %2433 = vmatpush1.bf16.msra.mxu0 %v3333_v10  ;;  %2597 = vmatpush1.bf16.msra.mxu1 %v3336_v11  ;;  %v3428_v10 = vld [vmem:[%s4250_s5 + $0x408] ss:$16 sps:$4 sm:$0xff]   ;;  %v4398_v11 = vld [vmem:[%s4559_s0 + $0x10] sm:$0xff] }
  0xdf   : > { %2434 = vmatprep.subr.bf16.mxu0 %v3341_v0  ;;  %2598 = vmatprep.subr.bf16.mxu1 %v3344_v12  ;;  %v3433_v0 = vld [vmem:[%s4250_s5 + $0x424] ss:$16 sps:$4 sm:$0xff]   ;;  %v3436_v12 = vld [vmem:[%s4250_s5 + $0x42c] ss:$16 sps:$4 sm:$0xff]  }
  0xe2   : > { %2435 = vmatpush1.bf16.msra.mxu0 %v3339_v13  ;;  %2599 = vmatpush1.bf16.msra.mxu1 %v3342_v14  ;;  %v2895_v13 = vcombine.high %v4398_v11, %v4398_v11  ;;  %v3431_v14 = vld [vmem:[%s4250_s5 + $0x420] ss:$16 sps:$4 sm:$0xff]  }
  0xe3   : > { %2436 = vmatprep.subr.bf16.mxu0 %v3347_v15  ;;  %2600 = vmatprep.subr.bf16.mxu1 %v3350_v16  ;;  %v3434_v15 = vld [vmem:[%s4250_s5 + $0x428] ss:$16 sps:$4 sm:$0xff]   ;;  %v3439_v16 = vld [vmem:[%s4250_s5 + $0x444] ss:$16 sps:$4 sm:$0xff]  }
  0xe6   : > { %2437 = vmatpush1.bf16.msra.mxu0 %v3345_v17  ;;  %2601 = vmatpush1.bf16.msra.mxu1 %v3348_v18  ;;  %v3442_v17 = vld [vmem:[%s4250_s5 + $0x44c] ss:$16 sps:$4 sm:$0xff]   ;;  %v3437_v18 = vld [vmem:[%s4250_s5 + $0x440] ss:$16 sps:$4 sm:$0xff]  }
  0xe7   : > { %2438 = vmatprep.subr.bf16.mxu0 %v3353_v19  ;;  %2602 = vmatprep.subr.bf16.mxu1 %v3356_v20  ;;  %v3440_v19 = vld [vmem:[%s4250_s5 + $0x448] ss:$16 sps:$4 sm:$0xff]   ;;  %v3445_v20 = vld [vmem:[%s4250_s5 + $0x464] ss:$16 sps:$4 sm:$0xff]  }
  0xea   : > { %2439 = vmatpush1.bf16.msra.mxu0 %v3351_v21  ;;  %2603 = vmatpush1.bf16.msra.mxu1 %v3354_v22  ;;  %v3448_v21 = vld [vmem:[%s4250_s5 + $0x46c] ss:$16 sps:$4 sm:$0xff]   ;;  %v3443_v22 = vld [vmem:[%s4250_s5 + $0x460] ss:$16 sps:$4 sm:$0xff]  }
  0xeb   : > { %2440 = vmatprep.subr.bf16.mxu0 %v3359_v23  ;;  %2604 = vmatprep.subr.bf16.mxu1 %v3362_v24  ;;  %v3446_v23 = vld [vmem:[%s4250_s5 + $0x468] ss:$16 sps:$4 sm:$0xff]   ;;  %v3451_v24 = vld [vmem:[%s4250_s5 + $0x484] ss:$16 sps:$4 sm:$0xff]  }
  0xee   : > { %2441 = vmatpush1.bf16.msra.mxu0 %v3357_v25  ;;  %2605 = vmatpush1.bf16.msra.mxu1 %v3360_v26  ;;  %v3454_v25 = vld [vmem:[%s4250_s5 + $0x48c] ss:$16 sps:$4 sm:$0xff]   ;;  %v3449_v26 = vld [vmem:[%s4250_s5 + $0x480] ss:$16 sps:$4 sm:$0xff]  }
  0xef   : > { %2442 = vmatprep.subr.bf16.mxu0 %v3365_v27  ;;  %2606 = vmatprep.subr.bf16.mxu1 %v3368_v28  ;;  %v3452_v27 = vld [vmem:[%s4250_s5 + $0x488] ss:$16 sps:$4 sm:$0xff]   ;;  %v3457_v28 = vld [vmem:[%s4250_s5 + $0x4a4] ss:$16 sps:$4 sm:$0xff]  }
  0xf2   : > { %2443 = vmatpush1.bf16.msra.mxu0 %v3363_v31  ;;  %2607 = vmatpush1.bf16.msra.mxu1 %v3366_v32  ;;  %v3458_v31 = vld [vmem:[%s4250_s5 + $0x4a8] ss:$16 sps:$4 sm:$0xff]   ;;  %v3463_v32 = vld [vmem:[%s4250_s5 + $0x4c4] ss:$16 sps:$4 sm:$0xff]  }
  0xf3   : > { %2444 = vmatprep.subr.bf16.mxu0 %v3371_v33  ;;  %2608 = vmatprep.subr.bf16.mxu1 %v3374_v34  ;;  %v3466_v33 = vld [vmem:[%s4250_s5 + $0x4cc] ss:$16 sps:$4 sm:$0xff]   ;;  %v3461_v34 = vld [vmem:[%s4250_s5 + $0x4c0] ss:$16 sps:$4 sm:$0xff]  }
  0xf6   : > { %2445 = vmatpush1.bf16.msra.mxu0 %v3369_v35  ;;  %2609 = vmatpush1.bf16.msra.mxu1 %v3372_v36  ;;  %v3464_v35 = vld [vmem:[%s4250_s5 + $0x4c8] ss:$16 sps:$4 sm:$0xff]   ;;  %v3469_v36 = vld [vmem:[%s4250_s5 + $0x4e4] ss:$16 sps:$4 sm:$0xff]  }
  0xf7   : > { %2446 = vmatprep.subr.bf16.mxu0 %v3377_v37  ;;  %2610 = vmatprep.subr.bf16.mxu1 %v3380_v38  ;;  %v3472_v37 = vld [vmem:[%s4250_s5 + $0x4ec] ss:$16 sps:$4 sm:$0xff]   ;;  %v3467_v38 = vld [vmem:[%s4250_s5 + $0x4e0] ss:$16 sps:$4 sm:$0xff]  }
  0xfa   : > { %2447 = vmatpush1.bf16.msra.mxu0 %v3375_v39  ;;  %2611 = vmatpush1.bf16.msra.mxu1 %v3378_v40  ;;  %v3470_v39 = vld [vmem:[%s4250_s5 + $0x4e8] ss:$16 sps:$4 sm:$0xff]   ;;  %v3475_v40 = vld [vmem:[%s4250_s5 + $0x504] ss:$16 sps:$4 sm:$0xff]  }
  0xfb   : > { %2448 = vmatprep.subr.bf16.mxu0 %v3383_v41  ;;  %2612 = vmatprep.subr.bf16.mxu1 %v3386_v42  ;;  %v3478_v41 = vld [vmem:[%s4250_s5 + $0x50c] ss:$16 sps:$4 sm:$0xff]   ;;  %v3473_v42 = vld [vmem:[%s4250_s5 + $0x500] ss:$16 sps:$4 sm:$0xff]  }
  0xfe   : > { %2449 = vmatpush1.bf16.msra.mxu0 %v3381_v43  ;;  %2613 = vmatpush1.bf16.msra.mxu1 %v3384_v44  ;;  %v3476_v43 = vld [vmem:[%s4250_s5 + $0x508] ss:$16 sps:$4 sm:$0xff]   ;;  %v3481_v44 = vld [vmem:[%s4250_s5 + $0x524] ss:$16 sps:$4 sm:$0xff]  }
  0xff   : > { %2450 = vmatprep.subr.bf16.mxu0 %v3389_v45  ;;  %2614 = vmatprep.subr.bf16.mxu1 %v3392_v46  ;;  %v3484_v45 = vld [vmem:[%s4250_s5 + $0x52c] ss:$16 sps:$4 sm:$0xff]   ;;  %v3479_v46 = vld [vmem:[%s4250_s5 + $0x520] ss:$16 sps:$4 sm:$0xff]  }
 0x102   : > { %2451 = vmatpush1.bf16.msra.mxu0 %v3387_v47  ;;  %2615 = vmatpush1.bf16.msra.mxu1 %v3390_v48  ;;  %v3482_v47 = vld [vmem:[%s4250_s5 + $0x528] ss:$16 sps:$4 sm:$0xff]   ;;  %v3487_v48 = vld [vmem:[%s4250_s5 + $0x544] ss:$16 sps:$4 sm:$0xff]  }
 0x103   : > { %2452 = vmatprep.subr.bf16.mxu0 %v3395_v49  ;;  %2616 = vmatprep.subr.bf16.mxu1 %v3398_v50  ;;  %v3490_v49 = vld [vmem:[%s4250_s5 + $0x54c] ss:$16 sps:$4 sm:$0xff]   ;;  %v3485_v50 = vld [vmem:[%s4250_s5 + $0x540] ss:$16 sps:$4 sm:$0xff]  }
 0x106   : > { %2453 = vmatpush1.bf16.msra.mxu0 %v3393_v51  ;;  %2617 = vmatpush1.bf16.msra.mxu1 %v3396_v52  ;;  %v3488_v51 = vld [vmem:[%s4250_s5 + $0x548] ss:$16 sps:$4 sm:$0xff]   ;;  %v3493_v52 = vld [vmem:[%s4250_s5 + $0x564] ss:$16 sps:$4 sm:$0xff]  }
 0x107   : > { %2454 = vmatprep.subr.bf16.mxu0 %v3401_v53  ;;  %2618 = vmatprep.subr.bf16.mxu1 %v3404_v54  ;;  %v3496_v53 = vld [vmem:[%s4250_s5 + $0x56c] ss:$16 sps:$4 sm:$0xff]   ;;  %v3491_v54 = vld [vmem:[%s4250_s5 + $0x560] ss:$16 sps:$4 sm:$0xff]  }
 0x10a   : > { %2455 = vmatpush1.bf16.msra.mxu0 %v3399_v55  ;;  %2619 = vmatpush1.bf16.msra.mxu1 %v3402_v56  ;;  %v3494_v55 = vld [vmem:[%s4250_s5 + $0x568] ss:$16 sps:$4 sm:$0xff]   ;;  %v3499_v56 = vld [vmem:[%s4250_s5 + $0x584] ss:$16 sps:$4 sm:$0xff]  }
 0x10b   : > { %2456 = vmatprep.subr.bf16.mxu0 %v3407_v57  ;;  %2620 = vmatprep.subr.bf16.mxu1 %v3410_v58  ;;  %v3502_v57 = vld [vmem:[%s4250_s5 + $0x58c] ss:$16 sps:$4 sm:$0xff]   ;;  %v3497_v58 = vld [vmem:[%s4250_s5 + $0x580] ss:$16 sps:$4 sm:$0xff]  }
 0x10e   : > { %2457 = vmatpush1.bf16.msra.mxu0 %v3405_v59  ;;  %2621 = vmatpush1.bf16.msra.mxu1 %v3408_v60  ;;  %v3500_v59 = vld [vmem:[%s4250_s5 + $0x588] ss:$16 sps:$4 sm:$0xff]   ;;  %v3505_v60 = vld [vmem:[%s4250_s5 + $0x5a4] ss:$16 sps:$4 sm:$0xff]  }
 0x10f   : > { %2458 = vmatprep.subr.bf16.mxu0 %v3413_v61  ;;  %2622 = vmatprep.subr.bf16.mxu1 %v3416_v62  ;;  %v3508_v61 = vld [vmem:[%s4250_s5 + $0x5ac] ss:$16 sps:$4 sm:$0xff]   ;;  %v3503_v62 = vld [vmem:[%s4250_s5 + $0x5a0] ss:$16 sps:$4 sm:$0xff]  }
 0x112   : > { %2459 = vmatpush1.bf16.msra.mxu0 %v3411_v63  ;;  %2623 = vmatpush1.bf16.msra.mxu1 %v3414_v1  ;;  %v3506_v63 = vld [vmem:[%s4250_s5 + $0x5a8] ss:$16 sps:$4 sm:$0xff]   ;;  %v3511_v1 = vld [vmem:[%s4250_s5 + $0x5c4] ss:$16 sps:$4 sm:$0xff]  }
 0x113   : > { %2460 = vmatprep.subr.bf16.mxu0 %v3419_v2  ;;  %2624 = vmatprep.subr.bf16.mxu1 %v3422_v3  ;;  %v3514_v2 = vld [vmem:[%s4250_s5 + $0x5cc] ss:$16 sps:$4 sm:$0xff]   ;;  %v3509_v3 = vld [vmem:[%s4250_s5 + $0x5c0] ss:$16 sps:$4 sm:$0xff]  }
 0x116   : > { %2461 = vmatpush1.bf16.msra.mxu0 %v3417_v4  ;;  %2625 = vmatpush1.bf16.msra.mxu1 %v3420_v5  ;;  %v3512_v4 = vld [vmem:[%s4250_s5 + $0x5c8] ss:$16 sps:$4 sm:$0xff]   ;;  %v3517_v5 = vld [vmem:[%s4250_s5 + $0x5e4] ss:$16 sps:$4 sm:$0xff]  }
 0x117   : > { %2471 = vmatprep.subr.bf16.mxu0 %v3427_v6  ;;  %2635 = vmatprep.subr.bf16.mxu1 %v3430_v7  ;;  %v3520_v6 = vld [vmem:[%s4250_s5 + $0x5ec] ss:$16 sps:$4 sm:$0xff]   ;;  %v3515_v7 = vld [vmem:[%s4250_s5 + $0x5e0] ss:$16 sps:$4 sm:$0xff]  }
 0x119   : > { %2463 = vmatmul.mubr.bf16.vlgmr.msra.gmra.mrb[0].mxu0 %v2892_v8  ;;  %2627 = vmatmul.mubr.bf16.vlgmr.msra.gmra.mrb[0].mxu1 %v2892_v8  ;;  %v3518_v8 = vld [vmem:[%s4250_s5 + $0x5e8] ss:$16 sps:$4 sm:$0xff]  }
 0x11a   : > { %2472 = vmatpush1.bf16.msra.mxu0 %v3425_v9  ;;  %2636 = vmatpush1.bf16.msra.mxu1 %v3428_v10  ;;  %v3525_v9 = vld [vmem:[%s4250_s5 + $0x604] ss:$16 sps:$4 sm:$0xff]   ;;  %v3528_v10 = vld [vmem:[%s4250_s5 + $0x60c] ss:$16 sps:$4 sm:$0xff]  }
 0x11b   : > { %2473 = vmatprep.subr.bf16.mxu0 %v3433_v0  ;;  %2637 = vmatprep.subr.bf16.mxu1 %v3436_v12  ;;  %v2894_v0 = vcombine.low %v4398_v11, %v4398_v11  ;;  %v4469_v12 = vld [vmem:[%s4559_s0 + $0x18] sm:$0xff] }
 0x11c   : > { %2503 = vmatprep.mubr.bf16.mxu0 %v2895_v13  ;;  %2667 = vmatprep.mubr.bf16.mxu1 %v2895_v13  ;;  %v3523_v13 = vld [vmem:[%s4250_s5 + $0x600] ss:$16 sps:$4 sm:$0xff]   ;;  %v2897_v11 = vcombine.high %v4469_v12, %v4469_v12 }
 0x11e   : > { %2474 = vmatpush1.bf16.msra.mxu0 %v3431_v14  ;;  %2638 = vmatpush1.bf16.msra.mxu1 %v3434_v15  ;;  %v3526_v14 = vld [vmem:[%s4250_s5 + $0x608] ss:$16 sps:$4 sm:$0xff]   ;;  %v3531_v15 = vld [vmem:[%s4250_s5 + $0x624] ss:$16 sps:$4 sm:$0xff]  }
 0x11f   : > { %2475 = vmatprep.subr.bf16.mxu0 %v3439_v16  ;;  %2639 = vmatprep.subr.bf16.mxu1 %v3442_v17  ;;  %v3534_v16 = vld [vmem:[%s4250_s5 + $0x62c] ss:$16 sps:$4 sm:$0xff]   ;;  %v3529_v17 = vld [vmem:[%s4250_s5 + $0x620] ss:$16 sps:$4 sm:$0xff]  }
 0x122   : > { %2476 = vmatpush1.bf16.msra.mxu0 %v3437_v18  ;;  %2640 = vmatpush1.bf16.msra.mxu1 %v3440_v19  ;;  %v3532_v18 = vld [vmem:[%s4250_s5 + $0x628] ss:$16 sps:$4 sm:$0xff]   ;;  %v3537_v19 = vld [vmem:[%s4250_s5 + $0x644] ss:$16 sps:$4 sm:$0xff]  }
 0x123   : > { %2477 = vmatprep.subr.bf16.mxu0 %v3445_v20  ;;  %2641 = vmatprep.subr.bf16.mxu1 %v3448_v21  ;;  %v3540_v20 = vld [vmem:[%s4250_s5 + $0x64c] ss:$16 sps:$4 sm:$0xff]   ;;  %v3535_v21 = vld [vmem:[%s4250_s5 + $0x640] ss:$16 sps:$4 sm:$0xff]  }
 0x126   : > { %2478 = vmatpush1.bf16.msra.mxu0 %v3443_v22  ;;  %2642 = vmatpush1.bf16.msra.mxu1 %v3446_v23  ;;  %v3538_v22 = vld [vmem:[%s4250_s5 + $0x648] ss:$16 sps:$4 sm:$0xff]   ;;  %v3543_v23 = vld [vmem:[%s4250_s5 + $0x664] ss:$16 sps:$4 sm:$0xff]  }
 0x127   : > { %2479 = vmatprep.subr.bf16.mxu0 %v3451_v24  ;;  %2643 = vmatprep.subr.bf16.mxu1 %v3454_v25  ;;  %v3546_v24 = vld [vmem:[%s4250_s5 + $0x66c] ss:$16 sps:$4 sm:$0xff]   ;;  %v3541_v25 = vld [vmem:[%s4250_s5 + $0x660] ss:$16 sps:$4 sm:$0xff]  }
 0x12a   : > { %2480 = vmatpush1.bf16.msra.mxu0 %v3449_v26  ;;  %2644 = vmatpush1.bf16.msra.mxu1 %v3452_v27  ;;  %v3544_v26 = vld [vmem:[%s4250_s5 + $0x668] ss:$16 sps:$4 sm:$0xff]   ;;  %v3549_v27 = vld [vmem:[%s4250_s5 + $0x684] ss:$16 sps:$4 sm:$0xff]  }
 0x12b   : > { %2481 = vmatprep.subr.bf16.mxu0 %v3457_v28  ;;  %2645 = vmatprep.subr.bf16.mxu1 %v3460_v29  ;;  %v3552_v28 = vld [vmem:[%s4250_s5 + $0x68c] ss:$16 sps:$4 sm:$0xff]   ;;  %v3547_v29 = vld [vmem:[%s4250_s5 + $0x680] ss:$16 sps:$4 sm:$0xff]  }
 0x12e   : > { %2482 = vmatpush1.bf16.msra.mxu0 %v3455_v30  ;;  %2646 = vmatpush1.bf16.msra.mxu1 %v3458_v31  ;;  %v3550_v30 = vld [vmem:[%s4250_s5 + $0x688] ss:$16 sps:$4 sm:$0xff]   ;;  %v3555_v31 = vld [vmem:[%s4250_s5 + $0x6a4] ss:$16 sps:$4 sm:$0xff]  }
 0x12f   : > { %2483 = vmatprep.subr.bf16.mxu0 %v3463_v32  ;;  %2647 = vmatprep.subr.bf16.mxu1 %v3466_v33  ;;  %v3558_v32 = vld [vmem:[%s4250_s5 + $0x6ac] ss:$16 sps:$4 sm:$0xff]   ;;  %v3553_v33 = vld [vmem:[%s4250_s5 + $0x6a0] ss:$16 sps:$4 sm:$0xff]  }
 0x132   : > { %2484 = vmatpush1.bf16.msra.mxu0 %v3461_v34  ;;  %2648 = vmatpush1.bf16.msra.mxu1 %v3464_v35  ;;  %v3556_v34 = vld [vmem:[%s4250_s5 + $0x6a8] ss:$16 sps:$4 sm:$0xff]   ;;  %v3561_v35 = vld [vmem:[%s4250_s5 + $0x6c4] ss:$16 sps:$4 sm:$0xff]  }
 0x133   : > { %2485 = vmatprep.subr.bf16.mxu0 %v3469_v36  ;;  %2649 = vmatprep.subr.bf16.mxu1 %v3472_v37  ;;  %v3564_v36 = vld [vmem:[%s4250_s5 + $0x6cc] ss:$16 sps:$4 sm:$0xff]   ;;  %v3559_v37 = vld [vmem:[%s4250_s5 + $0x6c0] ss:$16 sps:$4 sm:$0xff]  }
 0x136   : > { %2486 = vmatpush1.bf16.msra.mxu0 %v3467_v38  ;;  %2650 = vmatpush1.bf16.msra.mxu1 %v3470_v39  ;;  %v3562_v38 = vld [vmem:[%s4250_s5 + $0x6c8] ss:$16 sps:$4 sm:$0xff]   ;;  %v3567_v39 = vld [vmem:[%s4250_s5 + $0x6e4] ss:$16 sps:$4 sm:$0xff]  }
 0x137   : > { %2487 = vmatprep.subr.bf16.mxu0 %v3475_v40  ;;  %2651 = vmatprep.subr.bf16.mxu1 %v3478_v41  ;;  %v3570_v40 = vld [vmem:[%s4250_s5 + $0x6ec] ss:$16 sps:$4 sm:$0xff]   ;;  %v3565_v41 = vld [vmem:[%s4250_s5 + $0x6e0] ss:$16 sps:$4 sm:$0xff]  }
 0x13a   : > { %2488 = vmatpush1.bf16.msra.mxu0 %v3473_v42  ;;  %2652 = vmatpush1.bf16.msra.mxu1 %v3476_v43  ;;  %v3568_v42 = vld [vmem:[%s4250_s5 + $0x6e8] ss:$16 sps:$4 sm:$0xff]   ;;  %v3573_v43 = vld [vmem:[%s4250_s5 + $0x704] ss:$16 sps:$4 sm:$0xff]  }
 0x13b   : > { %2489 = vmatprep.subr.bf16.mxu0 %v3481_v44  ;;  %2653 = vmatprep.subr.bf16.mxu1 %v3484_v45  ;;  %v3576_v44 = vld [vmem:[%s4250_s5 + $0x70c] ss:$16 sps:$4 sm:$0xff]   ;;  %v3571_v45 = vld [vmem:[%s4250_s5 + $0x700] ss:$16 sps:$4 sm:$0xff]  }
 0x13e   : > { %2490 = vmatpush1.bf16.msra.mxu0 %v3479_v46  ;;  %2654 = vmatpush1.bf16.msra.mxu1 %v3482_v47  ;;  %v3574_v46 = vld [vmem:[%s4250_s5 + $0x708] ss:$16 sps:$4 sm:$0xff]   ;;  %v3579_v47 = vld [vmem:[%s4250_s5 + $0x724] ss:$16 sps:$4 sm:$0xff]  }
 0x13f   : > { %2491 = vmatprep.subr.bf16.mxu0 %v3487_v48  ;;  %2655 = vmatprep.subr.bf16.mxu1 %v3490_v49  ;;  %v3582_v48 = vld [vmem:[%s4250_s5 + $0x72c] ss:$16 sps:$4 sm:$0xff]   ;;  %v3577_v49 = vld [vmem:[%s4250_s5 + $0x720] ss:$16 sps:$4 sm:$0xff]  }
 0x142   : > { %2492 = vmatpush1.bf16.msra.mxu0 %v3485_v50  ;;  %2656 = vmatpush1.bf16.msra.mxu1 %v3488_v51  ;;  %v3580_v50 = vld [vmem:[%s4250_s5 + $0x728] ss:$16 sps:$4 sm:$0xff]   ;;  %v3585_v51 = vld [vmem:[%s4250_s5 + $0x744] ss:$16 sps:$4 sm:$0xff]  }
 0x143   : > { %2493 = vmatprep.subr.bf16.mxu0 %v3493_v52  ;;  %2657 = vmatprep.subr.bf16.mxu1 %v3496_v53  ;;  %v3588_v52 = vld [vmem:[%s4250_s5 + $0x74c] ss:$16 sps:$4 sm:$0xff]   ;;  %v3583_v53 = vld [vmem:[%s4250_s5 + $0x740] ss:$16 sps:$4 sm:$0xff]  }
 0x146   : > { %2494 = vmatpush1.bf16.msra.mxu0 %v3491_v54  ;;  %2658 = vmatpush1.bf16.msra.mxu1 %v3494_v55  ;;  %v3586_v54 = vld [vmem:[%s4250_s5 + $0x748] ss:$16 sps:$4 sm:$0xff]   ;;  %v3591_v55 = vld [vmem:[%s4250_s5 + $0x764] ss:$16 sps:$4 sm:$0xff]  }
 0x147   : > { %2495 = vmatprep.subr.bf16.mxu0 %v3499_v56  ;;  %2659 = vmatprep.subr.bf16.mxu1 %v3502_v57  ;;  %v3594_v56 = vld [vmem:[%s4250_s5 + $0x76c] ss:$16 sps:$4 sm:$0xff]   ;;  %v3589_v57 = vld [vmem:[%s4250_s5 + $0x760] ss:$16 sps:$4 sm:$0xff]  }
 0x14a   : > { %2496 = vmatpush1.bf16.msra.mxu0 %v3497_v58  ;;  %2660 = vmatpush1.bf16.msra.mxu1 %v3500_v59  ;;  %v3592_v58 = vld [vmem:[%s4250_s5 + $0x768] ss:$16 sps:$4 sm:$0xff]   ;;  %v3597_v59 = vld [vmem:[%s4250_s5 + $0x784] ss:$16 sps:$4 sm:$0xff]  }
 0x14b   : > { %2497 = vmatprep.subr.bf16.mxu0 %v3505_v60  ;;  %2661 = vmatprep.subr.bf16.mxu1 %v3508_v61  ;;  %v3600_v60 = vld [vmem:[%s4250_s5 + $0x78c] ss:$16 sps:$4 sm:$0xff]   ;;  %v3595_v61 = vld [vmem:[%s4250_s5 + $0x780] ss:$16 sps:$4 sm:$0xff]  }
 0x14e   : > { %2498 = vmatpush1.bf16.msra.mxu0 %v3503_v62  ;;  %2662 = vmatpush1.bf16.msra.mxu1 %v3506_v63  ;;  %v3598_v62 = vld [vmem:[%s4250_s5 + $0x788] ss:$16 sps:$4 sm:$0xff]   ;;  %v3603_v63 = vld [vmem:[%s4250_s5 + $0x7a4] ss:$16 sps:$4 sm:$0xff]  }
 0x14f   : > { %2499 = vmatprep.subr.bf16.mxu0 %v3511_v1  ;;  %2663 = vmatprep.subr.bf16.mxu1 %v3514_v2  ;;  %v3606_v1 = vld [vmem:[%s4250_s5 + $0x7ac] ss:$16 sps:$4 sm:$0xff]   ;;  %v3601_v2 = vld [vmem:[%s4250_s5 + $0x7a0] ss:$16 sps:$4 sm:$0xff]  }
 0x152   : > { %2500 = vmatpush1.bf16.msra.mxu0 %v3509_v3  ;;  %2664 = vmatpush1.bf16.msra.mxu1 %v3512_v4  ;;  %v3604_v3 = vld [vmem:[%s4250_s5 + $0x7a8] ss:$16 sps:$4 sm:$0xff]   ;;  %v3609_v4 = vld [vmem:[%s4250_s5 + $0x7c4] ss:$16 sps:$4 sm:$0xff]  }
 0x153   : > { %2501 = vmatprep.subr.bf16.mxu0 %v3517_v5  ;;  %2665 = vmatprep.subr.bf16.mxu1 %v3520_v6  ;;  %v3612_v5 = vld [vmem:[%s4250_s5 + $0x7cc] ss:$16 sps:$4 sm:$0xff]   ;;  %v3607_v6 = vld [vmem:[%s4250_s5 + $0x7c0] ss:$16 sps:$4 sm:$0xff]  }
 0x156   : > { %2502 = vmatpush1.bf16.msra.mxu0 %v3515_v7  ;;  %2666 = vmatpush1.bf16.msra.mxu1 %v3518_v8  ;;  %v3610_v7 = vld [vmem:[%s4250_s5 + $0x7c8] ss:$16 sps:$4 sm:$0xff]   ;;  %v3615_v8 = vld [vmem:[%s4250_s5 + $0x7e4] ss:$16 sps:$4 sm:$0xff]  }
 0x157   : > { %2512 = vmatprep.subr.bf16.mxu0 %v3525_v9  ;;  %2676 = vmatprep.subr.bf16.mxu1 %v3528_v10  ;;  %v3618_v9 = vld [vmem:[%s4250_s5 + $0x7ec] ss:$16 sps:$4 sm:$0xff]   ;;  %v3613_v10 = vld [vmem:[%s4250_s5 + $0x7e0] ss:$16 sps:$4 sm:$0xff]  }
 0x159   : > { %2504 = vmatmul.mubr.bf16.vlgmr.msra.gmra.mrb[0].mxu0 %v2894_v0  ;;  %2668 = vmatmul.mubr.bf16.vlgmr.msra.gmra.mrb[0].mxu1 %v2894_v0  ;;  %v3616_v0 = vld [vmem:[%s4250_s5 + $0x7e8] ss:$16 sps:$4 sm:$0xff]  }
 0x15a   : > { %2513 = vmatpush1.bf16.msra.mxu0 %v3523_v13  ;;  %2677 = vmatpush1.bf16.msra.mxu1 %v3526_v14  ;;  %v2896_v13 = vcombine.low %v4469_v12, %v4469_v12  ;;  %v1061_v14 = vlaneseq }
 0x15b   : > { %2514 = vmatprep.subr.bf16.mxu0 %v3531_v15  ;;  %2678 = vmatprep.subr.bf16.mxu1 %v3534_v16 }
 0x15c   : > { %2544 = vmatprep.mubr.bf16.mxu0 %v2897_v11  ;;  %2708 = vmatprep.mubr.bf16.mxu1 %v2897_v11  ;;  %v1062_v15 = vshrl.u32 %v1061_v14, 7 }
 0x15e   : > { %2515 = vmatpush1.bf16.msra.mxu0 %v3529_v17  ;;  %2679 = vmatpush1.bf16.msra.mxu1 %v3532_v18  ;;  %v1063_v16 = vsub.s32 0, %v1062_v15  ;;  %v1071_v11 = vsub.s32 2, %v1062_v15  ;;  %v1059_v17 = vld [vmem:[%s783_s21] sm:$0xf]  ;;  %v1067_v18 = vsub.s32 1, %v1062_v15 }
 0x15f   : > { %2516 = vmatprep.subr.bf16.mxu0 %v3537_v19  ;;  %2680 = vmatprep.subr.bf16.mxu1 %v3540_v20  ;;  %v1075_v19 = vsub.s32 3, %v1062_v15 }
 0x160   : > { %v1064_v20 = vrot.slane %v1059_v17, %v1063_v16  ;;  %v1072_v12 = vrot.slane %v1059_v17, %v1071_v11 }
 0x162   : > { %2517 = vmatpush1.bf16.msra.mxu0 %v3535_v21  ;;  %2681 = vmatpush1.bf16.msra.mxu1 %v3538_v22  ;;  %v1068_v21 = vrot.slane %v1059_v17, %v1067_v18  ;;  %v1076_v22 = vrot.slane %v1059_v17, %v1075_v19 }
 0x163   : > { %2518 = vmatprep.subr.bf16.mxu0 %v3543_v23  ;;  %2682 = vmatprep.subr.bf16.mxu1 %v3546_v24 }
 0x166   : > { %2519 = vmatpush1.bf16.msra.mxu0 %v3541_v25  ;;  %2683 = vmatpush1.bf16.msra.mxu1 %v3544_v26 }
 0x167   : > { %2520 = vmatprep.subr.bf16.mxu0 %v3549_v27  ;;  %2684 = vmatprep.subr.bf16.mxu1 %v3552_v28 }
 0x16a   : > { %2521 = vmatpush1.bf16.msra.mxu0 %v3547_v29  ;;  %2685 = vmatpush1.bf16.msra.mxu1 %v3550_v30 }
 0x16b   : > { %2522 = vmatprep.subr.bf16.mxu0 %v3555_v31  ;;  %2686 = vmatprep.subr.bf16.mxu1 %v3558_v32 }
 0x16e   : > { %2523 = vmatpush1.bf16.msra.mxu0 %v3553_v33  ;;  %2687 = vmatpush1.bf16.msra.mxu1 %v3556_v34 }
 0x16f   : > { %2524 = vmatprep.subr.bf16.mxu0 %v3561_v35  ;;  %2688 = vmatprep.subr.bf16.mxu1 %v3564_v36 }
 0x172   : > { %2525 = vmatpush1.bf16.msra.mxu0 %v3559_v37  ;;  %2689 = vmatpush1.bf16.msra.mxu1 %v3562_v38 }
 0x173   : > { %2526 = vmatprep.subr.bf16.mxu0 %v3567_v39  ;;  %2690 = vmatprep.subr.bf16.mxu1 %v3570_v40 }
 0x176   : > { %2527 = vmatpush1.bf16.msra.mxu0 %v3565_v41  ;;  %2691 = vmatpush1.bf16.msra.mxu1 %v3568_v42 }
 0x177   : > { %2528 = vmatprep.subr.bf16.mxu0 %v3573_v43  ;;  %2692 = vmatprep.subr.bf16.mxu1 %v3576_v44 }
 0x17a   : > { %2529 = vmatpush1.bf16.msra.mxu0 %v3571_v45  ;;  %2693 = vmatpush1.bf16.msra.mxu1 %v3574_v46 }
 0x17b   : > { %2530 = vmatprep.subr.bf16.mxu0 %v3579_v47  ;;  %2694 = vmatprep.subr.bf16.mxu1 %v3582_v48 }
 0x17e   : > { %2531 = vmatpush1.bf16.msra.mxu0 %v3577_v49  ;;  %2695 = vmatpush1.bf16.msra.mxu1 %v3580_v50 }
 0x17f   : > { %2532 = vmatprep.subr.bf16.mxu0 %v3585_v51  ;;  %2696 = vmatprep.subr.bf16.mxu1 %v3588_v52 }
 0x182   : > { %2533 = vmatpush1.bf16.msra.mxu0 %v3583_v53  ;;  %2697 = vmatpush1.bf16.msra.mxu1 %v3586_v54 }
 0x183   : > { %2534 = vmatprep.subr.bf16.mxu0 %v3591_v55  ;;  %2698 = vmatprep.subr.bf16.mxu1 %v3594_v56 }
 0x186   : > { %2535 = vmatpush1.bf16.msra.mxu0 %v3589_v57  ;;  %2699 = vmatpush1.bf16.msra.mxu1 %v3592_v58 }
 0x187   : > { %2536 = vmatprep.subr.bf16.mxu0 %v3597_v59  ;;  %2700 = vmatprep.subr.bf16.mxu1 %v3600_v60 }
 0x18a   : > { %2537 = vmatpush1.bf16.msra.mxu0 %v3595_v61  ;;  %2701 = vmatpush1.bf16.msra.mxu1 %v3598_v62 }
 0x18b   : > { %2538 = vmatprep.subr.bf16.mxu0 %v3603_v63  ;;  %2702 = vmatprep.subr.bf16.mxu1 %v3606_v1 }
 0x18e   : > { %2539 = vmatpush1.bf16.msra.mxu0 %v3601_v2  ;;  %2703 = vmatpush1.bf16.msra.mxu1 %v3604_v3 }
 0x18f   : > { %2540 = vmatprep.subr.bf16.mxu0 %v3609_v4  ;;  %2704 = vmatprep.subr.bf16.mxu1 %v3612_v5 }
 0x192   : > { %2541 = vmatpush1.bf16.msra.mxu0 %v3607_v6  ;;  %2705 = vmatpush1.bf16.msra.mxu1 %v3610_v7 }
 0x193   : > { %2542 = vmatprep.subr.bf16.mxu0 %v3615_v8  ;;  %2706 = vmatprep.subr.bf16.mxu1 %v3618_v9 }
 0x196   : > { %2543 = vmatpush1.bf16.msra.mxu0 %v3613_v10  ;;  %2707 = vmatpush1.bf16.msra.mxu1 %v3616_v0 }
 0x199   : > { %2545 = vmatmul.mubr.bf16.vlgmr.msra.gmra.mrb[0].mxu0 %v2896_v13  ;;  %2709 = vmatmul.mubr.bf16.vlgmr.msra.gmra.mrb[0].mxu1 %v2896_v13 }
 0x26c   : > { %v2546_v23 = vpop.f32.mrb[0].mxu0  ;;  %v2710_v24 = vpop.f32.mrb[0].mxu1 }
 0x26d   : > { %v3161_v25 = vadd.f32 %v2546_v23, %v1064_v20  ;;  %v3163_v26 = vadd.f32 %v2710_v24, %v1072_v12  ;;  %v2548_v27 = vpop.f32.mrb[1].mxu0  ;;  %v2712_v28 = vpop.f32.mrb[1].mxu1 }
 0x26e   : > { %v3162_v29 = vadd.f32 %v2548_v27, %v1068_v21  ;;  %v3164_v30 = vadd.f32 %v2712_v28, %v1076_v22  ;;  %v2550_v31 = vpop.f32.mrb[2].mxu0  ;;  %v2714_v32 = vpop.f32.mrb[2].mxu1 }
 0x26f   : > { %v2551_v33 = vpop.f32.mrb[3].mxu0  ;;  %v2715_v34 = vpop.f32.mrb[3].mxu1 }
 0x270   : > { %v3159_v35 = vpack.c.bf16 %v3162_v29, %v3161_v25  ;;  %v3160_v36 = vpack.c.bf16 %v3164_v30, %v3163_v26 }
 0x272   : > { %2733 = vst [vmem:[%s797_s24] sm:$0xff] %v3159_v35  ;;  %2734 = vst [vmem:[%s797_s24 + $0x8] sm:$0xff] %v3160_v36 }
 0x273 PF: > { %s13_s16 = sadd.s32 1, %s3659_s16   ;;  %s4563_s12 = smov %s3647_s13 }
 0x274   : > { %p10_p10 = scmp.ge.s32.totalorder %s13_s16, 6   ;;  %s4564_s13 = smov %s3716_s20 }
 0x275   : > { %s4565_s14 = smov %s3655_s15  ;;  %s4566_s15 = smov %s4568_s17 }
 0x276   :  { %12 = sbr.rel (!%p10_p10) target bundleno = 3 (0x3), region = 96 }

// kernel: generator_forward.11
= control target key start
LH: loop header
LB: loop body
LE: loop exit
PB: predicated region body
PF: predicated region fallthrough
CT: control target
= control target key end

     0   :  { %s1081_s12 = smov 0   ;;  %s1083_s13 = smov 0   ;;  %s1159_s0 = inlined_call_operand.vmem [shape: bf16[4,32,512], index: 0, kind: input, shape index: {}]   ;;  %s1160_s1 = inlined_call_operand.vmem [shape: bf16[4,512,128], index: 1, kind: input, shape index: {}]   ;;  %s1161_s2 = inlined_call_operand.vmem [shape: f32[1,128], index: 2, kind: input, shape index: {}]   ;;  %s1162_s3 = inlined_call_operand.vmem [shape: bf16[4,32,128], index: 3, kind: output, shape index: {}]  }
   0x1   :  { %s1085_s14 = smov 0  }
   0x2 LB: > { %s32_s15 = sadd.s32 1, %s1055_s13  ;;  %p841_p0 = scmp.ge.s32.totalorder %s1059_s14, 1  ;;  %s1059_s14 = sphi %s1085_s14, %s13_s14   ;;  %s1055_s13 = sphi %s1083_s13, %s1164_s13   ;;  %s1051_s12 = sphi %s1081_s12, %s1163_s12  }
   0x3   : > { %p34_p1 = scmp.ge.s32.totalorder %s32_s15, 4  ;;  %p191_p2 = scmp.lt.s32.totalorder %s1059_s14, 5 }
   0x5   : > { %s1166_s15 = smov (%p34_p1, %s32_s15), 0  ;;  %p192_p3 = pnand %p841_p0, %p191_p2 }
   0x6   : > { %p239_p4 = scmp.lt.s32.totalorder (!%p192_p3), %s1051_s12, 3  ;;  %v848_v42 = vld [vmem:[%s1161_s2] ss:$0 sm:$0xff] (!%p192_p3) }
   0x7   : > { %195 = sbr.rel (%p192_p3) target bundleno = 283 (0x11b), region = 32 }
   0xe   : > { %s1168_s12 = smov (!%p239_p4, %s1051_s12), 3 }
   0xf   : > { %s896_s16 = sshll.u32 %s1168_s12, 8  ;;  %s895_s20 = sshll.u32 %s1168_s12, 6 }
  0x10   : > { %s1105_s19 = scalar_lea.vmem %s1160_s1, %s896_s16  ;;  %s247_s23 = scalar_lea.vmem %s1159_s0, %s895_s20 }
  0x11   : > { %v993_v0 = vld [vmem:[%s1105_s19 + $0x40] sm:$0xff]   ;;  %v997_v4 = vld [vmem:[%s1105_s19 + $0x48] sm:$0xff]   ;;  %v1001_v8 = vld [vmem:[%s1105_s19 + $0x50] sm:$0xff]   ;;  %s897_s26 = sshll.u32 %s1168_s12, 4 }
  0x12   : > { %v994_v1 = vld [vmem:[%s1105_s19 + $0xc0] sm:$0xff]   ;;  %913 = vmatprep.subr.bf16.mxu0 %v993_v0  ;;  %v998_v5 = vld [vmem:[%s1105_s19 + $0xc8] sm:$0xff]   ;;  %v1002_v9 = vld [vmem:[%s1105_s19 + $0xd0] sm:$0xff]   ;;  %s271_s29 = scalar_lea.vmem %s1162_s3, %s897_s26 }
  0x13   : > { %v995_v2 = vld [vmem:[%s1105_s19] sm:$0xff]   ;;  %941 = vmatprep.subr.bf16.mxu1 %v994_v1  ;;  %v999_v6 = vld [vmem:[%s1105_s19 + $0x8] sm:$0xff]   ;;  %v1003_v10 = vld [vmem:[%s1105_s19 + $0x10] sm:$0xff]  }
  0x14   : > { %v996_v3 = vld [vmem:[%s1105_s19 + $0x80] sm:$0xff]   ;;  %914 = vmatpush3.bf16.msra.mxu0 %v995_v2  ;;  %v1000_v7 = vld [vmem:[%s1105_s19 + $0x88] sm:$0xff]   ;;  %v1004_v11 = vld [vmem:[%s1105_s19 + $0x90] sm:$0xff]  }
  0x15   : > { %942 = vmatpush3.bf16.msra.mxu1 %v996_v3  ;;  %915 = vmatprep.subr.bf16.mxu0 %v997_v4  ;;  %v1005_v12 = vld [vmem:[%s1105_s19 + $0x58] sm:$0xff]   ;;  %v1009_v16 = vld [vmem:[%s1105_s19 + $0x60] sm:$0xff]   ;;  %v1013_v20 = vld [vmem:[%s1105_s19 + $0x68] sm:$0xff]  }
  0x16   : > { %943 = vmatprep.subr.bf16.mxu1 %v998_v5  ;;  %v1006_v13 = vld [vmem:[%s1105_s19 + $0xd8] sm:$0xff]   ;;  %v1010_v17 = vld [vmem:[%s1105_s19 + $0xe0] sm:$0xff]   ;;  %v1014_v21 = vld [vmem:[%s1105_s19 + $0xe8] sm:$0xff]  }
  0x17   : > { %v1007_v14 = vld [vmem:[%s1105_s19 + $0x18] sm:$0xff]   ;;  %v1011_v18 = vld [vmem:[%s1105_s19 + $0x20] sm:$0xff]   ;;  %v1015_v22 = vld [vmem:[%s1105_s19 + $0x28] sm:$0xff]  }
  0x18   : > { %916 = vmatpush3.bf16.msra.mxu0 %v999_v6  ;;  %v1008_v15 = vld [vmem:[%s1105_s19 + $0x98] sm:$0xff]   ;;  %v1012_v19 = vld [vmem:[%s1105_s19 + $0xa0] sm:$0xff]   ;;  %v1016_v23 = vld [vmem:[%s1105_s19 + $0xa8] sm:$0xff]  }
  0x19   : > { %944 = vmatpush3.bf16.msra.mxu1 %v1000_v7  ;;  %917 = vmatprep.subr.bf16.mxu0 %v1001_v8  ;;  %v1017_v24 = vld [vmem:[%s1105_s19 + $0x70] sm:$0xff]   ;;  %v1021_v28 = vld [vmem:[%s1105_s19 + $0x78] sm:$0xff]  }
  0x1a   : > { %945 = vmatprep.subr.bf16.mxu1 %v1002_v9  ;;  %v1018_v25 = vld [vmem:[%s1105_s19 + $0xf0] sm:$0xff]   ;;  %v1022_v29 = vld [vmem:[%s1105_s19 + $0xf8] sm:$0xff]  }
  0x1b   : > { %v1019_v26 = vld [vmem:[%s1105_s19 + $0x30] sm:$0xff]   ;;  %v1023_v30 = vld [vmem:[%s1105_s19 + $0x38] sm:$0xff]  }
  0x1c   : > { %918 = vmatpush3.bf16.msra.mxu0 %v1003_v10  ;;  %v1020_v27 = vld [vmem:[%s1105_s19 + $0xb0] sm:$0xff]   ;;  %v1024_v31 = vld [vmem:[%s1105_s19 + $0xb8] sm:$0xff]  }
  0x1d   : > { %946 = vmatpush3.bf16.msra.mxu1 %v1004_v11  ;;  %919 = vmatprep.subr.bf16.mxu0 %v1005_v12  ;;  %v1025_v32 = vld [vmem:[%s247_s23] ss:$16 sps:$4 sm:$0xff]   ;;  %v1027_v33 = vld [vmem:[%s247_s23 + $0x4] ss:$16 sps:$4 sm:$0xff]   ;;  %v1028_v34 = vld [vmem:[%s247_s23 + $0x8] ss:$16 sps:$4 sm:$0xff]  }
  0x1e   : > { %947 = vmatprep.subr.bf16.mxu1 %v1006_v13  ;;  %v1030_v35 = vld [vmem:[%s247_s23 + $0xc] ss:$16 sps:$4 sm:$0xff]   ;;  %617 = vmatprep.mubr.bf16.mxu0 %v1027_v33  ;;  %v1031_v36 = vld [vmem:[%s247_s23 + $0x24] ss:$16 sps:$4 sm:$0xff]   ;;  %v1035_v38 = vld [vmem:[%s247_s23 + $0x20] ss:$16 sps:$4 sm:$0xff]  }
  0x1f   : > { %666 = vmatprep.mubr.bf16.mxu1 %v1030_v35  ;;  %v1033_v37 = vld [vmem:[%s247_s23 + $0x2c] ss:$16 sps:$4 sm:$0xff]   ;;  %v1036_v39 = vld [vmem:[%s247_s23 + $0x28] ss:$16 sps:$4 sm:$0xff]  }
  0x20   : > { %920 = vmatpush3.bf16.msra.mxu0 %v1007_v14 }
  0x21   : > { %948 = vmatpush3.bf16.msra.mxu1 %v1008_v15  ;;  %921 = vmatprep.subr.bf16.mxu0 %v1009_v16 }
  0x22   : > { %949 = vmatprep.subr.bf16.mxu1 %v1010_v17 }
  0x24   : > { %922 = vmatpush3.bf16.msra.mxu0 %v1011_v18 }
  0x25   : > { %950 = vmatpush3.bf16.msra.mxu1 %v1012_v19  ;;  %923 = vmatprep.subr.bf16.mxu0 %v1013_v20 }
  0x26   : > { %951 = vmatprep.subr.bf16.mxu1 %v1014_v21 }
  0x28   : > { %924 = vmatpush3.bf16.msra.mxu0 %v1015_v22 }
  0x29   : > { %952 = vmatpush3.bf16.msra.mxu1 %v1016_v23  ;;  %925 = vmatprep.subr.bf16.mxu0 %v1017_v24 }
  0x2a   : > { %953 = vmatprep.subr.bf16.mxu1 %v1018_v25 }
  0x2c   : > { %926 = vmatpush3.bf16.msra.mxu0 %v1019_v26 }
  0x2d   : > { %954 = vmatpush3.bf16.msra.mxu1 %v1020_v27  ;;  %927 = vmatprep.subr.bf16.mxu0 %v1021_v28 }
  0x2e   : > { %955 = vmatprep.subr.bf16.mxu1 %v1022_v29 }
  0x30   : > { %928 = vmatpush3.bf16.msra.mxu0 %v1023_v30 }
  0x31   : > { %956 = vmatpush3.bf16.msra.mxu1 %v1024_v31 }
  0x33   : > { %618 = vmatmul.mubr.bf16.vlgmr.msra.gmra.mrb[0].mxu0 %v1025_v32 }
  0x34   : > { %667 = vmatmul.mubr.bf16.vlgmr.msra.gmra.mrb[0].mxu1 %v1028_v34  ;;  %625 = vmatprep.mubr.bf16.mxu0 %v1031_v36 }
  0x35   : > { %674 = vmatprep.mubr.bf16.mxu1 %v1033_v37 }
  0x3b   : > { %626 = vmatmul.mubr.bf16.gmra.mrb[4].mxu0 %v1035_v38 }
  0x3c   : > { %675 = vmatmul.mubr.bf16.gmra.mrb[4].mxu1 %v1036_v39 }
 0x106   : > { %v929_v40 = vpop.f32.mrb[0].mxu0 }
 0x107   : > { %v957_v41 = vpop.f32.mrb[0].mxu1  ;;  %v930_v43 = vpop.f32.mrb[1].mxu0 }
 0x108   : > { %v931_v44 = vadd.f32 %v930_v43, %v929_v40  ;;  %v958_v45 = vpop.f32.mrb[1].mxu1  ;;  %v932_v46 = vpop.f32.mrb[2].mxu0 }
 0x109   : > { %v959_v47 = vadd.f32 %v958_v45, %v957_v41  ;;  %v960_v48 = vpop.f32.mrb[2].mxu1  ;;  %v933_v49 = vpop.f32.mrb[3].mxu0 }
 0x10a   : > { %v620_v50 = vadd.f32 %v931_v44, %v848_v42  ;;  %v934_v51 = vadd.f32 %v933_v49, %v932_v46  ;;  %v961_v52 = vpop.f32.mrb[3].mxu1 }
 0x10b   : > { %v962_v53 = vadd.f32 %v961_v52, %v960_v48 }
 0x10c   : > { %v669_v54 = vadd.f32 %v959_v47, %v620_v50  ;;  %v623_v55 = vadd.f32 %v934_v51, %v848_v42 }
 0x10e   : > { %v672_v56 = vadd.f32 %v962_v53, %v623_v55  ;;  %v935_v57 = vpop.f32.mrb[4].mxu0 }
 0x10f   : > { %v963_v58 = vpop.f32.mrb[4].mxu1  ;;  %v936_v59 = vpop.f32.mrb[5].mxu0 }
 0x110   : > { %v905_v60 = vpack.c.bf16 %v672_v56, %v669_v54  ;;  %v937_v61 = vadd.f32 %v936_v59, %v935_v57  ;;  %v964_v62 = vpop.f32.mrb[5].mxu1  ;;  %v938_v63 = vpop.f32.mrb[6].mxu0 }
 0x111   : > { %v965_v0 = vadd.f32 %v964_v62, %v963_v58  ;;  %v966_v1 = vpop.f32.mrb[6].mxu1  ;;  %v939_v2 = vpop.f32.mrb[7].mxu0 }
 0x112   : > { %906 = vst [vmem:[%s271_s29] sm:$0xff] %v905_v60   ;;  %v628_v3 = vadd.f32 %v937_v61, %v848_v42  ;;  %v940_v4 = vadd.f32 %v939_v2, %v938_v63  ;;  %v967_v5 = vpop.f32.mrb[7].mxu1 }
 0x113   : > { %v968_v6 = vadd.f32 %v967_v5, %v966_v1 }
 0x114   : > { %v677_v7 = vadd.f32 %v965_v0, %v628_v3  ;;  %v631_v8 = vadd.f32 %v940_v4, %v848_v42 }
 0x116   : > { %v680_v9 = vadd.f32 %v968_v6, %v631_v8 }
 0x118   : > { %v910_v10 = vpack.c.bf16 %v680_v9, %v677_v7 }
 0x11a   : > { %912 = vst [vmem:[%s271_s29 + $0x8] sm:$0xff] %v910_v10  }
 0x11b PF: > { %s13_s14 = sadd.s32 1, %s1059_s14   ;;  %s1163_s12 = smov %s1055_s13 }
 0x11c   : > { %p10_p5 = scmp.ge.s32.totalorder %s13_s14, 6   ;;  %s1164_s13 = smov %s1166_s15 }
 0x11e   :  { %12 = sbr.rel (!%p10_p5) target bundleno = 2 (0x2), region = 68 }

// kernel: generator_forward.12
= control target key start
LH: loop header
LB: loop body
LE: loop exit
PB: predicated region body
PF: predicated region fallthrough
CT: control target
= control target key end

     0   :  { %s541_s0 = inlined_call_operand.vmem [shape: bf16[128,128], index: 0, kind: input, shape index: {}]   ;;  %s542_s1 = inlined_call_operand.vmem [shape: f32[1,128], index: 1, kind: input, shape index: {}]   ;;  %s543_s2 = inlined_call_operand.vmem [shape: f32[1,128], index: 2, kind: input, shape index: {}]   ;;  %s544_s3 = inlined_call_operand.vmem [shape: bf16[128,128], index: 3, kind: output, shape index: {}]  }
   0x1   :  { %v322_v0 = vld [vmem:[%s541_s0] sm:$0xff]   ;;  %v393_v1 = vld [vmem:[%s541_s0 + $0x8] sm:$0xff]   ;;  %v394_v5 = vld [vmem:[%s541_s0 + $0x10] sm:$0xff]  }
   0x2   :  { %v323_v2 = vunpack.c.l.bf16 %v322_v0  ;;  %v324_v3 = vunpack.c.h.bf16 %v322_v0  ;;  %v327_v4 = vunpack.c.l.bf16 %v393_v1  ;;  %v328_v6 = vunpack.c.h.bf16 %v393_v1  ;;  %v395_v10 = vld [vmem:[%s541_s0 + $0x18] sm:$0xff]   ;;  %v396_v15 = vld [vmem:[%s541_s0 + $0x20] sm:$0xff]   ;;  %v397_v20 = vld [vmem:[%s541_s0 + $0x28] sm:$0xff]  }
   0x3   :  { %v331_v8 = vunpack.c.l.bf16 %v394_v5  ;;  %v332_v11 = vunpack.c.h.bf16 %v394_v5  ;;  %v335_v13 = vunpack.c.l.bf16 %v395_v10  ;;  %v336_v16 = vunpack.c.h.bf16 %v395_v10  ;;  %v398_v25 = vld [vmem:[%s541_s0 + $0x30] sm:$0xff]   ;;  %v399_v30 = vld [vmem:[%s541_s0 + $0x38] sm:$0xff]  }
   0x4   :  { %v46_v7 = vadd.f32 %v324_v3, %v323_v2  ;;  %v339_v18 = vunpack.c.l.bf16 %v396_v15  ;;  %v340_v21 = vunpack.c.h.bf16 %v396_v15  ;;  %v343_v23 = vunpack.c.l.bf16 %v397_v20 }
   0x5   :  { %v344_v26 = vunpack.c.h.bf16 %v397_v20  ;;  %v347_v28 = vunpack.c.l.bf16 %v398_v25  ;;  %v348_v31 = vunpack.c.h.bf16 %v398_v25  ;;  %v351_v33 = vunpack.c.l.bf16 %v399_v30 }
   0x6   :  { %v47_v9 = vadd.f32 %v327_v4, %v46_v7  ;;  %v352_v35 = vunpack.c.h.bf16 %v399_v30 }
   0x8   :  { %v48_v12 = vadd.f32 %v328_v6, %v47_v9 }
   0xa   :  { %v49_v14 = vadd.f32 %v331_v8, %v48_v12 }
   0xc   :  { %v50_v17 = vadd.f32 %v332_v11, %v49_v14 }
   0xe   :  { %v51_v19 = vadd.f32 %v335_v13, %v50_v17 }
  0x10   :  { %v52_v22 = vadd.f32 %v336_v16, %v51_v19 }
  0x12   :  { %v53_v24 = vadd.f32 %v339_v18, %v52_v22 }
  0x14   :  { %v54_v27 = vadd.f32 %v340_v21, %v53_v24 }
  0x16   :  { %v55_v29 = vadd.f32 %v343_v23, %v54_v27 }
  0x18   :  { %v56_v32 = vadd.f32 %v344_v26, %v55_v29 }
  0x1a   :  { %v57_v34 = vadd.f32 %v347_v28, %v56_v32 }
  0x1c   :  { %v58_v36 = vadd.f32 %v348_v31, %v57_v34 }
  0x1e   :  { %v59_v37 = vadd.f32 %v351_v33, %v58_v36 }
  0x20   :  { %v60_v38 = vadd.f32 %v352_v35, %v59_v37 }
  0x22   :  { %v61_v39 = vrot.slane %v60_v38, 4 }
  0x24   :  { %v62_v40 = vadd.f32 %v61_v39, %v60_v38  ;;  %v287_v38 = vld [vmem:[%s542_s1] ss:$0 sm:$0xff] }
  0x26   :  { %v63_v41 = vrot.slane %v62_v40, 2 }
  0x28   :  { %v64_v42 = vadd.f32 %v63_v41, %v62_v40 }
  0x2a   :  { %v65_v43 = vrot.slane %v64_v42, 1 }
  0x2c   :  { %v66_v44 = vadd.f32 %v65_v43, %v64_v42  ;;  %v491_v43 = vld [vmem:[%s543_s2] ss:$0 sm:$0xff] }
  0x2e   :  { %v68_v45 = vmul.f32 0.0078125, %v66_v44 }
  0x30   :  { %v69_v46 = vsub.f32 %v323_v2, %v68_v45  ;;  %v70_v47 = vsub.f32 %v324_v3, %v68_v45  ;;  %v71_v48 = vsub.f32 %v327_v4, %v68_v45  ;;  %v72_v49 = vsub.f32 %v328_v6, %v68_v45 }
  0x31   :  { %v73_v52 = vsub.f32 %v331_v8, %v68_v45  ;;  %v74_v54 = vsub.f32 %v332_v11, %v68_v45  ;;  %v75_v57 = vsub.f32 %v335_v13, %v68_v45  ;;  %v76_v60 = vsub.f32 %v336_v16, %v68_v45 }
  0x32   :  { %v85_v50 = vmul.f32 %v69_v46, %v69_v46  ;;  %v86_v51 = vmul.f32 %v70_v47, %v70_v47  ;;  %v87_v53 = vmul.f32 %v71_v48, %v71_v48  ;;  %v88_v55 = vmul.f32 %v72_v49, %v72_v49 }
  0x33   :  { %v89_v58 = vmul.f32 %v73_v52, %v73_v52  ;;  %v90_v61 = vmul.f32 %v74_v54, %v74_v54  ;;  %v453_v63 = vsub.f32 %v339_v18, %v68_v45  ;;  %v91_v0 = vmul.f32 %v75_v57, %v75_v57 }
  0x34   :  { %v101_v56 = vadd.f32 %v86_v51, %v85_v50  ;;  %v455_v2 = vsub.f32 %v340_v21, %v68_v45  ;;  %v92_v3 = vmul.f32 %v76_v60, %v76_v60  ;;  %v457_v5 = vsub.f32 %v343_v23, %v68_v45 }
  0x35   :  { %v93_v6 = vmul.f32 %v453_v63, %v453_v63  ;;  %v461_v8 = vsub.f32 %v344_v26, %v68_v45  ;;  %v465_v11 = vsub.f32 %v347_v28, %v68_v45  ;;  %v469_v14 = vsub.f32 %v348_v31, %v68_v45 }
  0x36   :  { %v102_v59 = vadd.f32 %v101_v56, %v87_v53  ;;  %v94_v9 = vmul.f32 %v455_v2, %v455_v2  ;;  %v95_v12 = vmul.f32 %v457_v5, %v457_v5  ;;  %v473_v17 = vsub.f32 %v351_v33, %v68_v45 }
  0x37   :  { %v96_v15 = vmul.f32 %v461_v8, %v461_v8  ;;  %v97_v18 = vmul.f32 %v465_v11, %v465_v11  ;;  %v477_v20 = vsub.f32 %v352_v35, %v68_v45  ;;  %v98_v21 = vmul.f32 %v469_v14, %v469_v14 }
  0x38   :  { %v103_v62 = vadd.f32 %v102_v59, %v88_v55  ;;  %v99_v23 = vmul.f32 %v473_v17, %v473_v17 }
  0x39   :  { %v100_v25 = vmul.f32 %v477_v20, %v477_v20 }
  0x3a   :  { %v104_v1 = vadd.f32 %v103_v62, %v89_v58 }
  0x3c   :  { %v105_v4 = vadd.f32 %v104_v1, %v90_v61 }
  0x3e   :  { %v106_v7 = vadd.f32 %v105_v4, %v91_v0 }
  0x40   :  { %v107_v10 = vadd.f32 %v106_v7, %v92_v3 }
  0x42   :  { %v108_v13 = vadd.f32 %v107_v10, %v93_v6 }
  0x44   :  { %v109_v16 = vadd.f32 %v108_v13, %v94_v9 }
  0x46   :  { %v110_v19 = vadd.f32 %v109_v16, %v95_v12 }
  0x48   :  { %v111_v22 = vadd.f32 %v110_v19, %v96_v15 }
  0x4a   :  { %v112_v24 = vadd.f32 %v111_v22, %v97_v18 }
  0x4c   :  { %v113_v26 = vadd.f32 %v112_v24, %v98_v21 }
  0x4e   :  { %v114_v27 = vadd.f32 %v113_v26, %v99_v23 }
  0x50   :  { %v115_v28 = vadd.f32 %v114_v27, %v100_v25 }
  0x52   :  { %v116_v29 = vrot.slane %v115_v28, 4 }
  0x54   :  { %v117_v30 = vadd.f32 %v116_v29, %v115_v28 }
  0x56   :  { %v118_v31 = vrot.slane %v117_v30, 2 }
  0x58   :  { %v119_v32 = vadd.f32 %v118_v31, %v117_v30 }
  0x5a   :  { %v120_v33 = vrot.slane %v119_v32, 1 }
  0x5c   :  { %v121_v34 = vadd.f32 %v120_v33, %v119_v32 }
  0x5e   :  { %v122_v35 = vmul.f32 0.0078125, %v121_v34 }
  0x60   :  { %v123_v36 = vadd.f32 1e-05, %v122_v35 }
  0x62   :  { %407 = vrsqrt.f32 %v123_v36 }
  0x6c   :  { %v408_v37 = vpop.eup %407 }
  0x6d   :  { %v125_v39 = vmul.f32 %v408_v37, %v69_v46  ;;  %v126_v40 = vmul.f32 %v408_v37, %v70_v47  ;;  %v127_v41 = vmul.f32 %v408_v37, %v71_v48  ;;  %v128_v42 = vmul.f32 %v408_v37, %v72_v49 }
  0x6e   :  { %v129_v44 = vmul.f32 %v408_v37, %v73_v52  ;;  %v130_v45 = vmul.f32 %v408_v37, %v74_v54  ;;  %v131_v50 = vmul.f32 %v408_v37, %v75_v57  ;;  %v132_v51 = vmul.f32 %v408_v37, %v76_v60 }
  0x6f   :  { %v148_v53 = vmul.f32 %v287_v38, %v125_v39  ;;  %v149_v55 = vmul.f32 %v287_v38, %v126_v40  ;;  %v150_v56 = vmul.f32 %v287_v38, %v127_v41  ;;  %v151_v58 = vmul.f32 %v287_v38, %v128_v42 }
  0x70   :  { %v152_v59 = vmul.f32 %v287_v38, %v129_v44  ;;  %v153_v61 = vmul.f32 %v287_v38, %v130_v45  ;;  %v154_v62 = vmul.f32 %v287_v38, %v131_v50  ;;  %v155_v46 = vmul.f32 %v287_v38, %v132_v51 }
  0x71   :  { %v171_v47 = vadd.f32 %v491_v43, %v148_v53  ;;  %v172_v48 = vadd.f32 %v491_v43, %v149_v55  ;;  %v173_v49 = vadd.f32 %v491_v43, %v150_v56  ;;  %v174_v0 = vadd.f32 %v491_v43, %v151_v58 }
  0x72   :  { %v175_v52 = vadd.f32 %v491_v43, %v152_v59  ;;  %v176_v54 = vadd.f32 %v491_v43, %v153_v61  ;;  %v177_v57 = vadd.f32 %v491_v43, %v154_v62  ;;  %v178_v60 = vadd.f32 %v491_v43, %v155_v46 }
  0x73   :  { %v187_v1 = vmax.f32 %v171_v47, 0.0  ;;  %v188_v3 = vmax.f32 %v172_v48, 0.0  ;;  %v189_v4 = vmax.f32 %v173_v49, 0.0  ;;  %v190_v6 = vmax.f32 %v174_v0, 0.0 }
  0x74   :  { %v191_v7 = vmax.f32 %v175_v52, 0.0  ;;  %v192_v9 = vmax.f32 %v176_v54, 0.0  ;;  %v193_v10 = vmax.f32 %v177_v57, 0.0  ;;  %v194_v12 = vmax.f32 %v178_v60, 0.0 }
  0x75   :  { %v356_v13 = vpack.c.bf16 %v188_v3, %v187_v1  ;;  %v361_v15 = vpack.c.bf16 %v190_v6, %v189_v4  ;;  %v133_v16 = vmul.f32 %v408_v37, %v453_v63  ;;  %v134_v18 = vmul.f32 %v408_v37, %v455_v2 }
  0x76   :  { %v366_v19 = vpack.c.bf16 %v192_v9, %v191_v7  ;;  %v371_v21 = vpack.c.bf16 %v194_v12, %v193_v10  ;;  %v135_v22 = vmul.f32 %v408_v37, %v457_v5  ;;  %v136_v23 = vmul.f32 %v408_v37, %v461_v8 }
  0x77   :  { %357 = vst [vmem:[%s544_s3] sm:$0xff] %v356_v13   ;;  %400 = vst [vmem:[%s544_s3 + $0x8] sm:$0xff] %v361_v15   ;;  %v156_v24 = vmul.f32 %v287_v38, %v133_v16  ;;  %v157_v25 = vmul.f32 %v287_v38, %v134_v18  ;;  %v137_v63 = vmul.f32 %v408_v37, %v465_v11 }
  0x78   :  { %v138_v2 = vmul.f32 %v408_v37, %v469_v14  ;;  %401 = vst [vmem:[%s544_s3 + $0x10] sm:$0xff] %v366_v19   ;;  %402 = vst [vmem:[%s544_s3 + $0x18] sm:$0xff] %v371_v21   ;;  %v158_v5 = vmul.f32 %v287_v38, %v135_v22  ;;  %v159_v8 = vmul.f32 %v287_v38, %v136_v23 }
  0x79   :  { %v139_v26 = vmul.f32 %v408_v37, %v473_v17  ;;  %v140_v27 = vmul.f32 %v408_v37, %v477_v20  ;;  %v179_v28 = vadd.f32 %v491_v43, %v156_v24  ;;  %v180_v11 = vadd.f32 %v491_v43, %v157_v25 }
  0x7a   :  { %v160_v29 = vmul.f32 %v287_v38, %v137_v63  ;;  %v161_v14 = vmul.f32 %v287_v38, %v138_v2  ;;  %v181_v30 = vadd.f32 %v491_v43, %v158_v5  ;;  %v182_v31 = vadd.f32 %v491_v43, %v159_v8 }
  0x7b   :  { %v162_v32 = vmul.f32 %v287_v38, %v139_v26  ;;  %v163_v33 = vmul.f32 %v287_v38, %v140_v27  ;;  %v195_v34 = vmax.f32 %v179_v28, 0.0  ;;  %v196_v35 = vmax.f32 %v180_v11, 0.0 }
  0x7c   :  { %v183_v36 = vadd.f32 %v491_v43, %v160_v29  ;;  %v184_v17 = vadd.f32 %v491_v43, %v161_v14  ;;  %v197_v39 = vmax.f32 %v181_v30, 0.0  ;;  %v198_v20 = vmax.f32 %v182_v31, 0.0 }
  0x7d   :  { %v185_v37 = vadd.f32 %v491_v43, %v162_v32  ;;  %v186_v40 = vadd.f32 %v491_v43, %v163_v33  ;;  %v376_v41 = vpack.c.bf16 %v196_v35, %v195_v34 }
  0x7e   :  { %v199_v42 = vmax.f32 %v183_v36, 0.0  ;;  %v200_v44 = vmax.f32 %v184_v17, 0.0  ;;  %v381_v45 = vpack.c.bf16 %v198_v20, %v197_v39 }
  0x7f   :  { %v201_v50 = vmax.f32 %v185_v37, 0.0  ;;  %v202_v51 = vmax.f32 %v186_v40, 0.0  ;;  %403 = vst [vmem:[%s544_s3 + $0x20] sm:$0xff] %v376_v41  }
  0x80   :  { %v386_v38 = vpack.c.bf16 %v200_v44, %v199_v42  ;;  %404 = vst [vmem:[%s544_s3 + $0x28] sm:$0xff] %v381_v45  }
  0x81   :  { %v391_v53 = vpack.c.bf16 %v202_v51, %v201_v50 }
  0x82   :  { %405 = vst [vmem:[%s544_s3 + $0x30] sm:$0xff] %v386_v38  }
  0x83   :  { %406 = vst [vmem:[%s544_s3 + $0x38] sm:$0xff] %v391_v53  }

// kernel: generator_forward.13
= control target key start
LH: loop header
LB: loop body
LE: loop exit
PB: predicated region body
PF: predicated region fallthrough
CT: control target
= control target key end

     0   :  { %s1037_s12 = smov 0   ;;  %s1039_s13 = smov 0   ;;  %s1153_s0 = inlined_call_operand.vmem [shape: bf16[4,128,256], index: 0, kind: input, shape index: {}]   ;;  %s1154_s1 = inlined_call_operand.vmem [shape: bf16[4,256,128], index: 1, kind: input, shape index: {}]   ;;  %s1155_s2 = inlined_call_operand.vmem [shape: f32[1,128], index: 2, kind: input, shape index: {}]   ;;  %s1156_s3 = inlined_call_operand.vmem [shape: f32[4,128,128], index: 3, kind: output, shape index: {}]  }
   0x1   :  { %s1041_s14 = smov 0  }
   0x2 LB: > { %s32_s15 = sadd.s32 1, %s1011_s13  ;;  %p772_p0 = scmp.ge.s32.totalorder %s1015_s14, 1  ;;  %s1015_s14 = sphi %s1041_s14, %s13_s14   ;;  %s1011_s13 = sphi %s1039_s13, %s1158_s13   ;;  %s1007_s12 = sphi %s1037_s12, %s1157_s12  }
   0x3   : > { %p34_p1 = scmp.ge.s32.totalorder %s32_s15, 4  ;;  %p191_p2 = scmp.lt.s32.totalorder %s1015_s14, 5 }
   0x5   : > { %s1160_s15 = smov (%p34_p1, %s32_s15), 0  ;;  %p192_p3 = pnand %p772_p0, %p191_p2 }
   0x6   : > { %p239_p4 = scmp.lt.s32.totalorder (!%p192_p3), %s1007_s12, 3  ;;  %v1104_v34 = vld [vmem:[%s1155_s2] ss:$0 sm:$0xff] (!%p192_p3) }
   0x7   : > { %195 = sbr.rel (%p192_p3) target bundleno = 308 (0x134), region = 32 }
   0xe   : > { %s1162_s12 = smov (!%p239_p4, %s1007_s12), 3 }
   0xf   : > { %s1055_s16 = sshll.u32 %s1162_s12, 7 }
  0x10   : > { %s1061_s19 = scalar_lea.vmem %s1154_s1, %s1055_s16  ;;  %s1076_s22 = scalar_lea.vmem %s1153_s0, %s1055_s16 }
  0x11   : > { %v921_v0 = vld [vmem:[%s1061_s19 + $0x40] sm:$0xff]   ;;  %v923_v2 = vld [vmem:[%s1061_s19 + $0x48] sm:$0xff]   ;;  %v925_v4 = vld [vmem:[%s1061_s19 + $0x50] sm:$0xff]   ;;  %s1116_s27 = scalar_lea.vmem %s1156_s3, %s1055_s16 }
  0x12   : > { %v922_v1 = vld [vmem:[%s1061_s19] sm:$0xff]   ;;  %817 = vmatprep.subr.bf16.mxu0 %v921_v0  ;;  %881 = vmatprep.subr.bf16.mxu1 %v921_v0  ;;  %v924_v3 = vld [vmem:[%s1061_s19 + $0x8] sm:$0xff]   ;;  %v926_v5 = vld [vmem:[%s1061_s19 + $0x10] sm:$0xff]  }
  0x13   : > { %818 = vmatpush3.bf16.msra.mxu0 %v922_v1  ;;  %889 = vmatpush3.bf16.msra.mxu1 %v922_v1  ;;  %v927_v6 = vld [vmem:[%s1061_s19 + $0x58] sm:$0xff]   ;;  %v929_v8 = vld [vmem:[%s1061_s19 + $0x60] sm:$0xff]   ;;  %v931_v10 = vld [vmem:[%s1061_s19 + $0x68] sm:$0xff]  }
  0x14   : > { %819 = vmatprep.subr.bf16.mxu0 %v923_v2  ;;  %882 = vmatprep.subr.bf16.mxu1 %v923_v2  ;;  %v928_v7 = vld [vmem:[%s1061_s19 + $0x18] sm:$0xff]   ;;  %v930_v9 = vld [vmem:[%s1061_s19 + $0x20] sm:$0xff]   ;;  %v932_v13 = vld [vmem:[%s1061_s19 + $0x28] sm:$0xff]  }
  0x15   : > { %v939_v11 = vld [vmem:[%s1076_s22 + $0x4] ss:$8 sps:$4 sm:$0xff]   ;;  %v933_v14 = vld [vmem:[%s1061_s19 + $0x70] sm:$0xff]   ;;  %v935_v16 = vld [vmem:[%s1061_s19 + $0x78] sm:$0xff]  }
  0x16   : > { %v942_v12 = vld [vmem:[%s1076_s22 + $0x44] ss:$8 sps:$4 sm:$0xff]   ;;  %537 = vmatprep.mubr.bf16.mxu0 %v939_v11  ;;  %v934_v15 = vld [vmem:[%s1061_s19 + $0x30] sm:$0xff]   ;;  %v936_v17 = vld [vmem:[%s1061_s19 + $0x38] sm:$0xff]  }
  0x17   : > { %820 = vmatpush3.bf16.msra.mxu0 %v924_v3  ;;  %890 = vmatpush3.bf16.msra.mxu1 %v924_v3  ;;  %v937_v18 = vld [vmem:[%s1076_s22] ss:$8 sps:$4 sm:$0xff]   ;;  %v943_v20 = vld [vmem:[%s1076_s22 + $0x14] ss:$8 sps:$4 sm:$0xff]   ;;  %v947_v22 = vld [vmem:[%s1076_s22 + $0x10] ss:$8 sps:$4 sm:$0xff]  }
  0x18   : > { %821 = vmatprep.subr.bf16.mxu0 %v925_v4  ;;  %883 = vmatprep.subr.bf16.mxu1 %v925_v4  ;;  %v940_v19 = vld [vmem:[%s1076_s22 + $0x40] ss:$8 sps:$4 sm:$0xff]   ;;  %v945_v21 = vld [vmem:[%s1076_s22 + $0x54] ss:$8 sps:$4 sm:$0xff]   ;;  %v948_v23 = vld [vmem:[%s1076_s22 + $0x50] ss:$8 sps:$4 sm:$0xff]  }
  0x19   : > { %569 = vmatprep.mubr.bf16.mxu1 %v942_v12  ;;  %v949_v24 = vld [vmem:[%s1076_s22 + $0x24] ss:$8 sps:$4 sm:$0xff]   ;;  %v953_v26 = vld [vmem:[%s1076_s22 + $0x20] ss:$8 sps:$4 sm:$0xff]   ;;  %v955_v28 = vld [vmem:[%s1076_s22 + $0x34] ss:$8 sps:$4 sm:$0xff]  }
  0x1a   : > { %v951_v25 = vld [vmem:[%s1076_s22 + $0x64] ss:$8 sps:$4 sm:$0xff]   ;;  %v954_v27 = vld [vmem:[%s1076_s22 + $0x60] ss:$8 sps:$4 sm:$0xff]   ;;  %v957_v29 = vld [vmem:[%s1076_s22 + $0x74] ss:$8 sps:$4 sm:$0xff]  }
  0x1b   : > { %822 = vmatpush3.bf16.msra.mxu0 %v926_v5  ;;  %891 = vmatpush3.bf16.msra.mxu1 %v926_v5  ;;  %v959_v30 = vld [vmem:[%s1076_s22 + $0x30] ss:$8 sps:$4 sm:$0xff]  }
  0x1c   : > { %823 = vmatprep.subr.bf16.mxu0 %v927_v6  ;;  %884 = vmatprep.subr.bf16.mxu1 %v927_v6  ;;  %v960_v31 = vld [vmem:[%s1076_s22 + $0x70] ss:$8 sps:$4 sm:$0xff]  }
  0x1f   : > { %824 = vmatpush3.bf16.msra.mxu0 %v928_v7  ;;  %892 = vmatpush3.bf16.msra.mxu1 %v928_v7 }
  0x20   : > { %825 = vmatprep.subr.bf16.mxu0 %v929_v8  ;;  %885 = vmatprep.subr.bf16.mxu1 %v929_v8 }
  0x23   : > { %826 = vmatpush3.bf16.msra.mxu0 %v930_v9  ;;  %893 = vmatpush3.bf16.msra.mxu1 %v930_v9 }
  0x24   : > { %827 = vmatprep.subr.bf16.mxu0 %v931_v10  ;;  %886 = vmatprep.subr.bf16.mxu1 %v931_v10 }
  0x27   : > { %828 = vmatpush3.bf16.msra.mxu0 %v932_v13  ;;  %894 = vmatpush3.bf16.msra.mxu1 %v932_v13 }
  0x28   : > { %829 = vmatprep.subr.bf16.mxu0 %v933_v14  ;;  %887 = vmatprep.subr.bf16.mxu1 %v933_v14 }
  0x2b   : > { %830 = vmatpush3.bf16.msra.mxu0 %v934_v15  ;;  %895 = vmatpush3.bf16.msra.mxu1 %v934_v15 }
  0x2c   : > { %831 = vmatprep.subr.bf16.mxu0 %v935_v16  ;;  %888 = vmatprep.subr.bf16.mxu1 %v935_v16 }
  0x2f   : > { %832 = vmatpush3.bf16.msra.mxu0 %v936_v17  ;;  %896 = vmatpush3.bf16.msra.mxu1 %v936_v17 }
  0x32   : > { %538 = vmatmul.mubr.bf16.vlgmr.msra.gmra.mrb[0].mxu0 %v937_v18  ;;  %570 = vmatmul.mubr.bf16.vlgmr.msra.gmra.mrb[0].mxu1 %v940_v19 }
  0x33   : > { %545 = vmatprep.mubr.bf16.mxu0 %v943_v20  ;;  %577 = vmatprep.mubr.bf16.mxu1 %v945_v21 }
  0x3a   : > { %546 = vmatmul.mubr.bf16.gmra.mrb[4].mxu0 %v947_v22  ;;  %578 = vmatmul.mubr.bf16.gmra.mrb[4].mxu1 %v948_v23 }
  0x3b   : > { %553 = vmatprep.mubr.bf16.mxu0 %v949_v24  ;;  %585 = vmatprep.mubr.bf16.mxu1 %v951_v25 }
  0x42   : > { %554 = vmatmul.mubr.bf16.gmra.mrb[8].mxu0 %v953_v26  ;;  %586 = vmatmul.mubr.bf16.gmra.mrb[8].mxu1 %v954_v27 }
  0x43   : > { %561 = vmatprep.mubr.bf16.mxu0 %v955_v28  ;;  %593 = vmatprep.mubr.bf16.mxu1 %v957_v29 }
  0x4a   : > { %562 = vmatmul.mubr.bf16.gmra.mrb[12].mxu0 %v959_v30  ;;  %594 = vmatmul.mubr.bf16.gmra.mrb[12].mxu1 %v960_v31 }
 0x105   : > { %v833_v32 = vpop.f32.mrb[0].mxu0  ;;  %v857_v33 = vpop.f32.mrb[0].mxu1 }
 0x106   : > { %v834_v35 = vpop.f32.mrb[1].mxu0  ;;  %v858_v36 = vpop.f32.mrb[1].mxu1 }
 0x107   : > { %v835_v37 = vadd.f32 %v834_v35, %v833_v32  ;;  %v859_v38 = vadd.f32 %v858_v36, %v857_v33  ;;  %v836_v39 = vpop.f32.mrb[2].mxu0  ;;  %v860_v40 = vpop.f32.mrb[2].mxu1 }
 0x108   : > { %v837_v41 = vpop.f32.mrb[3].mxu0  ;;  %v861_v42 = vpop.f32.mrb[3].mxu1 }
 0x109   : > { %v540_v43 = vadd.f32 %v835_v37, %v1104_v34  ;;  %v572_v44 = vadd.f32 %v859_v38, %v1104_v34  ;;  %v838_v45 = vadd.f32 %v837_v41, %v836_v39  ;;  %v862_v46 = vadd.f32 %v861_v42, %v860_v40 }
 0x10b   : > { %961 = vtanh.f32 %v540_v43  ;;  %v543_v47 = vadd.f32 %v838_v45, %v1104_v34  ;;  %v575_v48 = vadd.f32 %v862_v46, %v1104_v34 }
 0x10c   : > { %963 = vtanh.f32 %v572_v44 }
 0x10d   : > { %965 = vtanh.f32 %v543_v47  ;;  %v839_v49 = vpop.f32.mrb[4].mxu0  ;;  %v863_v50 = vpop.f32.mrb[4].mxu1 }
 0x10e   : > { %967 = vtanh.f32 %v575_v48  ;;  %v840_v51 = vpop.f32.mrb[5].mxu0  ;;  %v864_v52 = vpop.f32.mrb[5].mxu1 }
 0x10f   : > { %v841_v53 = vadd.f32 %v840_v51, %v839_v49  ;;  %v865_v54 = vadd.f32 %v864_v52, %v863_v50  ;;  %v842_v55 = vpop.f32.mrb[6].mxu0  ;;  %v866_v56 = vpop.f32.mrb[6].mxu1 }
 0x110   : > { %v843_v57 = vpop.f32.mrb[7].mxu0  ;;  %v867_v58 = vpop.f32.mrb[7].mxu1 }
 0x111   : > { %v548_v59 = vadd.f32 %v841_v53, %v1104_v34  ;;  %v580_v60 = vadd.f32 %v865_v54, %v1104_v34  ;;  %v844_v61 = vadd.f32 %v843_v57, %v842_v55  ;;  %v868_v62 = vadd.f32 %v867_v58, %v866_v56 }
 0x113   : > { %969 = vtanh.f32 %v548_v59  ;;  %v551_v63 = vadd.f32 %v844_v61, %v1104_v34  ;;  %v583_v0 = vadd.f32 %v868_v62, %v1104_v34 }
 0x114   : > { %971 = vtanh.f32 %v580_v60 }
 0x115   : > { %v962_v1 = vpop.eup %961  ;;  %973 = vtanh.f32 %v551_v63  ;;  %v845_v2 = vpop.f32.mrb[8].mxu0 }
 0x116   : > { %v869_v3 = vpop.f32.mrb[8].mxu1  ;;  %v964_v4 = vpop.eup %963  ;;  %618 = vst [vmem:[%s1116_s27] sm:$0xff] %v962_v1  ;;  %975 = vtanh.f32 %v583_v0 }
 0x117   : > { %v846_v5 = vpop.f32.mrb[9].mxu0  ;;  %v870_v6 = vpop.f32.mrb[9].mxu1  ;;  %626 = vst [vmem:[%s1116_s27 + $0x40] sm:$0xff] %v964_v4 }
 0x118   : > { %v966_v7 = vpop.eup %965  ;;  %v847_v8 = vadd.f32 %v846_v5, %v845_v2  ;;  %v871_v9 = vadd.f32 %v870_v6, %v869_v3  ;;  %v848_v10 = vpop.f32.mrb[10].mxu0 }
 0x119   : > { %v872_v11 = vpop.f32.mrb[10].mxu1  ;;  %v968_v12 = vpop.eup %967  ;;  %619 = vst [vmem:[%s1116_s27 + $0x8] sm:$0xff] %v966_v7 }
 0x11a   : > { %v849_v13 = vpop.f32.mrb[11].mxu0  ;;  %v873_v14 = vpop.f32.mrb[11].mxu1  ;;  %627 = vst [vmem:[%s1116_s27 + $0x48] sm:$0xff] %v968_v12  ;;  %v556_v15 = vadd.f32 %v847_v8, %v1104_v34  ;;  %v588_v16 = vadd.f32 %v871_v9, %v1104_v34 }
 0x11b   : > { %v850_v17 = vadd.f32 %v849_v13, %v848_v10  ;;  %v874_v18 = vadd.f32 %v873_v14, %v872_v11 }
 0x11c   : > { %977 = vtanh.f32 %v556_v15 }
 0x11d   : > { %v559_v19 = vadd.f32 %v850_v17, %v1104_v34  ;;  %v591_v20 = vadd.f32 %v874_v18, %v1104_v34  ;;  %979 = vtanh.f32 %v588_v16  ;;  %v970_v21 = vpop.eup %969  ;;  %v851_v22 = vpop.f32.mrb[12].mxu0 }
 0x11e   : > { %v875_v23 = vpop.f32.mrb[12].mxu1  ;;  %v972_v24 = vpop.eup %971  ;;  %620 = vst [vmem:[%s1116_s27 + $0x10] sm:$0xff] %v970_v21 }
 0x11f   : > { %981 = vtanh.f32 %v559_v19  ;;  %v852_v25 = vpop.f32.mrb[13].mxu0  ;;  %v876_v26 = vpop.f32.mrb[13].mxu1  ;;  %628 = vst [vmem:[%s1116_s27 + $0x50] sm:$0xff] %v972_v24 }
 0x120   : > { %983 = vtanh.f32 %v591_v20  ;;  %v974_v27 = vpop.eup %973  ;;  %v853_v28 = vadd.f32 %v852_v25, %v851_v22  ;;  %v877_v29 = vadd.f32 %v876_v26, %v875_v23  ;;  %v854_v30 = vpop.f32.mrb[14].mxu0 }
 0x121   : > { %v878_v31 = vpop.f32.mrb[14].mxu1  ;;  %v976_v32 = vpop.eup %975  ;;  %621 = vst [vmem:[%s1116_s27 + $0x18] sm:$0xff] %v974_v27 }
 0x122   : > { %v855_v33 = vpop.f32.mrb[15].mxu0  ;;  %v879_v35 = vpop.f32.mrb[15].mxu1  ;;  %629 = vst [vmem:[%s1116_s27 + $0x58] sm:$0xff] %v976_v32  ;;  %v564_v36 = vadd.f32 %v853_v28, %v1104_v34  ;;  %v596_v37 = vadd.f32 %v877_v29, %v1104_v34 }
 0x123   : > { %v856_v38 = vadd.f32 %v855_v33, %v854_v30  ;;  %v880_v39 = vadd.f32 %v879_v35, %v878_v31 }
 0x124   : > { %985 = vtanh.f32 %v564_v36 }
 0x125   : > { %v567_v40 = vadd.f32 %v856_v38, %v1104_v34  ;;  %v599_v41 = vadd.f32 %v880_v39, %v1104_v34  ;;  %987 = vtanh.f32 %v596_v37 }
 0x126   : > { %v978_v42 = vpop.eup %977 }
 0x127   : > { %989 = vtanh.f32 %v567_v40  ;;  %v980_v43 = vpop.eup %979  ;;  %622 = vst [vmem:[%s1116_s27 + $0x20] sm:$0xff] %v978_v42 }
 0x128   : > { %991 = vtanh.f32 %v599_v41  ;;  %630 = vst [vmem:[%s1116_s27 + $0x60] sm:$0xff] %v980_v43 }
 0x129   : > { %v982_v44 = vpop.eup %981 }
 0x12a   : > { %v984_v45 = vpop.eup %983  ;;  %623 = vst [vmem:[%s1116_s27 + $0x28] sm:$0xff] %v982_v44 }
 0x12b   : > { %631 = vst [vmem:[%s1116_s27 + $0x68] sm:$0xff] %v984_v45 }
 0x12e   : > { %v986_v46 = vpop.eup %985 }
 0x12f   : > { %v988_v47 = vpop.eup %987  ;;  %624 = vst [vmem:[%s1116_s27 + $0x30] sm:$0xff] %v986_v46 }
 0x130   : > { %632 = vst [vmem:[%s1116_s27 + $0x70] sm:$0xff] %v988_v47 }
 0x131   : > { %v990_v48 = vpop.eup %989 }
 0x132   : > { %v992_v34 = vpop.eup %991  ;;  %625 = vst [vmem:[%s1116_s27 + $0x38] sm:$0xff] %v990_v48 }
 0x133   : > { %633 = vst [vmem:[%s1116_s27 + $0x78] sm:$0xff] %v992_v34 }
 0x134 PF: > { %s13_s14 = sadd.s32 1, %s1015_s14   ;;  %s1157_s12 = smov %s1011_s13 }
 0x135   : > { %p10_p5 = scmp.ge.s32.totalorder %s13_s14, 6   ;;  %s1158_s13 = smov %s1160_s15 }
 0x137   :  { %12 = sbr.rel (!%p10_p5) target bundleno = 2 (0x2), region = 68 }

</bundles_post_ra>
